<compile_context>
chip_gen: v5e
topology: v5e:2x2
jax: 0.10.0
libtpu: 0.0.40
codegen_flags: <defaults>
</compile_context>

<pallas_src>
import functools

import jax
import jax.numpy as jnp
from jax.experimental import pallas as pl
from jax.experimental.pallas import tpu as pltpu


def _round_up(n, m):
    return ((n + m - 1) // m) * m


# Max batch tile: fills the MXU's M dimension (128 on v5e; v6e/v7x could use
# 256 for B >= 256, at the cost of h1 spilling to VMEM scratch — left at 128
# as the portable default).
_MAX_BATCH_TILE = 128


# ----------------------------------------------------------------------------
# Fused kernel: one batch tile, everything VMEM-resident.
#   out = relu(relu(x @ M1 + b1) @ M2 + b2) @ WL + bl
# x arrives f32, is cast to bf16 in-kernel; f32 accumulation, f32 bias/ReLU.
# ----------------------------------------------------------------------------
def _encoder_kernel(x_ref, m1_ref, b1_ref, m2_ref, b2_ref, wl_ref, bl_ref, o_ref):
    x = x_ref[...].astype(m1_ref.dtype)                       # in-kernel cast
    h1 = jnp.dot(x, m1_ref[...], preferred_element_type=jnp.float32)
    h1 = jnp.maximum(h1 + b1_ref[...], 0.0)
    h2 = jnp.dot(h1.astype(m2_ref.dtype), m2_ref[...],
                 preferred_element_type=jnp.float32)
    h2 = jnp.maximum(h2 + b2_ref[...], 0.0)
    y = jnp.dot(h2.astype(wl_ref.dtype), wl_ref[...],
                preferred_element_type=jnp.float32)
    o_ref[...] = (y + bl_ref[...]).astype(o_ref.dtype)


@functools.partial(jax.jit, static_argnames=("latent_dims",))
def encoder_forward(x, prep, *, latent_dims):
    B = x.shape[0]
    m1, m2, wl = prep["m1"], prep["m2"], prep["wl"]
    b1, b2, bl = prep["b1"], prep["b2"], prep["bl"]
    F0 = m1.shape[0]                      # 784 (unpadded — full-array last dim)
    Lp = wl.shape[1]

    tile = min(_MAX_BATCH_TILE, _round_up(B, 8))   # 8-sublane aligned batch tile
    Bp = _round_up(B, tile)

    xf = x.reshape(B, -1)                 # == torch x.view(B, -1) on NCHW; f32
    if Bp != B:
        xf = jnp.pad(xf, ((0, Bp - B), (0, 0)))

    out = pl.pallas_call(
        _encoder_kernel,
        out_shape=jax.ShapeDtypeStruct((Bp, Lp), jnp.float32),
        grid=(Bp // tile,),
        in_specs=[
            pl.BlockSpec((tile, F0), lambda b: (b, 0)),        # x tile (f32)
            pl.BlockSpec(m1.shape, lambda b: (0, 0)),          # resident weights
            pl.BlockSpec(b1.shape, lambda b: (0, 0)),
            pl.BlockSpec(m2.shape, lambda b: (0, 0)),
            pl.BlockSpec(b2.shape, lambda b: (0, 0)),
            pl.BlockSpec(wl.shape, lambda b: (0, 0)),
            pl.BlockSpec(bl.shape, lambda b: (0, 0)),
        ],
        out_specs=pl.BlockSpec((tile, Lp), lambda b: (b, 0)),
        compiler_params=pltpu.CompilerParams(
            dimension_semantics=("parallel",)),
    )(xf, m1, b1, m2, b2, wl, bl)

    return out[:B, :latent_dims]


# ----------------------------------------------------------------------------
# One-time, input-independent parameter lowering (no per-forward cost).
# ----------------------------------------------------------------------------
def _conv_to_matrix(wgt, in_shape, stride, pad):
    """Lower a conv (OIHW weights) to the dense matrix M such that
    flat_nchw(conv(x)) == flat_nchw(x) @ M  (no bias).  Built by applying the
    conv to an identity basis; runs once at parameter-prep time."""
    cin, h, w = in_shape
    n = cin * h * w
    eye = jnp.eye(n, dtype=jnp.float32).reshape(n, cin, h, w)
    dn = jax.lax.conv_dimension_numbers(eye.shape, wgt.shape,
                                        ("NCHW", "OIHW", "NCHW"))
    out = jax.lax.conv_general_dilated(
        eye, wgt, (stride, stride), ((pad, pad), (pad, pad)),
        dimension_numbers=dn)
    return out.reshape(n, -1)   # [cin*h*w, cout*ho*wo], channel-major both sides


def prepare_params(params, *, compute_dtype=jnp.bfloat16):
    """Fold convs, channel-major flatten, linear transpose and lane padding
    into the stored parameters (zero runtime cost per forward).  The K dim of
    the first matmul (784) is intentionally left unpadded."""
    w1, b1 = params["w1"], params["b1"]
    w2, b2 = params["w2"], params["b2"]
    wl, bl = params["wl"], params["bl"]
    c = w1.shape[0]

    m1 = _conv_to_matrix(w1, (1, 28, 28), 2, 1)        # [784, c*14*14]
    m2 = _conv_to_matrix(w2, (c, 14, 14), 2, 1)        # [c*14*14, 2c*7*7]
    wlm = wl.T                                         # [2c*7*7, latent]
    b1f = jnp.repeat(b1, 14 * 14)                      # channel-major bias layout
    b2f = jnp.repeat(b2, 7 * 7)

    F0, F1 = m1.shape
    F2 = m2.shape[1]
    L = wlm.shape[1]
    F1p, F2p, Lp = (_round_up(v, 128) for v in (F1, F2, L))

    def pad_mat(a, rows, cols):
        return jnp.pad(a, ((0, rows - a.shape[0]), (0, cols - a.shape[1])))

    def pad_row(a, cols):
        return jnp.pad(a, (0, cols - a.shape[0])).reshape(1, cols)

    return {
        "m1": pad_mat(m1, F0, F1p).astype(compute_dtype),    # rows unpadded (784)
        "m2": pad_mat(m2, F1p, F2p).astype(compute_dtype),
        "wl": pad_mat(wlm, F2p, Lp).astype(compute_dtype),
        "b1": pad_row(b1f, F1p).astype(jnp.float32),
        "b2": pad_row(b2f, F2p).astype(jnp.float32),
        "bl": pad_row(bl, Lp).astype(jnp.float32),
    }


def init_params(key, capacity, latent_dims):
    c = capacity
    k1, k2, k3, k4, k5, k6 = jax.random.split(key, 6)
    return {
        "w1": 0.1 * jax.random.normal(k1, (c, 1, 4, 4), jnp.float32),
        "b1": 0.1 * jax.random.normal(k2, (c,), jnp.float32),
        "w2": 0.1 * jax.random.normal(k3, (2 * c, c, 4, 4), jnp.float32),
        "b2": 0.1 * jax.random.normal(k4, (2 * c,), jnp.float32),
        "wl": 0.05 * jax.random.normal(k5, (latent_dims, 2 * c * 7 * 7), jnp.float32),
        "bl": 0.05 * jax.random.normal(k6, (latent_dims,), jnp.float32),
    }


# Pure-JAX f32 reference (sanity check only).
def encoder_reference(x, params):
    dn = jax.lax.conv_dimension_numbers(x.shape, params["w1"].shape,
                                        ("NCHW", "OIHW", "NCHW"))
    h = jax.lax.conv_general_dilated(x, params["w1"], (2, 2), ((1, 1), (1, 1)),
                                     dimension_numbers=dn)
    h = jax.nn.relu(h + params["b1"][None, :, None, None])
    dn = jax.lax.conv_dimension_numbers(h.shape, params["w2"].shape,
                                        ("NCHW", "OIHW", "NCHW"))
    h = jax.lax.conv_general_dilated(h, params["w2"], (2, 2), ((1, 1), (1, 1)),
                                     dimension_numbers=dn)
    h = jax.nn.relu(h + params["b2"][None, :, None, None])
    h = h.reshape(h.shape[0], -1)
    return h @ params["wl"].T + params["bl"]


if __name__ == "__main__":
    capacity, latent_dims = 4, 8
    batch = 2

    key = jax.random.PRNGKey(0)
    kx, kp = jax.random.split(key)
    x = jax.random.normal(kx, (batch, 1, 28, 28), jnp.float32)
    params = init_params(kp, capacity, latent_dims)

    prep = prepare_params(params, compute_dtype=jnp.bfloat16)

    out = encoder_forward(x, prep, latent_dims=latent_dims)
    out = jax.block_until_ready(out)

    ref = encoder_reference(x, params)
    assert out.shape == (batch, latent_dims), out.shape
    # bf16 MXU operands (f32 accumulate) => a few 1e-3 of absolute error vs f32.
    assert jnp.allclose(out, ref, atol=5e-2, rtol=5e-2), \
        float(jnp.max(jnp.abs(out - ref)))

    print("KERNEL_OK")
</pallas_src>

<mosaic_0001>
module attributes {stable_mosaic.version = 11 : i64} {
  func.func @_encoder_kernel(%arg0: i32, %arg1: memref<8x784xf32, #tpu.memory_space<vmem>>, %arg2: memref<784x896xbf16, #tpu.memory_space<vmem>>, %arg3: memref<1x896xf32, #tpu.memory_space<vmem>>, %arg4: memref<896x512xbf16, #tpu.memory_space<vmem>>, %arg5: memref<1x512xf32, #tpu.memory_space<vmem>>, %arg6: memref<512x128xbf16, #tpu.memory_space<vmem>>, %arg7: memref<1x128xf32, #tpu.memory_space<vmem>>, %arg8: memref<8x128xf32, #tpu.memory_space<vmem>>) attributes {dimension_semantics = [#tpu.dimension_semantics<parallel>], iteration_bounds = array<i64: 1>, scalar_prefetch = 0 : i64, scratch_operands = 0 : i64, tpu.core_type = #tpu.core_type<tc>, window_params = [{transform_indices = @transform_0, window_bounds = array<i64: 8, 784>}, {pipeline_mode = #tpu.pipeline_mode<synchronous>, transform_indices = @transform_1, window_bounds = array<i64: 784, 896>}, {pipeline_mode = #tpu.pipeline_mode<synchronous>, transform_indices = @transform_2, window_bounds = array<i64: 1, 896>}, {pipeline_mode = #tpu.pipeline_mode<synchronous>, transform_indices = @transform_3, window_bounds = array<i64: 896, 512>}, {pipeline_mode = #tpu.pipeline_mode<synchronous>, transform_indices = @transform_4, window_bounds = array<i64: 1, 512>}, {pipeline_mode = #tpu.pipeline_mode<synchronous>, transform_indices = @transform_5, window_bounds = array<i64: 512, 128>}, {pipeline_mode = #tpu.pipeline_mode<synchronous>, transform_indices = @transform_6, window_bounds = array<i64: 1, 128>}, {transform_indices = @transform_7, window_bounds = array<i64: 8, 128>}]} {
    %c0 = arith.constant 0 : index
    %c0_0 = arith.constant 0 : index
    %0 = vector.load %arg1[%c0, %c0_0] : memref<8x784xf32, #tpu.memory_space<vmem>>, vector<8x784xf32>
    %1 = arith.truncf %0 : vector<8x784xf32> to vector<8x784xbf16>
    %c0_1 = arith.constant 0 : index
    %c0_2 = arith.constant 0 : index
    %2 = vector.load %arg2[%c0_1, %c0_2] : memref<784x896xbf16, #tpu.memory_space<vmem>>, vector<784x896xbf16>
    %cst = arith.constant dense<0.000000e+00> : vector<8x896xf32>
    %3 = tpu.matmul %1, %2, %cst {dimension_numbers = #tpu.dot_dimension_numbers<[1], [0], [0], [1], [0, 0, 1, 1], [], []>} : vector<8x784xbf16>, vector<784x896xbf16>, vector<8x896xf32> -> vector<8x896xf32>
    %c0_3 = arith.constant 0 : index
    %c0_4 = arith.constant 0 : index
    %4 = vector.load %arg3[%c0_3, %c0_4] : memref<1x896xf32, #tpu.memory_space<vmem>>, vector<1x896xf32>
    %5 = vector.broadcast %4 : vector<1x896xf32> to vector<8x896xf32>
    %6 = arith.addf %3, %5 : vector<8x896xf32>
    %cst_5 = arith.constant 0.000000e+00 : f32
    %7 = vector.broadcast %cst_5 : f32 to vector<8x896xf32>
    %8 = arith.maximumf %6, %7 : vector<8x896xf32>
    %9 = arith.truncf %8 : vector<8x896xf32> to vector<8x896xbf16>
    %c0_6 = arith.constant 0 : index
    %c0_7 = arith.constant 0 : index
    %10 = vector.load %arg4[%c0_6, %c0_7] : memref<896x512xbf16, #tpu.memory_space<vmem>>, vector<896x512xbf16>
    %cst_8 = arith.constant dense<0.000000e+00> : vector<8x512xf32>
    %11 = tpu.matmul %9, %10, %cst_8 {dimension_numbers = #tpu.dot_dimension_numbers<[1], [0], [0], [1], [0, 0, 1, 1], [], []>} : vector<8x896xbf16>, vector<896x512xbf16>, vector<8x512xf32> -> vector<8x512xf32>
    %c0_9 = arith.constant 0 : index
    %c0_10 = arith.constant 0 : index
    %12 = vector.load %arg5[%c0_9, %c0_10] : memref<1x512xf32, #tpu.memory_space<vmem>>, vector<1x512xf32>
    %13 = vector.broadcast %12 : vector<1x512xf32> to vector<8x512xf32>
    %14 = arith.addf %11, %13 : vector<8x512xf32>
    %cst_11 = arith.constant 0.000000e+00 : f32
    %15 = vector.broadcast %cst_11 : f32 to vector<8x512xf32>
    %16 = arith.maximumf %14, %15 : vector<8x512xf32>
    %17 = arith.truncf %16 : vector<8x512xf32> to vector<8x512xbf16>
    %c0_12 = arith.constant 0 : index
    %c0_13 = arith.constant 0 : index
    %18 = vector.load %arg6[%c0_12, %c0_13] : memref<512x128xbf16, #tpu.memory_space<vmem>>, vector<512x128xbf16>
    %cst_14 = arith.constant dense<0.000000e+00> : vector<8x128xf32>
    %19 = tpu.matmul %17, %18, %cst_14 {dimension_numbers = #tpu.dot_dimension_numbers<[1], [0], [0], [1], [0, 0, 1, 1], [], []>} : vector<8x512xbf16>, vector<512x128xbf16>, vector<8x128xf32> -> vector<8x128xf32>
    %c0_15 = arith.constant 0 : index
    %c0_16 = arith.constant 0 : index
    %20 = vector.load %arg7[%c0_15, %c0_16] : memref<1x128xf32, #tpu.memory_space<vmem>>, vector<1x128xf32>
    %21 = vector.broadcast %20 : vector<1x128xf32> to vector<8x128xf32>
    %22 = arith.addf %19, %21 : vector<8x128xf32>
    %c0_17 = arith.constant 0 : index
    %c0_18 = arith.constant 0 : index
    %23 = vector.load %arg8[%c0_17, %c0_18] : memref<8x128xf32, #tpu.memory_space<vmem>>, vector<8x128xf32>
    tpu.vector_store %arg8[%c0_17, %c0_18], %22 {strides = array<i32>} : memref<8x128xf32, #tpu.memory_space<vmem>>, vector<8x128xf32>,
    return
  }
  func.func @transform_0(%arg0: i32) -> (i32, i32) {
    %c0_i32 = arith.constant 0 : i32
    %c0_i32_0 = arith.constant 0 : i32
    return %arg0, %c0_i32 : i32, i32
  }
  func.func @transform_1(%arg0: i32) -> (i32, i32) {
    %c0_i32 = arith.constant 0 : i32
    %c0_i32_0 = arith.constant 0 : i32
    %c0_i32_1 = arith.constant 0 : i32
    return %c0_i32, %c0_i32_0 : i32, i32
  }
  func.func @transform_2(%arg0: i32) -> (i32, i32) {
    %c0_i32 = arith.constant 0 : i32
    %c0_i32_0 = arith.constant 0 : i32
    %c0_i32_1 = arith.constant 0 : i32
    return %c0_i32, %c0_i32_0 : i32, i32
  }
  func.func @transform_3(%arg0: i32) -> (i32, i32) {
    %c0_i32 = arith.constant 0 : i32
    %c0_i32_0 = arith.constant 0 : i32
    %c0_i32_1 = arith.constant 0 : i32
    return %c0_i32, %c0_i32_0 : i32, i32
  }
  func.func @transform_4(%arg0: i32) -> (i32, i32) {
    %c0_i32 = arith.constant 0 : i32
    %c0_i32_0 = arith.constant 0 : i32
    %c0_i32_1 = arith.constant 0 : i32
    return %c0_i32, %c0_i32_0 : i32, i32
  }
  func.func @transform_5(%arg0: i32) -> (i32, i32) {
    %c0_i32 = arith.constant 0 : i32
    %c0_i32_0 = arith.constant 0 : i32
    %c0_i32_1 = arith.constant 0 : i32
    return %c0_i32, %c0_i32_0 : i32, i32
  }
  func.func @transform_6(%arg0: i32) -> (i32, i32) {
    %c0_i32 = arith.constant 0 : i32
    %c0_i32_0 = arith.constant 0 : i32
    %c0_i32_1 = arith.constant 0 : i32
    return %c0_i32, %c0_i32_0 : i32, i32
  }
  func.func @transform_7(%arg0: i32) -> (i32, i32) {
    %c0_i32 = arith.constant 0 : i32
    %c0_i32_0 = arith.constant 0 : i32
    return %arg0, %c0_i32 : i32, i32
  }
}

</mosaic_0001>

<bundles_post_ra>
// kernel: encoder_forward.1
= control target key start
LH: loop header
LB: loop body
LE: loop exit
PB: predicated region body
PF: predicated region fallthrough
CT: control target
= control target key end

     0   :  { %12 = vsyncpa [#allocation3], 0  ;;  %s8490_s0 = inlined_call_operand.vmem [shape: f32[8,784], index: 0, kind: input, shape index: {}]   ;;  %s8491_s1 = inlined_call_operand.hbm [shape: bf16[784,896], index: 1, kind: input, shape index: {}]   ;;  %s8492_s2 = inlined_call_operand.hbm [shape: f32[1,896], index: 2, kind: input, shape index: {}]   ;;  %s8493_s3 = inlined_call_operand.hbm [shape: bf16[896,512], index: 3, kind: input, shape index: {}]   ;;  %s8494_s4 = inlined_call_operand.hbm [shape: f32[1,512], index: 4, kind: input, shape index: {}]   ;;  %s8495_s5 = inlined_call_operand.hbm [shape: bf16[512,128], index: 5, kind: input, shape index: {}]   ;;  %s8496_s6 = inlined_call_operand.hbm [shape: f32[1,128], index: 6, kind: input, shape index: {}]   ;;  %s8497_s7 = inlined_call_operand.vmem [shape: f32[8,128], index: 7, kind: output, shape index: {}]  }
   0x1   :  { %13 = vsyncpa [#allocation5], 0 }
   0x2   :  { %14 = vsyncpa [#allocation8], 0  ;;  %s36_s26 = sshll.u32 %s8492_s2, 4  ;;  %s37_s26 = int_to_ptr.hbm [resolvable:$true] %s36_s26 }
   0x3   :  { %15 = vsyncpa [#allocation11], 0  ;;  %s8172_s27 = smov [#allocation4]   ;;  %s60_s8 = sshll.u32 %s8494_s4, 4  ;;  %s61_s8 = int_to_ptr.hbm [resolvable:$true] %s60_s8 }
   0x4   :  { %s38_s28 = sshll.u32 %s8172_s27, 4  ;;  %s8173_s9 = smov [#allocation7]   ;;  %s39_s28 = int_to_ptr.vmem [resolvable:$true] %s38_s28 }
   0x5   :  { %41 = dma.hbm_to_vmem [thread:$0]  %s37_s26, 112, %s39_s28, [#allocation5]  }
   0x6   :  { %s62_s10 = sshll.u32 %s8173_s9, 4  ;;  %s22_s13 = sshll.u32 %s8491_s1, 4  ;;  %s63_s10 = int_to_ptr.vmem [resolvable:$true] %s62_s10  ;;  %s23_s13 = int_to_ptr.hbm [resolvable:$true] %s22_s13 }
   0x7   :  { %65 = dma.hbm_to_vmem [thread:$0]  %s61_s8, 64, %s63_s10, [#allocation8]  }
   0x8   :  { %s8174_s2 = smov [#allocation2]   ;;  %s46_s17 = sshll.u32 %s8493_s3, 4  ;;  %s47_s17 = int_to_ptr.hbm [resolvable:$true] %s46_s17 }
   0x9   :  { %s24_s14 = sshll.u32 %s8174_s2, 4  ;;  %s8175_s18 = smov 448   ;;  %s25_s14 = int_to_ptr.vmem [resolvable:$true] %s24_s14 }
   0xa   :  { %s8176_s4 = smov 28   ;;  %s8177_s19 = smov [#allocation6]  }
   0xb   :  { %30 = dma.hbm_to_vmem [thread:$0]  %s23_s13, 43904, %s25_s14, [#allocation3], %s8175_s18, %s8175_s18, %s8176_s4  }
   0xc   :  { %s48_s20 = sshll.u32 %s8177_s19, 4  ;;  %s8178_s21 = smov 256   ;;  %s49_s20 = int_to_ptr.vmem [resolvable:$true] %s48_s20 }
   0xd   :  { %s8179_s22 = smov 16   ;;  %s70_s24 = sshll.u32 %s8495_s5, 4  ;;  %s71_s24 = int_to_ptr.hbm [resolvable:$true] %s70_s24 }
   0xe   :  { %54 = dma.hbm_to_vmem [thread:$0]  %s47_s17, 28672, %s49_s20, [#allocation5], %s8178_s21, %s8178_s21, %s8179_s22  }
   0xf   :  { %s8180_s25 = smov [#allocation9]   ;;  %s84_s28 = sshll.u32 %s8496_s6, 4  ;;  %s85_s28 = int_to_ptr.hbm [resolvable:$true] %s84_s28 }
  0x10   :  { %s72_s26 = sshll.u32 %s8180_s25, 4  ;;  %s8181_s29 = smov 64   ;;  %s73_s26 = int_to_ptr.vmem [resolvable:$true] %s72_s26 }
  0x11   :  { %s8182_s30 = smov 4   ;;  %s8183_s8 = smov [#allocation10]  }
  0x12   :  { %78 = dma.hbm_to_vmem [thread:$0]  %s71_s24, 4096, %s73_s26, [#allocation8], %s8181_s29, %s8181_s29, %s8182_s30  }
  0x13   :  { %s86_s9 = sshll.u32 %s8183_s8, 4  ;;  %s87_s9 = int_to_ptr.vmem [resolvable:$true] %s86_s9 }
  0x14   :  { %89 = dma.hbm_to_vmem [thread:$0]  %s85_s28, 16, %s87_s9, [#allocation11]  }
  0x15   :  { %8164 = dma.done.wait [#allocation3], 43904  }
  0x16   :  { %8165 = vsyncadd [#allocation3], 4294923392 }
  0x17   :  { %8166 = dma.done.wait [#allocation5], 28784  }
  0x18   :  { %8167 = vsyncadd [#allocation5], 4294938512 }
  0x19   :  { %8168 = dma.done.wait [#allocation8], 4160  }
  0x1a   :  { %8169 = vsyncadd [#allocation8], 4294963136 }
  0x1b   :  { %8170 = dma.done.wait [#allocation11], 16  }
  0x1c   :  { %8171 = vsyncadd [#allocation11], 4294967280  ;;  %v5201_v0 = vld [vmem:[#allocation2 + $0x188] sm:$0xf]  ;;  %v7458_v1 = vld [vmem:[#allocation2 + $0x1a0] sm:$0xf0] }
  0x1d   :  { %v5425_v2 = vld [vmem:[#allocation2 + $0x348] sm:$0xf]  ;;  %v5202_v3 = vor.u32 %v7458_v1, %v5201_v0  ;;  %v7514_v4 = vld [vmem:[#allocation2 + $0x360] sm:$0xf0]  ;;  %v5173_v11 = vld [vmem:[#allocation2 + $0x150] sm:$0xf] }
  0x1e   :  { %v5649_v5 = vld [vmem:[#allocation2 + $0x508] sm:$0xf]  ;;  %v7570_v6 = vld [vmem:[#allocation2 + $0x520] sm:$0xf0]  ;;  %v5426_v7 = vor.u32 %v7514_v4, %v5425_v2  ;;  %v7451_v13 = vld [vmem:[#allocation2 + $0x168] sm:$0xf0] }
  0x1f   :  { %v5650_v8 = vor.u32 %v7570_v6, %v5649_v5  ;;  %v5873_v9 = vld [vmem:[#allocation2 + $0x6c8] sm:$0xf]  ;;  %v7626_v10 = vld [vmem:[#allocation2 + $0x6e0] sm:$0xf0]  ;;  %2305 = vmatpush.bf16.msra.mxu0 %v5202_v3  ;;  %v5397_v14 = vld [vmem:[#allocation2 + $0x310] sm:$0xf]  ;;  %v5174_v16 = vor.u32 %v7451_v13, %v5173_v11 }
  0x20   :  { %v5874_v12 = vor.u32 %v7626_v10, %v5873_v9  ;;  %v7507_v15 = vld [vmem:[#allocation2 + $0x328] sm:$0xf0]  ;;  %2318 = vmatpush.bf16.msra.mxu1 %v5426_v7  ;;  %v5621_v18 = vld [vmem:[#allocation2 + $0x4d0] sm:$0xf]  ;;  %v5145_v23 = vld [vmem:[#allocation2 + $0x118] sm:$0xf] }
  0x21   :  { %2331 = vmatpush.bf16.msra.mxu2 %v5650_v8  ;;  %v5398_v17 = vor.u32 %v7507_v15, %v5397_v14  ;;  %v7563_v19 = vld [vmem:[#allocation2 + $0x4e8] sm:$0xf0]  ;;  %v5845_v20 = vld [vmem:[#allocation2 + $0x690] sm:$0xf]  ;;  %v7444_v24 = vld [vmem:[#allocation2 + $0x130] sm:$0xf0] }
  0x22   :  { %2344 = vmatpush.bf16.msra.mxu3 %v5874_v12  ;;  %v5622_v21 = vor.u32 %v7563_v19, %v5621_v18  ;;  %v7619_v22 = vld [vmem:[#allocation2 + $0x6a8] sm:$0xf0]  ;;  %v5369_v26 = vld [vmem:[#allocation2 + $0x2d8] sm:$0xf]  ;;  %v7500_v27 = vld [vmem:[#allocation2 + $0x2f0] sm:$0xf0]  ;;  %v5146_v29 = vor.u32 %v7444_v24, %v5145_v23 }
  0x23   :  { %v5846_v25 = vor.u32 %v7619_v22, %v5845_v20  ;;  %v5593_v28 = vld [vmem:[#allocation2 + $0x498] sm:$0xf]  ;;  %2306 = vmatpush.bf16.msra.mxu0 %v5174_v16  ;;  %v7556_v30 = vld [vmem:[#allocation2 + $0x4b0] sm:$0xf0]  ;;  %v5370_v33 = vor.u32 %v7500_v27, %v5369_v26  ;;  %v5117_v35 = vld [vmem:[#allocation2 + $0xe0] sm:$0xf] }
  0x24   :  { %v5817_v31 = vld [vmem:[#allocation2 + $0x658] sm:$0xf]  ;;  %v7612_v32 = vld [vmem:[#allocation2 + $0x670] sm:$0xf0]  ;;  %2319 = vmatpush.bf16.msra.mxu1 %v5398_v17  ;;  %v5594_v34 = vor.u32 %v7556_v30, %v5593_v28  ;;  %v7437_v36 = vld [vmem:[#allocation2 + $0xf8] sm:$0xf0] }
  0x25   :  { %2332 = vmatpush.bf16.msra.mxu2 %v5622_v21  ;;  %v5341_v37 = vld [vmem:[#allocation2 + $0x2a0] sm:$0xf]  ;;  %v5818_v38 = vor.u32 %v7612_v32, %v5817_v31  ;;  %v7493_v39 = vld [vmem:[#allocation2 + $0x2b8] sm:$0xf0]  ;;  %v5118_v44 = vor.u32 %v7437_v36, %v5117_v35  ;;  %v5089_v47 = vld [vmem:[#allocation2 + $0xa8] sm:$0xf] }
  0x26   :  { %2345 = vmatpush.bf16.msra.mxu3 %v5846_v25  ;;  %v5565_v40 = vld [vmem:[#allocation2 + $0x460] sm:$0xf]  ;;  %v7549_v41 = vld [vmem:[#allocation2 + $0x478] sm:$0xf0]  ;;  %v5342_v45 = vor.u32 %v7493_v39, %v5341_v37  ;;  %v7430_v48 = vld [vmem:[#allocation2 + $0xc0] sm:$0xf0] }
  0x27   :  { %v5789_v42 = vld [vmem:[#allocation2 + $0x620] sm:$0xf]  ;;  %v7605_v43 = vld [vmem:[#allocation2 + $0x638] sm:$0xf0]  ;;  %2307 = vmatpush.bf16.msra.mxu0 %v5146_v29  ;;  %v5566_v46 = vor.u32 %v7549_v41, %v5565_v40  ;;  %v5313_v49 = vld [vmem:[#allocation2 + $0x268] sm:$0xf]  ;;  %v5090_v56 = vor.u32 %v7430_v48, %v5089_v47 }
  0x28   :  { %2320 = vmatpush.bf16.msra.mxu1 %v5370_v33  ;;  %v5790_v50 = vor.u32 %v7605_v43, %v5789_v42  ;;  %v7486_v51 = vld [vmem:[#allocation2 + $0x280] sm:$0xf0]  ;;  %v5537_v52 = vld [vmem:[#allocation2 + $0x428] sm:$0xf]  ;;  %v5061_v59 = vld [vmem:[#allocation2 + $0x70] sm:$0xf] }
  0x29   :  { %2333 = vmatpush.bf16.msra.mxu2 %v5594_v34  ;;  %v7542_v53 = vld [vmem:[#allocation2 + $0x440] sm:$0xf0]  ;;  %v5761_v54 = vld [vmem:[#allocation2 + $0x5e8] sm:$0xf]  ;;  %v5314_v57 = vor.u32 %v7486_v51, %v5313_v49  ;;  %v7423_v60 = vld [vmem:[#allocation2 + $0x88] sm:$0xf0] }
  0x2a   :  { %2346 = vmatpush.bf16.msra.mxu3 %v5818_v38  ;;  %v7598_v55 = vld [vmem:[#allocation2 + $0x600] sm:$0xf0]  ;;  %v5538_v58 = vor.u32 %v7542_v53, %v5537_v52  ;;  %v5285_v61 = vld [vmem:[#allocation2 + $0x230] sm:$0xf]  ;;  %v7479_v63 = vld [vmem:[#allocation2 + $0x248] sm:$0xf0]  ;;  %v5062_v4 = vor.u32 %v7423_v60, %v5061_v59 }
  0x2b   :  { %2308 = vmatpush.bf16.msra.mxu0 %v5118_v44  ;;  %v5762_v62 = vor.u32 %v7598_v55, %v5761_v54  ;;  %v5509_v0 = vld [vmem:[#allocation2 + $0x3f0] sm:$0xf]  ;;  %v7535_v1 = vld [vmem:[#allocation2 + $0x408] sm:$0xf0]  ;;  %v5286_v5 = vor.u32 %v7479_v63, %v5285_v61  ;;  %v5033_v7 = vld [vmem:[#allocation2 + $0x38] sm:$0xf] }
  0x2c   :  { %2321 = vmatpush.bf16.msra.mxu1 %v5342_v45  ;;  %v5733_v2 = vld [vmem:[#allocation2 + $0x5b0] sm:$0xf]  ;;  %v7591_v3 = vld [vmem:[#allocation2 + $0x5c8] sm:$0xf0]  ;;  %v5510_v6 = vor.u32 %v7535_v1, %v5509_v0  ;;  %v7416_v8 = vld [vmem:[#allocation2 + $0x50] sm:$0xf0] }
  0x2d   :  { %2334 = vmatpush.bf16.msra.mxu2 %v5566_v46  ;;  %v5257_v9 = vld [vmem:[#allocation2 + $0x1f8] sm:$0xf]  ;;  %v5734_v10 = vor.u32 %v7591_v3, %v5733_v2  ;;  %v7472_v11 = vld [vmem:[#allocation2 + $0x210] sm:$0xf0]  ;;  %v5034_v16 = vor.u32 %v7416_v8, %v5033_v7  ;;  %v5005_v17 = vld [vmem:[#allocation2] sm:$0xf] }
  0x2e   :  { %2347 = vmatpush.bf16.msra.mxu3 %v5790_v50  ;;  %v5481_v12 = vld [vmem:[#allocation2 + $0x3b8] sm:$0xf]  ;;  %v7528_v13 = vld [vmem:[#allocation2 + $0x3d0] sm:$0xf0]  ;;  %v7409_v18 = vld [vmem:[#allocation2 + $0x18] sm:$0xf0]  ;;  %v5258_v19 = vor.u32 %v7472_v11, %v5257_v9 }
  0x2f   :  { %2309 = vmatpush.bf16.msra.mxu0 %v5090_v56  ;;  %v5705_v14 = vld [vmem:[#allocation2 + $0x578] sm:$0xf]  ;;  %v7584_v15 = vld [vmem:[#allocation2 + $0x590] sm:$0xf0]  ;;  %v5482_v20 = vor.u32 %v7528_v13, %v5481_v12  ;;  %v5229_v21 = vld [vmem:[#allocation2 + $0x1c0] sm:$0xf]  ;;  %v5006_v31 = vor.u32 %v7409_v18, %v5005_v17 }
  0x30   :  { %2322 = vmatpush.bf16.msra.mxu1 %v5314_v57  ;;  %v7465_v22 = vld [vmem:[#allocation2 + $0x1d8] sm:$0xf0]  ;;  %v5453_v23 = vld [vmem:[#allocation2 + $0x380] sm:$0xf]  ;;  %v5706_v24 = vor.u32 %v7584_v15, %v5705_v14  ;;  %v6097_v28 = vld [vmem:[#allocation2 + $0x888] sm:$0xf] }
  0x31   :  { %2335 = vmatpush.bf16.msra.mxu2 %v5538_v58  ;;  %v7521_v25 = vld [vmem:[#allocation2 + $0x398] sm:$0xf0]  ;;  %v5677_v26 = vld [vmem:[#allocation2 + $0x540] sm:$0xf]  ;;  %v7682_v29 = vld [vmem:[#allocation2 + $0x8a0] sm:$0xf0]  ;;  %v5230_v35 = vor.u32 %v7465_v22, %v5229_v21 }
  0x32   :  { %2348 = vmatpush.bf16.msra.mxu3 %v5762_v62  ;;  %v7577_v27 = vld [vmem:[#allocation2 + $0x558] sm:$0xf0]  ;;  %v6321_v30 = vld [vmem:[#allocation2 + $0xa48] sm:$0xf]  ;;  %v7738_v32 = vld [vmem:[#allocation2 + $0xa60] sm:$0xf0]  ;;  %v5454_v36 = vor.u32 %v7521_v25, %v5453_v23  ;;  %v6098_v40 = vor.u32 %v7682_v29, %v6097_v28 }
  0x33   :  { %2310 = vmatpush.bf16.msra.mxu0 %v5062_v4  ;;  %v7455_v33 = vld [vmem:[#allocation2 + $0x18c] sm:$0xf]  ;;  %v5203_v34 = vld [vmem:[#allocation2 + $0x1a4] sm:$0xf0]  ;;  %v6349_v37 = vld [vmem:[#allocation2 + $0xa80] sm:$0xf]  ;;  %v5678_v39 = vor.u32 %v7577_v27, %v5677_v26  ;;  %v6322_v44 = vor.u32 %v7738_v32, %v6321_v30 }
  0x34   :  { %2323 = vmatpush.bf16.msra.mxu1 %v5286_v5  ;;  %v7745_v38 = vld [vmem:[#allocation2 + $0xa98] sm:$0xf0]  ;;  %v117_v41 = vld [vmem:[%s8490_s0 + $0x10] sm:$0xff]  ;;  %v7511_v42 = vld [vmem:[#allocation2 + $0x34c] sm:$0xf]  ;;  %v5206_v45 = vor.u32 %v7455_v33, %v5203_v34  ;;  %vm2301_vm0 = vcmask 130048  }
  0x35   :  { %2336 = vmatpush.bf16.msra.mxu2 %v5510_v6  ;;  %v5427_v43 = vld [vmem:[#allocation2 + $0x364] sm:$0xf0]  ;;  %v6069_v46 = vld [vmem:[#allocation2 + $0x850] sm:$0xf]  ;;  %v7675_v47 = vld [vmem:[#allocation2 + $0x868] sm:$0xf0]  ;;  %v6350_v49 = vor.u32 %v7745_v38, %v6349_v37  ;;  %v8245_v53 = vpack.c.bf16 %v117_v41, %v117_v41 }
  0x36   :  { %2349 = vmatpush.bf16.msra.mxu3 %v5734_v10  ;;  %v6293_v48 = vld [vmem:[#allocation2 + $0xa10] sm:$0xf]  ;;  %v7731_v50 = vld [vmem:[#allocation2 + $0xa28] sm:$0xf0]  ;;  %v7448_v51 = vld [vmem:[#allocation2 + $0x154] sm:$0xf]  ;;  %v5430_v54 = vor.u32 %v7511_v42, %v5427_v43  ;;  %v6070_v55 = vor.u32 %v7675_v47, %v6069_v46 }
  0x37   :  { %2311 = vmatpush.bf16.msra.mxu0 %v5034_v16  ;;  %v5175_v52 = vld [vmem:[#allocation2 + $0x16c] sm:$0xf0]  ;;  %v7504_v56 = vld [vmem:[#allocation2 + $0x314] sm:$0xf]  ;;  %v6041_v58 = vld [vmem:[#allocation2 + $0x818] sm:$0xf]  ;;  %v6294_v59 = vor.u32 %v7731_v50, %v6293_v48 }
  0x38   :  { %2324 = vmatpush.bf16.msra.mxu1 %v5258_v19  ;;  %v5399_v57 = vld [vmem:[#allocation2 + $0x32c] sm:$0xf0]  ;;  %v5178_v60 = vor.u32 %v7448_v51, %v5175_v52  ;;  %v7668_v61 = vld [vmem:[#allocation2 + $0x830] sm:$0xf0]  ;;  %v6265_v62 = vld [vmem:[#allocation2 + $0x9d8] sm:$0xf] }
  0x39   :  { %2337 = vmatpush.bf16.msra.mxu2 %v5482_v20  ;;  %v7724_v63 = vld [vmem:[#allocation2 + $0x9f0] sm:$0xf0]  ;;  %v7441_v0 = vld [vmem:[#allocation2 + $0x11c] sm:$0xf]  ;;  %v5147_v1 = vld [vmem:[#allocation2 + $0x134] sm:$0xf0]  ;;  %v5402_v5 = vor.u32 %v7504_v56, %v5399_v57  ;;  %v6042_v6 = vor.u32 %v7668_v61, %v6041_v58 }
  0x3a   :  { %2350 = vmatpush.bf16.msra.mxu3 %v5706_v24  ;;  %v115_v2 = vld [vmem:[%s8490_s0] sm:$0xff]  ;;  %v7497_v3 = vld [vmem:[#allocation2 + $0x2dc] sm:$0xf]  ;;  %v5371_v7 = vld [vmem:[#allocation2 + $0x2f4] sm:$0xf0]  ;;  %v6266_v10 = vor.u32 %v7724_v63, %v6265_v62  ;;  %v5150_v11 = vor.u32 %v7441_v0, %v5147_v1 }
  0x3b   :  { %2312 = vmatpush.bf16.msra.mxu0 %v5006_v31  ;;  %v8251_v4 = vpack.c.bf16 %v115_v2, %v115_v2  ;;  %v6013_v8 = vld [vmem:[#allocation2 + $0x7e0] sm:$0xf]  ;;  %v7661_v9 = vld [vmem:[#allocation2 + $0x7f8] sm:$0xf0]  ;;  %v116_v13 = vld [vmem:[%s8490_s0 + $0x8] sm:$0xff]  ;;  %v5374_v20 = vor.u32 %v7497_v3, %v5371_v7 }
  0x3c   :  { %2325 = vmatpush.bf16.msra.mxu1 %v5230_v35  ;;  %v6237_v12 = vld [vmem:[#allocation2 + $0x9a0] sm:$0xf]  ;;  %v118_v14 = vld [vmem:[%s8490_s0 + $0x18] sm:$0xff]  ;;  %v7434_v16 = vld [vmem:[#allocation2 + $0xe4] sm:$0xf]  ;;  %v8260_v18 = vpack.c.bf16 %v116_v13, %v116_v13  ;;  %v6014_v21 = vor.u32 %v7661_v9, %v6013_v8 }
  0x3d   :  { %2338 = vmatpush.bf16.msra.mxu2 %v5454_v36  ;;  %v7717_v15 = vld [vmem:[#allocation2 + $0x9b8] sm:$0xf0]  ;;  %v5119_v17 = vld [vmem:[#allocation2 + $0xfc] sm:$0xf0]  ;;  %v8262_v19 = vpack.c.bf16 %v118_v14, %v118_v14  ;;  %v7490_v22 = vld [vmem:[#allocation2 + $0x2a4] sm:$0xf] }
  0x3e   :  { %2351 = vmatpush.bf16.msra.mxu3 %v5678_v39  ;;  %2313 = vmatmul.bf16.vlgmr.msra.gmra.mxu0 %v8251_v4  ;;  %v5343_v23 = vld [vmem:[#allocation2 + $0x2bc] sm:$0xf0]  ;;  %v6238_v24 = vor.u32 %v7717_v15, %v6237_v12  ;;  %v5122_v25 = vor.u32 %v7434_v16, %v5119_v17  ;;  %v5985_v26 = vld [vmem:[#allocation2 + $0x7a8] sm:$0xf]  ;;  %v7654_v27 = vld [vmem:[#allocation2 + $0x7c0] sm:$0xf0] }
  0x3f   :  { %2357 = vmatpush.bf16.msrb.mxu0 %v6098_v40  ;;  %v6209_v28 = vld [vmem:[#allocation2 + $0x968] sm:$0xf]  ;;  %v7710_v29 = vld [vmem:[#allocation2 + $0x980] sm:$0xf0]  ;;  %v7427_v30 = vld [vmem:[#allocation2 + $0xac] sm:$0xf]  ;;  %2326 = vmatmul.bf16.vlgmr.msra.gmra.mxu1 %v8260_v18  ;;  %v5346_v32 = vor.u32 %v7490_v22, %v5343_v23  ;;  %v5986_v33 = vor.u32 %v7654_v27, %v5985_v26 }
  0x40   :  { %2370 = vmatpush.bf16.msrb.mxu1 %v6322_v44  ;;  %2339 = vmatmul.bf16.vlgmr.msra.gmra.mxu2 %v8245_v53  ;;  %v5091_v31 = vld [vmem:[#allocation2 + $0xc4] sm:$0xf0]  ;;  %v7483_v34 = vld [vmem:[#allocation2 + $0x26c] sm:$0xf]  ;;  %v5957_v36 = vld [vmem:[#allocation2 + $0x770] sm:$0xf]  ;;  %v6210_v37 = vor.u32 %v7710_v29, %v6209_v28 }
  0x41   :  { %2390 = vmatpush.bf16.msrb.mxu2 %v6350_v49  ;;  %2352 = vmatmul.bf16.vlgmr.msra.gmra.mxu3 %v8262_v19  ;;  %v5315_v35 = vld [vmem:[#allocation2 + $0x284] sm:$0xf0]  ;;  %v5094_v38 = vor.u32 %v7427_v30, %v5091_v31  ;;  %v7647_v39 = vld [vmem:[#allocation2 + $0x788] sm:$0xf0]  ;;  %v6181_v40 = vld [vmem:[#allocation2 + $0x930] sm:$0xf] }
  0x42   :  { %2396 = vmatpush.bf16.msrb.mxu3 %v5206_v45  ;;  %v121_v41 = vld [vmem:[%s8490_s0 + $0x30] sm:$0xff]  ;;  %v7703_v42 = vld [vmem:[#allocation2 + $0x948] sm:$0xf0]  ;;  %v5318_v46 = vor.u32 %v7483_v34, %v5315_v35  ;;  %v5958_v47 = vor.u32 %v7647_v39, %v5957_v36  ;;  %v5929_v52 = vld [vmem:[#allocation2 + $0x738] sm:$0xf] }
  0x43   :  { %2358 = vmatpush.bf16.msrb.mxu0 %v6070_v55  ;;  %v7420_v43 = vld [vmem:[#allocation2 + $0x74] sm:$0xf]  ;;  %v5063_v44 = vld [vmem:[#allocation2 + $0x8c] sm:$0xf0]  ;;  %v8269_v45 = vpack.c.bf16 %v121_v41, %v121_v41  ;;  %v6182_v50 = vor.u32 %v7703_v42, %v6181_v40  ;;  %v6153_v55 = vld [vmem:[#allocation2 + $0x8f8] sm:$0xf] }
  0x44   :  { %2371 = vmatpush.bf16.msrb.mxu1 %v6294_v59  ;;  %v7476_v48 = vld [vmem:[#allocation2 + $0x234] sm:$0xf]  ;;  %v5287_v49 = vld [vmem:[#allocation2 + $0x24c] sm:$0xf0]  ;;  %v5066_v51 = vor.u32 %v7420_v43, %v5063_v44  ;;  %v7413_v57 = vld [vmem:[#allocation2 + $0x3c] sm:$0xf] }
  0x45   :  { %2409 = vmatpush.bf16.msra.mxu2 %v5430_v54  ;;  %v7640_v54 = vld [vmem:[#allocation2 + $0x750] sm:$0xf0]  ;;  %v5035_v58 = vld [vmem:[#allocation2 + $0x54] sm:$0xf0]  ;;  %v5290_v59 = vor.u32 %v7476_v48, %v5287_v49  ;;  %v7469_v61 = vld [vmem:[#allocation2 + $0x1fc] sm:$0xf] }
  0x46   :  { %2397 = vmatpush.bf16.msrb.mxu3 %v5178_v60  ;;  %v7696_v56 = vld [vmem:[#allocation2 + $0x910] sm:$0xf0]  ;;  %v5930_v60 = vor.u32 %v7640_v54, %v5929_v52  ;;  %v5259_v62 = vld [vmem:[#allocation2 + $0x214] sm:$0xf0]  ;;  %v5901_v63 = vld [vmem:[#allocation2 + $0x700] sm:$0xf]  ;;  %v5038_v1 = vor.u32 %v7413_v57, %v5035_v58 }
  0x47   :  { %2359 = vmatpush.bf16.msrb.mxu0 %v6042_v6  ;;  %v6154_v0 = vor.u32 %v7696_v56, %v6153_v55  ;;  %v7633_v2 = vld [vmem:[#allocation2 + $0x718] sm:$0xf0]  ;;  %v6125_v3 = vld [vmem:[#allocation2 + $0x8c0] sm:$0xf]  ;;  %v7406_v6 = vld [vmem:[#allocation2 + $0x4] sm:$0xf]  ;;  %v5262_v12 = vor.u32 %v7469_v61, %v5259_v62 }
  0x48   :  { %2372 = vmatpush.bf16.msrb.mxu1 %v6266_v10  ;;  %v5007_v7 = vld [vmem:[#allocation2 + $0x1c] sm:$0xf0]  ;;  %v7567_v8 = vld [vmem:[#allocation2 + $0x50c] sm:$0xf]  ;;  %v5651_v9 = vld [vmem:[#allocation2 + $0x524] sm:$0xf0]  ;;  %v5902_v13 = vor.u32 %v7633_v2, %v5901_v63 }
  0x49   :  { %2410 = vmatpush.bf16.msra.mxu2 %v5402_v5  ;;  %v7689_v5 = vld [vmem:[#allocation2 + $0x8d8] sm:$0xf0]  ;;  %v7623_v10 = vld [vmem:[#allocation2 + $0x6cc] sm:$0xf]  ;;  %v6099_v15 = vld [vmem:[#allocation2 + $0x8a4] sm:$0xf0] }
  0x4a   :  { %2398 = vmatpush.bf16.msrb.mxu3 %v5150_v11  ;;  %v5875_v11 = vld [vmem:[#allocation2 + $0x6e4] sm:$0xf0]  ;;  %v7679_v14 = vld [vmem:[#allocation2 + $0x88c] sm:$0xf]  ;;  %v119_v16 = vld [vmem:[%s8490_s0 + $0x20] sm:$0xff]  ;;  %v6126_v17 = vor.u32 %v7689_v5, %v6125_v3 }
  0x4b   :  { %2360 = vmatpush.bf16.msrb.mxu0 %v6014_v21  ;;  %v7462_v21 = vld [vmem:[#allocation2 + $0x1c4] sm:$0xf]  ;;  %v5231_v22 = vld [vmem:[#allocation2 + $0x1dc] sm:$0xf0]  ;;  %v120_v23 = vld [vmem:[%s8490_s0 + $0x28] sm:$0xff]  ;;  %v6102_v29 = vor.u32 %v7679_v14, %v6099_v15 }
  0x4c   :  { %2373 = vmatpush.bf16.msrb.mxu1 %v6238_v24  ;;  %v5654_v24 = vor.u32 %v7567_v8, %v5651_v9  ;;  %v7735_v26 = vld [vmem:[#allocation2 + $0xa4c] sm:$0xf]  ;;  %v6323_v27 = vld [vmem:[#allocation2 + $0xa64] sm:$0xf0]  ;;  %v7560_v28 = vld [vmem:[#allocation2 + $0x4d4] sm:$0xf]  ;;  %v5234_v34 = vor.u32 %v7462_v21, %v5231_v22 }
  0x4d   :  { %2411 = vmatpush.bf16.msra.mxu2 %v5374_v20  ;;  %v5010_v20 = vor.u32 %v7406_v6, %v5007_v7  ;;  %v5623_v30 = vld [vmem:[#allocation2 + $0x4ec] sm:$0xf0]  ;;  %v7616_v31 = vld [vmem:[#allocation2 + $0x694] sm:$0xf]  ;;  %v7553_v43 = vld [vmem:[#allocation2 + $0x49c] sm:$0xf] }
  0x4e   :  { %2399 = vmatpush.bf16.msrb.mxu3 %v5122_v25  ;;  %v5878_v25 = vor.u32 %v7623_v10, %v5875_v11  ;;  %v7672_v35 = vld [vmem:[#allocation2 + $0x854] sm:$0xf]  ;;  %v6071_v36 = vld [vmem:[#allocation2 + $0x86c] sm:$0xf0]  ;;  %v5626_v39 = vor.u32 %v7560_v28, %v5623_v30  ;;  %v5819_v48 = vld [vmem:[#allocation2 + $0x674] sm:$0xf0] }
  0x4f   :  { %2361 = vmatpush.bf16.msrb.mxu0 %v5986_v33  ;;  %v8279_v33 = vpack.c.bf16 %v119_v16, %v119_v16  ;;  %v7728_v41 = vld [vmem:[#allocation2 + $0xa14] sm:$0xf]  ;;  %v6295_v42 = vld [vmem:[#allocation2 + $0xa2c] sm:$0xf0]  ;;  %v6074_v44 = vor.u32 %v7672_v35, %v6071_v36  ;;  %v7665_v49 = vld [vmem:[#allocation2 + $0x81c] sm:$0xf] }
  0x50   :  { %2374 = vmatpush.bf16.msrb.mxu1 %v6210_v37  ;;  %6375 = vmatmul.msk.bf16.vlgmr.msrb.gmra.mxu2 %vm2301_vm0, %v8269_v45  ;;  %v8281_v37 = vpack.c.bf16 %v120_v23, %v120_v23  ;;  %v7721_v55 = vld [vmem:[#allocation2 + $0x9dc] sm:$0xf]  ;;  %v6267_v56 = vld [vmem:[#allocation2 + $0x9f4] sm:$0xf0]  ;;  %v7546_v57 = vld [vmem:[#allocation2 + $0x464] sm:$0xf] }
  0x51   :  { %2412 = vmatpush.bf16.msra.mxu2 %v5346_v32  ;;  %v5847_v32 = vld [vmem:[#allocation2 + $0x6ac] sm:$0xf0]  ;;  %v5791_v61 = vld [vmem:[#allocation2 + $0x63c] sm:$0xf0]  ;;  %v7658_v62 = vld [vmem:[#allocation2 + $0x7e4] sm:$0xf] }
  0x52   :  { %2400 = vmatpush.bf16.msrb.mxu3 %v5094_v38  ;;  %v6326_v38 = vor.u32 %v7735_v26, %v6323_v27  ;;  %v5850_v40 = vor.u32 %v7616_v31, %v5847_v32  ;;  %v6015_v63 = vld [vmem:[#allocation2 + $0x7fc] sm:$0xf0]  ;;  %v7714_v3 = vld [vmem:[#allocation2 + $0x9a4] sm:$0xf]  ;;  %v7539_v6 = vld [vmem:[#allocation2 + $0x42c] sm:$0xf] }
  0x53   :  { %2362 = vmatpush.bf16.msrb.mxu0 %v5958_v47  ;;  %v7609_v47 = vld [vmem:[#allocation2 + $0x65c] sm:$0xf]  ;;  %v6239_v5 = vld [vmem:[#allocation2 + $0x9bc] sm:$0xf0]  ;;  %v6018_v7 = vor.u32 %v7658_v62, %v6015_v63  ;;  %v5539_v8 = vld [vmem:[#allocation2 + $0x444] sm:$0xf0] }
  0x54   :  { %2375 = vmatpush.bf16.msrb.mxu1 %v6182_v50  ;;  %v6043_v50 = vld [vmem:[#allocation2 + $0x834] sm:$0xf0]  ;;  %v5822_v54 = vor.u32 %v7609_v47, %v5819_v48  ;;  %v7595_v9 = vld [vmem:[#allocation2 + $0x5ec] sm:$0xf]  ;;  %v5763_v10 = vld [vmem:[#allocation2 + $0x604] sm:$0xf0]  ;;  %v5542_v14 = vor.u32 %v7539_v6, %v5539_v8 }
  0x55   :  { %2413 = vmatpush.bf16.msra.mxu2 %v5318_v46  ;;  %v5595_v46 = vld [vmem:[#allocation2 + $0x4b4] sm:$0xf0]  ;;  %v6046_v58 = vor.u32 %v7665_v49, %v6043_v50  ;;  %v7651_v11 = vld [vmem:[#allocation2 + $0x7ac] sm:$0xf]  ;;  %v5766_v15 = vor.u32 %v7595_v9, %v5763_v10  ;;  %v5511_v22 = vld [vmem:[#allocation2 + $0x40c] sm:$0xf0] }
  0x56   :  { %2401 = vmatpush.bf16.msrb.mxu3 %v5066_v51  ;;  %v6298_v51 = vor.u32 %v7728_v41, %v6295_v42  ;;  %v5598_v52 = vor.u32 %v7553_v43, %v5595_v46  ;;  %v7707_v16 = vld [vmem:[#allocation2 + $0x96c] sm:$0xf]  ;;  %v7588_v23 = vld [vmem:[#allocation2 + $0x5b4] sm:$0xf]  ;;  %v5959_v26 = vld [vmem:[#allocation2 + $0x78c] sm:$0xf0] }
  0x57   :  { %2363 = vmatpush.bf16.msrb.mxu0 %v5930_v60  ;;  %v7602_v60 = vld [vmem:[#allocation2 + $0x624] sm:$0xf]  ;;  %v7700_v30 = vld [vmem:[#allocation2 + $0x934] sm:$0xf]  ;;  %v6183_v31 = vld [vmem:[#allocation2 + $0x94c] sm:$0xf0] }
  0x58   :  { %2376 = vmatpush.bf16.msrb.mxu1 %v6154_v0  ;;  %v6270_v0 = vor.u32 %v7721_v55, %v6267_v56  ;;  %v5794_v2 = vor.u32 %v7602_v60, %v5791_v61  ;;  %v7525_v32 = vld [vmem:[#allocation2 + $0x3bc] sm:$0xf]  ;;  %v5483_v35 = vld [vmem:[#allocation2 + $0x3d4] sm:$0xf0]  ;;  %v6186_v41 = vor.u32 %v7700_v30, %v6183_v31  ;;  %v7518_v47 = vld [vmem:[#allocation2 + $0x384] sm:$0xf] }
  0x59   :  { %2414 = vmatpush.bf16.msra.mxu2 %v5290_v59  ;;  %v5567_v59 = vld [vmem:[#allocation2 + $0x47c] sm:$0xf0]  ;;  %v7581_v36 = vld [vmem:[#allocation2 + $0x57c] sm:$0xf]  ;;  %v6155_v43 = vld [vmem:[#allocation2 + $0x914] sm:$0xf0] }
  0x5a   :  { %2402 = vmatpush.bf16.msrb.mxu3 %v5038_v1  ;;  %v5570_v1 = vor.u32 %v7546_v57, %v5567_v59  ;;  %v7693_v42 = vld [vmem:[#allocation2 + $0x8fc] sm:$0xf]  ;;  %v5455_v48 = vld [vmem:[#allocation2 + $0x39c] sm:$0xf0]  ;;  %v7574_v49 = vld [vmem:[#allocation2 + $0x544] sm:$0xf] }
  0x5b   :  { %2364 = vmatpush.bf16.msrb.mxu0 %v5902_v13  ;;  %v6242_v13 = vor.u32 %v7714_v3, %v6239_v5  ;;  %v5209_v55 = vld [vmem:[#allocation2 + $0x190] sm:$0xf]  ;;  %v7459_v56 = vld [vmem:[#allocation2 + $0x1a8] sm:$0xf0]  ;;  %v7742_v60 = vld [vmem:[#allocation2 + $0xa84] sm:$0xf]  ;;  %v5458_v62 = vor.u32 %v7518_v47, %v5455_v48 }
  0x5c   :  { %2377 = vmatpush.bf16.msrb.mxu1 %v6126_v17  ;;  %v6211_v17 = vld [vmem:[#allocation2 + $0x984] sm:$0xf0]  ;;  %v5433_v57 = vld [vmem:[#allocation2 + $0x350] sm:$0xf]  ;;  %v7515_v59 = vld [vmem:[#allocation2 + $0x368] sm:$0xf0]  ;;  %v5210_v5 = vor.u32 %v7459_v56, %v5209_v55 }
  0x5d   :  { %2415 = vmatpush.bf16.msra.mxu2 %v5262_v12  ;;  %v5987_v12 = vld [vmem:[#allocation2 + $0x7c4] sm:$0xf0]  ;;  %v6214_v27 = vor.u32 %v7707_v16, %v6211_v17  ;;  %v6351_v61 = vld [vmem:[#allocation2 + $0xa9c] sm:$0xf0]  ;;  %v7571_v6 = vld [vmem:[#allocation2 + $0x528] sm:$0xf0]  ;;  %v5434_v9 = vor.u32 %v7515_v59, %v5433_v57 }
  0x5e   :  { %2403 = vmatpush.bf16.msrb.mxu3 %v5010_v20  ;;  %2365 = vmatmul.bf16.vlgmr.msrb.gmra.mxu0 %v8279_v33  ;;  %v7532_v20 = vld [vmem:[#allocation2 + $0x3f4] sm:$0xf]  ;;  %v5990_v21 = vor.u32 %v7651_v11, %v5987_v12  ;;  %v7627_v8 = vld [vmem:[#allocation2 + $0x6e8] sm:$0xf0]  ;;  %v6354_v10 = vor.u32 %v7742_v60, %v6351_v61  ;;  %v5181_v11 = vld [vmem:[#allocation2 + $0x158] sm:$0xf] }
  0x5f   :  { %2422 = vmatpush.bf16.msra.mxu0 %v5654_v24  ;;  %2378 = vmatmul.bf16.vlgmr.msrb.gmra.mxu1 %v8281_v37  ;;  %v5735_v24 = vld [vmem:[#allocation2 + $0x5cc] sm:$0xf0]  ;;  %v5514_v28 = vor.u32 %v7532_v20, %v5511_v22  ;;  %v7452_v12 = vld [vmem:[#allocation2 + $0x170] sm:$0xf0]  ;;  %v5629_v20 = vld [vmem:[#allocation2 + $0x4d8] sm:$0xf] }
  0x60   :  { %2435 = vmatpush.bf16.msra.mxu1 %v5878_v25  ;;  %v7644_v25 = vld [vmem:[#allocation2 + $0x774] sm:$0xf]  ;;  %v5573_v47 = vld [vmem:[#allocation2 + $0x468] sm:$0xf]  ;;  %v7431_v55 = vld [vmem:[#allocation2 + $0xc8] sm:$0xf0] }
  0x61   :  { %2416 = vmatpush.bf16.msra.mxu2 %v5234_v34  ;;  %2404 = vmatmul.bf16.vlgmr.msrb.gmra.mxu3 %v8251_v4  ;;  %v5962_v34 = vor.u32 %v7644_v25, %v5959_v26  ;;  %v7564_v22 = vld [vmem:[#allocation2 + $0x4f0] sm:$0xf0]  ;;  %v5153_v26 = vld [vmem:[#allocation2 + $0x120] sm:$0xf]  ;;  %v5321_v56 = vld [vmem:[#allocation2 + $0x270] sm:$0xf] }
  0x62   :  { %2448 = vmatpush.bf16.msra.mxu3 %v6102_v29  ;;  %v5738_v29 = vor.u32 %v7588_v23, %v5735_v24  ;;  %v5853_v23 = vld [vmem:[#allocation2 + $0x698] sm:$0xf]  ;;  %v7620_v24 = vld [vmem:[#allocation2 + $0x6b0] sm:$0xf0]  ;;  %v5630_v30 = vor.u32 %v7564_v22, %v5629_v20  ;;  %v7487_v57 = vld [vmem:[#allocation2 + $0x288] sm:$0xf0] }
  0x63   :  { %2423 = vmatpush.bf16.msra.mxu0 %v5626_v39  ;;  %v7637_v39 = vld [vmem:[#allocation2 + $0x73c] sm:$0xf]  ;;  %v5854_v31 = vor.u32 %v7620_v24, %v5853_v23  ;;  %v5545_v60 = vld [vmem:[#allocation2 + $0x430] sm:$0xf]  ;;  %v5489_v23 = vld [vmem:[#allocation2 + $0x3c0] sm:$0xf] }
  0x64   :  { %2436 = vmatpush.bf16.msra.mxu1 %v5850_v40  ;;  %2417 = vmatmul.bf16.vlgmr.msra.gmra.mxu2 %v8260_v18  ;;  %v5931_v40 = vld [vmem:[#allocation2 + $0x754] sm:$0xf0]  ;;  %v7473_v20 = vld [vmem:[#allocation2 + $0x218] sm:$0xf0] }
  0x65   :  { %2461 = vmatpush.bf16.msrb.mxu2 %v6326_v38  ;;  %v5707_v38 = vld [vmem:[#allocation2 + $0x594] sm:$0xf0]  ;;  %v5934_v50 = vor.u32 %v7637_v39, %v5931_v40  ;;  %v5125_v40 = vld [vmem:[#allocation2 + $0xe8] sm:$0xf]  ;;  %v7529_v24 = vld [vmem:[#allocation2 + $0x3d8] sm:$0xf0] }
  0x66   :  { %2449 = vmatpush.bf16.msra.mxu3 %v6074_v44  ;;  %v5486_v44 = vor.u32 %v7525_v32, %v5483_v35  ;;  %v5710_v46 = vor.u32 %v7581_v36, %v5707_v38  ;;  %v5601_v32 = vld [vmem:[#allocation2 + $0x4a0] sm:$0xf]  ;;  %v7557_v35 = vld [vmem:[#allocation2 + $0x4b8] sm:$0xf0] }
  0x67   :  { %2424 = vmatpush.bf16.msra.mxu0 %v5598_v52  ;;  %v7630_v52 = vld [vmem:[#allocation2 + $0x704] sm:$0xf]  ;;  %v5825_v36 = vld [vmem:[#allocation2 + $0x660] sm:$0xf]  ;;  %v7613_v38 = vld [vmem:[#allocation2 + $0x678] sm:$0xf0] }
  0x68   :  { %2437 = vmatpush.bf16.msra.mxu1 %v5822_v54  ;;  %v5903_v54 = vld [vmem:[#allocation2 + $0x71c] sm:$0xf0] }
  0x69   :  { %2462 = vmatpush.bf16.msrb.mxu2 %v6298_v51  ;;  %v5679_v51 = vld [vmem:[#allocation2 + $0x55c] sm:$0xf0]  ;;  %v5906_v3 = vor.u32 %v7630_v52, %v5903_v54  ;;  %v5097_v54 = vld [vmem:[#allocation2 + $0xb0] sm:$0xf] }
  0x6a   :  { %2450 = vmatpush.bf16.msra.mxu3 %v6046_v58  ;;  %v6158_v58 = vor.u32 %v7693_v42, %v6155_v43  ;;  %v5682_v63 = vor.u32 %v7574_v49, %v5679_v51  ;;  %v5349_v42 = vld [vmem:[#allocation2 + $0x2a8] sm:$0xf]  ;;  %v7494_v43 = vld [vmem:[#allocation2 + $0x2c0] sm:$0xf0]  ;;  %v5098_v61 = vor.u32 %v7431_v55, %v5097_v54  ;;  %v6077_v55 = vld [vmem:[#allocation2 + $0x858] sm:$0xf] }
  0x6b   :  { %2425 = vmatpush.bf16.msra.mxu0 %v5570_v1  ;;  %v6127_v1 = vld [vmem:[#allocation2 + $0x8dc] sm:$0xf0]  ;;  %v7550_v49 = vld [vmem:[#allocation2 + $0x480] sm:$0xf0]  ;;  %v5350_v52 = vor.u32 %v7494_v43, %v5349_v42 }
  0x6c   :  { %2438 = vmatpush.bf16.msra.mxu1 %v5794_v2  ;;  %v5657_v2 = vld [vmem:[#allocation2 + $0x510] sm:$0xf]  ;;  %v7606_v51 = vld [vmem:[#allocation2 + $0x640] sm:$0xf0] }
  0x6d   :  { %2463 = vmatpush.bf16.msrb.mxu2 %v6270_v0  ;;  %v7686_v0 = vld [vmem:[#allocation2 + $0x8c4] sm:$0xf]  ;;  %v5658_v16 = vor.u32 %v7571_v6, %v5657_v2  ;;  %v5069_v2 = vld [vmem:[#allocation2 + $0x78] sm:$0xf]  ;;  %v7480_v6 = vld [vmem:[#allocation2 + $0x250] sm:$0xf0] }
  0x6e   :  { %2451 = vmatpush.bf16.msra.mxu3 %v6018_v7  ;;  %v5881_v7 = vld [vmem:[#allocation2 + $0x6d0] sm:$0xf]  ;;  %v7522_v42 = vld [vmem:[#allocation2 + $0x3a0] sm:$0xf0] }
  0x6f   :  { %2426 = vmatpush.bf16.msra.mxu0 %v5542_v14  ;;  %v5405_v14 = vld [vmem:[#allocation2 + $0x318] sm:$0xf]  ;;  %v5882_v17 = vor.u32 %v7627_v8, %v5881_v7 }
  0x70   :  { %2439 = vmatpush.bf16.msra.mxu1 %v5766_v15  ;;  %v7508_v15 = vld [vmem:[#allocation2 + $0x330] sm:$0xf0] }
  0x71   :  { %2464 = vmatpush.bf16.msrb.mxu2 %v6242_v13  ;;  %v6130_v13 = vor.u32 %v7686_v0, %v6127_v1  ;;  %v5406_v25 = vor.u32 %v7508_v15, %v5405_v14  ;;  %v7599_v0 = vld [vmem:[#allocation2 + $0x608] sm:$0xf0]  ;;  %v5322_v1 = vor.u32 %v7487_v57, %v5321_v56  ;;  %v5041_v15 = vld [vmem:[#allocation2 + $0x40] sm:$0xf]  ;;  %v7676_v56 = vld [vmem:[#allocation2 + $0x870] sm:$0xf0] }
  0x72   :  { %2452 = vmatpush.bf16.msra.mxu3 %v5990_v21  ;;  %v5182_v21 = vor.u32 %v7452_v12, %v5181_v11  ;;  %v7536_v11 = vld [vmem:[#allocation2 + $0x410] sm:$0xf0]  ;;  %v5741_v12 = vld [vmem:[#allocation2 + $0x5b8] sm:$0xf] }
  0x73   :  { %2427 = vmatpush.bf16.msra.mxu0 %v5514_v28  ;;  %v5377_v28 = vld [vmem:[#allocation2 + $0x2e0] sm:$0xf] }
  0x74   :  { %2440 = vmatpush.bf16.msra.mxu1 %v5738_v29  ;;  %v7501_v29 = vld [vmem:[#allocation2 + $0x2f8] sm:$0xf0] }
  0x75   :  { %2465 = vmatpush.bf16.msrb.mxu2 %v6214_v27  ;;  %v7445_v27 = vld [vmem:[#allocation2 + $0x138] sm:$0xf0]  ;;  %v5378_v39 = vor.u32 %v7501_v29, %v5377_v28  ;;  %v5013_v28 = vld [vmem:[#allocation2 + $0x8] sm:$0xf] }
  0x76   :  { %2453 = vmatpush.bf16.msra.mxu3 %v5962_v34  ;;  %v5154_v34 = vor.u32 %v7445_v27, %v5153_v26  ;;  %v5713_v26 = vld [vmem:[#allocation2 + $0x580] sm:$0xf]  ;;  %v7585_v27 = vld [vmem:[#allocation2 + $0x598] sm:$0xf0] }
  0x77   :  { %2428 = vmatpush.bf16.msra.mxu0 %v5486_v44  ;;  %v5602_v44 = vor.u32 %v7557_v35, %v5601_v32  ;;  %v7466_v32 = vld [vmem:[#allocation2 + $0x1e0] sm:$0xf0]  ;;  %v7683_v35 = vld [vmem:[#allocation2 + $0x8a8] sm:$0xf0] }
  0x78   :  { %2441 = vmatpush.bf16.msra.mxu1 %v5710_v46  ;;  %v5826_v46 = vor.u32 %v7613_v38, %v5825_v36  ;;  %v6329_v36 = vld [vmem:[#allocation2 + $0xa50] sm:$0xf]  ;;  %v5490_v38 = vor.u32 %v7529_v24, %v5489_v23  ;;  %v6245_v23 = vld [vmem:[#allocation2 + $0x9a8] sm:$0xf]  ;;  %v7718_v24 = vld [vmem:[#allocation2 + $0x9c0] sm:$0xf0] }
  0x79   :  { %2466 = vmatpush.bf16.msrb.mxu2 %v6186_v41  ;;  %v7438_v41 = vld [vmem:[#allocation2 + $0x100] sm:$0xf0] }
  0x7a   :  { %2454 = vmatpush.bf16.msra.mxu3 %v5934_v50  ;;  %v5126_v48 = vor.u32 %v7438_v41, %v5125_v40  ;;  %v5797_v50 = vld [vmem:[#allocation2 + $0x628] sm:$0xf]  ;;  %v7739_v40 = vld [vmem:[#allocation2 + $0xa68] sm:$0xf0] }
  0x7b   :  { %2429 = vmatpush.bf16.msra.mxu0 %v5458_v62  ;;  %v5798_v59 = vor.u32 %v7606_v51, %v5797_v50  ;;  %v7543_v62 = vld [vmem:[#allocation2 + $0x448] sm:$0xf0]  ;;  %v5461_v41 = vld [vmem:[#allocation2 + $0x388] sm:$0xf]  ;;  %v5211_v50 = vld [vmem:[#allocation2 + $0x1ac] sm:$0xf0]  ;;  %v6330_v54 = vor.u32 %v7739_v40, %v6329_v36 }
  0x7c   :  { %2442 = vmatpush.bf16.msra.mxu1 %v5682_v63  ;;  %v5769_v63 = vld [vmem:[#allocation2 + $0x5f0] sm:$0xf]  ;;  %v5546_v7 = vor.u32 %v7543_v62, %v5545_v60  ;;  %v6357_v51 = vld [vmem:[#allocation2 + $0xa88] sm:$0xf]  ;;  %v5462_v57 = vor.u32 %v7522_v42, %v5461_v41  ;;  %v7732_v60 = vld [vmem:[#allocation2 + $0xa30] sm:$0xf0] }
  0x7d   :  { %2467 = vmatpush.bf16.msrb.mxu2 %v6158_v58  ;;  %v5574_v58 = vor.u32 %v7550_v49, %v5573_v47  ;;  %v5770_v8 = vor.u32 %v7599_v0, %v5769_v63  ;;  %v7456_v47 = vld [vmem:[#allocation2 + $0x194] sm:$0xf]  ;;  %v5435_v0 = vld [vmem:[#allocation2 + $0x36c] sm:$0xf0]  ;;  %v7491_v40 = vld [vmem:[#allocation2 + $0x2ac] sm:$0xf] }
  0x7e   :  { %2455 = vmatpush.bf16.msra.mxu3 %v5906_v3  ;;  %2430 = vmatmul.bf16.vlgmr.msra.gmra.mxu0 %v8245_v53  ;;  %v7424_v3 = vld [vmem:[#allocation2 + $0x90] sm:$0xf0]  ;;  %v6217_v36 = vld [vmem:[#allocation2 + $0x970] sm:$0xf]  ;;  %v5351_v41 = vld [vmem:[#allocation2 + $0x2c4] sm:$0xf0] }
  0x7f   :  { %2481 = vmatpush.bf16.msrb.mxu0 %v6354_v10  ;;  %2443 = vmatmul.bf16.vlgmr.msra.gmra.mxu1 %v8262_v19  ;;  %v5070_v10 = vor.u32 %v7424_v3, %v5069_v2  ;;  %v7512_v63 = vld [vmem:[#allocation2 + $0x354] sm:$0xf]  ;;  %v7449_v2 = vld [vmem:[#allocation2 + $0x15c] sm:$0xf]  ;;  %v5183_v3 = vld [vmem:[#allocation2 + $0x174] sm:$0xf0] }
  0x80   :  { %2487 = vmatpush.bf16.msrb.mxu1 %v5210_v5  ;;  %v5293_v5 = vld [vmem:[#allocation2 + $0x238] sm:$0xf] }
  0x81   :  { %2468 = vmatpush.bf16.msrb.mxu2 %v6130_v13  ;;  %2456 = vmatmul.bf16.vlgmr.msra.gmra.mxu3 %v8279_v33  ;;  %v7592_v13 = vld [vmem:[#allocation2 + $0x5d0] sm:$0xf0]  ;;  %v5294_v14 = vor.u32 %v7480_v6, %v5293_v5  ;;  %v6049_v6 = vld [vmem:[#allocation2 + $0x820] sm:$0xf] }
  0x82   :  { %2500 = vmatpush.bf16.msrb.mxu3 %v5434_v9  ;;  %v5517_v9 = vld [vmem:[#allocation2 + $0x3f8] sm:$0xf]  ;;  %v5742_v22 = vor.u32 %v7592_v13, %v5741_v12  ;;  %v7505_v12 = vld [vmem:[#allocation2 + $0x31c] sm:$0xf] }
  0x83   :  { %2513 = vmatpush.bf16.msra.mxu0 %v5658_v16  ;;  %v7417_v16 = vld [vmem:[#allocation2 + $0x58] sm:$0xf0]  ;;  %v5407_v13 = vld [vmem:[#allocation2 + $0x334] sm:$0xf0] }
  0x84   :  { %2488 = vmatpush.bf16.msrb.mxu1 %v5182_v21  ;;  %2469 = vmatmul.bf16.vlgmr.msrb.gmra.mxu2 %v8281_v37  ;;  %v5518_v21 = vor.u32 %v7536_v11, %v5517_v9  ;;  %v6273_v9 = vld [vmem:[#allocation2 + $0x9e0] sm:$0xf]  ;;  %v5186_v11 = vor.u32 %v7449_v2, %v5183_v3  ;;  %v7477_v2 = vld [vmem:[#allocation2 + $0x23c] sm:$0xf]  ;;  %v5295_v3 = vld [vmem:[#allocation2 + $0x254] sm:$0xf0] }
  0x85   :  { %2526 = vmatpush.bf16.msra.mxu2 %v5882_v17  ;;  %v5265_v17 = vld [vmem:[#allocation2 + $0x200] sm:$0xf] }
  0x86   :  { %2501 = vmatpush.bf16.msrb.mxu3 %v5406_v25  ;;  %v5042_v25 = vor.u32 %v7417_v16, %v5041_v15  ;;  %v5266_v29 = vor.u32 %v7473_v20, %v5265_v17  ;;  %v7442_v15 = vld [vmem:[#allocation2 + $0x124] sm:$0xf]  ;;  %v5155_v16 = vld [vmem:[#allocation2 + $0x13c] sm:$0xf0]  ;;  %v6021_v20 = vld [vmem:[#allocation2 + $0x7e8] sm:$0xf] }
  0x87   :  { %2514 = vmatpush.bf16.msra.mxu0 %v5630_v30  ;;  %v7410_v30 = vld [vmem:[#allocation2 + $0x20] sm:$0xf0] }
  0x88   :  { %2489 = vmatpush.bf16.msrb.mxu1 %v5154_v34  ;;  %v6105_v34 = vld [vmem:[#allocation2 + $0x890] sm:$0xf]  ;;  %v5014_v43 = vor.u32 %v7410_v30, %v5013_v28  ;;  %v5127_v30 = vld [vmem:[#allocation2 + $0x104] sm:$0xf0] }
  0x89   :  { %2527 = vmatpush.bf16.msra.mxu2 %v5854_v31  ;;  %v5237_v31 = vld [vmem:[#allocation2 + $0x1c8] sm:$0xf]  ;;  %v6106_v49 = vor.u32 %v7683_v35, %v6105_v34  ;;  %v7655_v34 = vld [vmem:[#allocation2 + $0x7c8] sm:$0xf0] }
  0x8a   :  { %2502 = vmatpush.bf16.msrb.mxu3 %v5378_v39  ;;  %v5714_v39 = vor.u32 %v7585_v27, %v5713_v26  ;;  %v7498_v26 = vld [vmem:[#allocation2 + $0x2e4] sm:$0xf]  ;;  %v5379_v27 = vld [vmem:[#allocation2 + $0x2fc] sm:$0xf0] }
  0x8b   :  { %2515 = vmatpush.bf16.msra.mxu0 %v5602_v44  ;;  %v5685_v44 = vld [vmem:[#allocation2 + $0x548] sm:$0xf]  ;;  %v5382_v35 = vor.u32 %v7498_v26, %v5379_v27 }
  0x8c   :  { %2490 = vmatpush.bf16.msrb.mxu1 %v5126_v48  ;;  %v5238_v48 = vor.u32 %v7466_v32, %v5237_v31  ;;  %v6246_v31 = vor.u32 %v7718_v24, %v6245_v23  ;;  %v5993_v32 = vld [vmem:[#allocation2 + $0x7b0] sm:$0xf]  ;;  %v7407_v24 = vld [vmem:[#allocation2 + $0xc] sm:$0xf] }
  0x8d   :  { %2528 = vmatpush.bf16.msra.mxu2 %v5826_v46  ;;  %v7578_v46 = vld [vmem:[#allocation2 + $0x560] sm:$0xf0]  ;;  %v5994_v42 = vor.u32 %v7655_v34, %v5993_v32  ;;  %v7561_v32 = vld [vmem:[#allocation2 + $0x4dc] sm:$0xf]  ;;  %v5631_v34 = vld [vmem:[#allocation2 + $0x4f4] sm:$0xf0] }
  0x8e   :  { %2503 = vmatpush.bf16.msrb.mxu3 %v5350_v52  ;;  %6376 = vmatmul.msk.bf16.vlgmr.msrb.gmra.mxu0 %vm2301_vm0, %v8269_v45  ;;  %v7746_v52 = vld [vmem:[#allocation2 + $0xaa0] sm:$0xf0] }
  0x8f   :  { %2516 = vmatpush.bf16.msra.mxu0 %v5574_v58  ;;  %v5686_v58 = vor.u32 %v7578_v46, %v5685_v44  ;;  %v6358_v62 = vor.u32 %v7746_v52, %v6357_v51  ;;  %v5099_v44 = vld [vmem:[#allocation2 + $0xcc] sm:$0xf0]  ;;  %v7704_v51 = vld [vmem:[#allocation2 + $0x950] sm:$0xf0] }
  0x90   :  { %2491 = vmatpush.bf16.msrb.mxu1 %v5098_v61  ;;  %v5214_v61 = vor.u32 %v7456_v47, %v5211_v50  ;;  %v5965_v47 = vld [vmem:[#allocation2 + $0x778] sm:$0xf] }
  0x91   :  { %2529 = vmatpush.bf16.msra.mxu2 %v5798_v59  ;;  %v6301_v59 = vld [vmem:[#allocation2 + $0xa18] sm:$0xf] }
  0x92   :  { %2504 = vmatpush.bf16.msrb.mxu3 %v5322_v1  ;;  %v6078_v1 = vor.u32 %v7676_v56, %v6077_v55  ;;  %v6302_v5 = vor.u32 %v7732_v60, %v6301_v59  ;;  %v6189_v50 = vld [vmem:[#allocation2 + $0x938] sm:$0xf]  ;;  %v5323_v55 = vld [vmem:[#allocation2 + $0x28c] sm:$0xf0]  ;;  %v5937_v60 = vld [vmem:[#allocation2 + $0x740] sm:$0xf] }
  0x93   :  { %2517 = vmatpush.bf16.msra.mxu0 %v5546_v7  ;;  %v7669_v7 = vld [vmem:[#allocation2 + $0x838] sm:$0xf0]  ;;  %v6190_v59 = vor.u32 %v7704_v51, %v6189_v50  ;;  %v7554_v50 = vld [vmem:[#allocation2 + $0x4a4] sm:$0xf]  ;;  %v5603_v51 = vld [vmem:[#allocation2 + $0x4bc] sm:$0xf0] }
  0x94   :  { %2492 = vmatpush.bf16.msrb.mxu1 %v5070_v10  ;;  %v7725_v10 = vld [vmem:[#allocation2 + $0x9f8] sm:$0xf0] }
  0x95   :  { %2530 = vmatpush.bf16.msra.mxu2 %v5770_v8  ;;  %v5438_v8 = vor.u32 %v7512_v63, %v5435_v0  ;;  %v6274_v17 = vor.u32 %v7725_v10, %v6273_v9  ;;  %v6161_v63 = vld [vmem:[#allocation2 + $0x900] sm:$0xf]  ;;  %v7697_v0 = vld [vmem:[#allocation2 + $0x918] sm:$0xf0]  ;;  %v7634_v10 = vld [vmem:[#allocation2 + $0x720] sm:$0xf0] }
  0x96   :  { %2505 = vmatpush.bf16.msrb.mxu3 %v5294_v14  ;;  %v6050_v14 = vor.u32 %v7669_v7, %v6049_v6  ;;  %v7414_v6 = vld [vmem:[#allocation2 + $0x44] sm:$0xf]  ;;  %v5043_v7 = vld [vmem:[#allocation2 + $0x5c] sm:$0xf0]  ;;  %v6162_v9 = vor.u32 %v7697_v0, %v6161_v63  ;;  %v7547_v63 = vld [vmem:[#allocation2 + $0x46c] sm:$0xf] }
  0x97   :  { %2518 = vmatpush.bf16.msra.mxu0 %v5518_v21  ;;  %v7662_v21 = vld [vmem:[#allocation2 + $0x800] sm:$0xf0]  ;;  %v5575_v0 = vld [vmem:[#allocation2 + $0x484] sm:$0xf0] }
  0x98   :  { %2493 = vmatpush.bf16.msrb.mxu1 %v5042_v25  ;;  %v5158_v25 = vor.u32 %v7442_v15, %v5155_v16  ;;  %v6022_v28 = vor.u32 %v7662_v21, %v6021_v20  ;;  %v5659_v15 = vld [vmem:[#allocation2 + $0x52c] sm:$0xf0]  ;;  %v7624_v16 = vld [vmem:[#allocation2 + $0x6d4] sm:$0xf]  ;;  %v7470_v21 = vld [vmem:[#allocation2 + $0x204] sm:$0xf] }
  0x99   :  { %2531 = vmatpush.bf16.msra.mxu2 %v5742_v22  ;;  %v5410_v22 = vor.u32 %v7505_v12, %v5407_v13  ;;  %v7690_v12 = vld [vmem:[#allocation2 + $0x8e0] sm:$0xf0]  ;;  %v5298_v13 = vor.u32 %v7477_v2, %v5295_v3  ;;  %v5883_v20 = vld [vmem:[#allocation2 + $0x6ec] sm:$0xf0]  ;;  %v7603_v2 = vld [vmem:[#allocation2 + $0x62c] sm:$0xf] }
  0x9a   :  { %2506 = vmatpush.bf16.msrb.mxu3 %v5266_v29  ;;  %v7435_v29 = vld [vmem:[#allocation2 + $0xec] sm:$0xf]  ;;  %v5799_v3 = vld [vmem:[#allocation2 + $0x644] sm:$0xf0] }
  0x9b   :  { %2519 = vmatpush.bf16.msra.mxu0 %v5490_v38  ;;  %v7711_v38 = vld [vmem:[#allocation2 + $0x988] sm:$0xf0] }
  0x9c   :  { %2494 = vmatpush.bf16.msrb.mxu1 %v5014_v43  ;;  %v7428_v43 = vld [vmem:[#allocation2 + $0xb4] sm:$0xf]  ;;  %v6218_v46 = vor.u32 %v7711_v38, %v6217_v36  ;;  %v5855_v38 = vld [vmem:[#allocation2 + $0x6b4] sm:$0xf0] }
  0x9d   :  { %2532 = vmatpush.bf16.msra.mxu2 %v5714_v39  ;;  %v5130_v39 = vor.u32 %v7435_v29, %v5127_v30  ;;  %v5102_v52 = vor.u32 %v7428_v43, %v5099_v44  ;;  %v6107_v29 = vld [vmem:[#allocation2 + $0x8ac] sm:$0xf0]  ;;  %v5886_v30 = vor.u32 %v7624_v16, %v5883_v20  ;;  %v5634_v44 = vor.u32 %v7561_v32, %v5631_v34  ;;  %v7596_v16 = vld [vmem:[#allocation2 + $0x5f4] sm:$0xf]  ;;  %v5743_v32 = vld [vmem:[#allocation2 + $0x5d4] sm:$0xf0] }
  0x9e   :  { %2507 = vmatpush.bf16.msrb.mxu3 %v5238_v48  ;;  %v7648_v48 = vld [vmem:[#allocation2 + $0x790] sm:$0xf0]  ;;  %v6331_v43 = vld [vmem:[#allocation2 + $0xa6c] sm:$0xf0] }
  0x9f   :  { %2520 = vmatpush.bf16.msra.mxu0 %v5462_v57  ;;  %2495 = vmatmul.bf16.vlgmr.msrb.gmra.mxu1 %v8251_v4  ;;  %v5966_v56 = vor.u32 %v7648_v48, %v5965_v47  ;;  %v7421_v57 = vld [vmem:[#allocation2 + $0x7c] sm:$0xf]  ;;  %v6079_v47 = vld [vmem:[#allocation2 + $0x874] sm:$0xf0] }
  0xa0   :  { %2539 = vmatpush.bf16.msra.mxu1 %v6106_v49  ;;  %v5354_v49 = vor.u32 %v7491_v40, %v5351_v41  ;;  %v5239_v40 = vld [vmem:[#allocation2 + $0x1e4] sm:$0xf0] }
  0xa1   :  { %2533 = vmatpush.bf16.msra.mxu2 %v5686_v58  ;;  %2508 = vmatmul.bf16.vlgmr.msrb.gmra.mxu3 %v8260_v18  ;;  %v5071_v58 = vld [vmem:[#allocation2 + $0x94] sm:$0xf0] }
  0xa2   :  { %2552 = vmatpush.bf16.msra.mxu3 %v6330_v54  ;;  %2521 = vmatmul.bf16.vlgmr.msra.gmra.mxu0 %v8245_v53  ;;  %v7484_v54 = vld [vmem:[#allocation2 + $0x274] sm:$0xf] }
  0xa3   :  { %2572 = vmatpush.bf16.msrb.mxu0 %v6358_v62  ;;  %v5326_v62 = vor.u32 %v7484_v54, %v5323_v55  ;;  %v7610_v54 = vld [vmem:[#allocation2 + $0x664] sm:$0xf]  ;;  %v5827_v55 = vld [vmem:[#allocation2 + $0x67c] sm:$0xf0] }
  0xa4   :  { %2540 = vmatpush.bf16.msra.mxu1 %v6078_v1  ;;  %2534 = vmatmul.bf16.vlgmr.msra.gmra.mxu2 %v8262_v19  ;;  %v5074_v1 = vor.u32 %v7421_v57, %v5071_v58  ;;  %v7729_v57 = vld [vmem:[#allocation2 + $0xa1c] sm:$0xf]  ;;  %v6303_v58 = vld [vmem:[#allocation2 + $0xa34] sm:$0xf0] }
  0xa5   :  { %2578 = vmatpush.bf16.msrb.mxu2 %v5214_v61  ;;  %v7641_v61 = vld [vmem:[#allocation2 + $0x758] sm:$0xf0] }
  0xa6   :  { %2553 = vmatpush.bf16.msra.mxu3 %v6302_v5  ;;  %v5938_v5 = vor.u32 %v7641_v61, %v5937_v60  ;;  %v7666_v60 = vld [vmem:[#allocation2 + $0x824] sm:$0xf]  ;;  %v6051_v61 = vld [vmem:[#allocation2 + $0x83c] sm:$0xf0] }
  0xa7   :  { %2591 = vmatpush.bf16.msra.mxu0 %v5438_v8  ;;  %v5909_v8 = vld [vmem:[#allocation2 + $0x708] sm:$0xf] }
  0xa8   :  { %2541 = vmatpush.bf16.msra.mxu1 %v6050_v14  ;;  %v7568_v14 = vld [vmem:[#allocation2 + $0x514] sm:$0xf]  ;;  %v5910_v23 = vor.u32 %v7634_v10, %v5909_v8  ;;  %v5578_v8 = vor.u32 %v7547_v63, %v5575_v0  ;;  %v6023_v10 = vld [vmem:[#allocation2 + $0x804] sm:$0xf0]  ;;  %v7575_v63 = vld [vmem:[#allocation2 + $0x54c] sm:$0xf] }
  0xa9   :  { %2579 = vmatpush.bf16.msrb.mxu2 %v5186_v11  ;;  %v6133_v11 = vld [vmem:[#allocation2 + $0x8c8] sm:$0xf]  ;;  %v5662_v27 = vor.u32 %v7568_v14, %v5659_v15  ;;  %v5547_v14 = vld [vmem:[#allocation2 + $0x44c] sm:$0xf0] }
  0xaa   :  { %2554 = vmatpush.bf16.msra.mxu3 %v6274_v17  ;;  %v5046_v17 = vor.u32 %v7414_v6, %v5043_v7  ;;  %v6134_v26 = vor.u32 %v7690_v12, %v6133_v11  ;;  %v7722_v6 = vld [vmem:[#allocation2 + $0x9e4] sm:$0xf]  ;;  %v6275_v7 = vld [vmem:[#allocation2 + $0x9fc] sm:$0xf0]  ;;  %v8303_v11 = vld [vmem:[#allocation4] sm:$0xff]  ;;  %v5802_v12 = vor.u32 %v7603_v2, %v5799_v3 }
  0xab   :  { %2592 = vmatpush.bf16.msra.mxu0 %v5410_v22  ;;  %v5267_v22 = vld [vmem:[#allocation2 + $0x21c] sm:$0xf0]  ;;  %v6278_v15 = vor.u32 %v7722_v6, %v6275_v7  ;;  %v5687_v0 = vld [vmem:[#allocation2 + $0x564] sm:$0xf0]  ;;  %v5217_v3 = vld [vmem:[#allocation2 + $0x198] sm:$0xf] }
  0xac   :  { %2542 = vmatpush.bf16.msra.mxu1 %v6022_v28  ;;  %v7680_v28 = vld [vmem:[#allocation2 + $0x894] sm:$0xf]  ;;  %v6359_v6 = vld [vmem:[#allocation2 + $0xaa4] sm:$0xf0] }
  0xad   :  { %2580 = vmatpush.bf16.msrb.mxu2 %v5158_v25  ;;  %v5015_v25 = vld [vmem:[#allocation2 + $0x24] sm:$0xf0]  ;;  %v6110_v41 = vor.u32 %v7680_v28, %v6107_v29  ;;  %v7533_v28 = vld [vmem:[#allocation2 + $0x3fc] sm:$0xf]  ;;  %v5519_v29 = vld [vmem:[#allocation2 + $0x414] sm:$0xf0] }
  0xae   :  { %2555 = vmatpush.bf16.msra.mxu3 %v6246_v31  ;;  %v5270_v31 = vor.u32 %v7470_v21, %v5267_v22  ;;  %v5018_v36 = vor.u32 %v7407_v24, %v5015_v25  ;;  %v7715_v21 = vld [vmem:[#allocation2 + $0x9ac] sm:$0xf]  ;;  %v6247_v22 = vld [vmem:[#allocation2 + $0x9c4] sm:$0xf0]  ;;  %v7652_v25 = vld [vmem:[#allocation2 + $0x7b4] sm:$0xf] }
  0xaf   :  { %2593 = vmatpush.bf16.msra.mxu0 %v5382_v35  ;;  %v7617_v35 = vld [vmem:[#allocation2 + $0x69c] sm:$0xf] }
  0xb0   :  { %2543 = vmatpush.bf16.msra.mxu1 %v5994_v42  ;;  %v7736_v42 = vld [vmem:[#allocation2 + $0xa54] sm:$0xf]  ;;  %v5858_v48 = vor.u32 %v7617_v35, %v5855_v38  ;;  %v6219_v38 = vld [vmem:[#allocation2 + $0x98c] sm:$0xf0] }
  0xb1   :  { %2581 = vmatpush.bf16.msrb.mxu2 %v5130_v39  ;;  %v7463_v39 = vld [vmem:[#allocation2 + $0x1cc] sm:$0xf] }
  0xb2   :  { %2556 = vmatpush.bf16.msra.mxu3 %v6218_v46  ;;  %6377 = vmatmul.msk.bf16.vlgmr.msrb.gmra.mxu0 %vm2301_vm0, %v8269_v45  ;;  %v7673_v46 = vld [vmem:[#allocation2 + $0x85c] sm:$0xf] }
  0xb3   :  { %2594 = vmatpush.bf16.msra.mxu0 %v5354_v49  ;;  %v5242_v49 = vor.u32 %v7463_v39, %v5239_v40  ;;  %v5522_v40 = vor.u32 %v7533_v28, %v5519_v29  ;;  %v7572_v28 = vld [vmem:[#allocation2 + $0x530] sm:$0xf0] }
  0xb4   :  { %2544 = vmatpush.bf16.msra.mxu1 %v5966_v56  ;;  %v6082_v56 = vor.u32 %v7673_v46, %v6079_v47  ;;  %v5491_v46 = vld [vmem:[#allocation2 + $0x3dc] sm:$0xf0] }
  0xb5   :  { %2582 = vmatpush.bf16.msrb.mxu2 %v5102_v52  ;;  %v6334_v52 = vor.u32 %v7736_v42, %v6331_v43  ;;  %v5967_v42 = vld [vmem:[#allocation2 + $0x794] sm:$0xf0] }
  0xb6   :  { %2557 = vmatpush.bf16.msra.mxu3 %v6190_v59  ;;  %v5606_v59 = vor.u32 %v7554_v50, %v5603_v51  ;;  %v5715_v50 = vld [vmem:[#allocation2 + $0x59c] sm:$0xf0] }
  0xb7   :  { %2595 = vmatpush.bf16.msra.mxu0 %v5326_v62  ;;  %v5830_v62 = vor.u32 %v7610_v54, %v5827_v55  ;;  %v7701_v54 = vld [vmem:[#allocation2 + $0x93c] sm:$0xf]  ;;  %v6191_v55 = vld [vmem:[#allocation2 + $0x954] sm:$0xf0] }
  0xb8   :  { %2545 = vmatpush.bf16.msra.mxu1 %v5938_v5  ;;  %v6054_v5 = vor.u32 %v7666_v60, %v6051_v61  ;;  %v7519_v60 = vld [vmem:[#allocation2 + $0x38c] sm:$0xf]  ;;  %v6194_v2 = vor.u32 %v7701_v54, %v6191_v55 }
  0xb9   :  { %2583 = vmatpush.bf16.msrb.mxu2 %v5074_v1  ;;  %v6306_v1 = vor.u32 %v7729_v57, %v6303_v58  ;;  %v7638_v58 = vld [vmem:[#allocation2 + $0x744] sm:$0xf] }
  0xba   :  { %2558 = vmatpush.bf16.msra.mxu3 %v6162_v9  ;;  %v7659_v9 = vld [vmem:[#allocation2 + $0x7ec] sm:$0xf] }
  0xbb   :  { %2596 = vmatpush.bf16.msra.mxu0 %v5298_v13  ;;  %v7540_v13 = vld [vmem:[#allocation2 + $0x434] sm:$0xf]  ;;  %v6026_v20 = vor.u32 %v7659_v9, %v6023_v10  ;;  %v2314_v34 = vpop.f32.mrf.mxu0  ;;  %v7694_v10 = vld [vmem:[#allocation2 + $0x904] sm:$0xf] }
  0xbc   :  { %2546 = vmatpush.bf16.msra.mxu1 %v5910_v23  ;;  %v523_v23 = vperm.slane %v8303_v11, 0  ;;  %v5550_v24 = vor.u32 %v7540_v13, %v5547_v14  ;;  %v2327_v51 = vpop.f32.mrf.mxu1  ;;  %v7460_v9 = vld [vmem:[#allocation2 + $0x1b0] sm:$0xf0]  ;;  %v7631_v14 = vld [vmem:[#allocation2 + $0x70c] sm:$0xf] }
  0xbd   :  { %2584 = vmatpush.bf16.msrb.mxu2 %v5046_v17  ;;  %v5771_v17 = vld [vmem:[#allocation2 + $0x60c] sm:$0xf0] }
  0xbe   :  { %2559 = vmatpush.bf16.msra.mxu3 %v6134_v26  ;;  %v5995_v26 = vld [vmem:[#allocation2 + $0x7cc] sm:$0xf0]  ;;  %v2315_v39 = vadd.f32 %v2314_v34, %v523_v23 }
  0xbf   :  { %2597 = vmatpush.bf16.msra.mxu0 %v5270_v31  ;;  %2547 = vmatmul.bf16.vlgmr.msra.gmra.mxu1 %v8279_v33  ;;  %v7589_v31 = vld [vmem:[#allocation2 + $0x5bc] sm:$0xf]  ;;  %v5998_v35 = vor.u32 %v7652_v25, %v5995_v26  ;;  %v5218_v25 = vor.u32 %v7460_v9, %v5217_v3  ;;  %v5833_v3 = vld [vmem:[#allocation2 + $0x668] sm:$0xf] }
  0xc0   :  { %2604 = vmatpush.bf16.msrb.mxu1 %v5662_v27  ;;  %v5774_v27 = vor.u32 %v7596_v16, %v5771_v17  ;;  %v5746_v43 = vor.u32 %v7589_v31, %v5743_v32  ;;  %v5690_v17 = vor.u32 %v7575_v63, %v5687_v0  ;;  %v5189_v31 = vld [vmem:[#allocation2 + $0x160] sm:$0xf]  ;;  %v7453_v32 = vld [vmem:[#allocation2 + $0x178] sm:$0xf0]  ;;  %v5133_v63 = vld [vmem:[#allocation2 + $0xf0] sm:$0xf] }
  0xc1   :  { %2585 = vmatpush.bf16.msrb.mxu2 %v5018_v36  ;;  %2560 = vmatmul.bf16.vlgmr.msra.gmra.mxu3 %v8281_v37  ;;  %v7708_v36 = vld [vmem:[#allocation2 + $0x974] sm:$0xf]  ;;  %v7439_v0 = vld [vmem:[#allocation2 + $0x108] sm:$0xf0] }
  0xc2   :  { %2617 = vmatpush.bf16.msrb.mxu3 %v5886_v30  ;;  %v6250_v30 = vor.u32 %v7715_v21, %v6247_v22  ;;  %v5441_v21 = vld [vmem:[#allocation2 + $0x358] sm:$0xf]  ;;  %v7516_v22 = vld [vmem:[#allocation2 + $0x370] sm:$0xf0]  ;;  %v5134_v9 = vor.u32 %v7439_v0, %v5133_v63 }
  0xc3   :  { %2598 = vmatpush.bf16.msra.mxu0 %v5242_v49  ;;  %v2340_v47 = vpop.f32.mrf.mxu2  ;;  %v7582_v49 = vld [vmem:[#allocation2 + $0x584] sm:$0xf]  ;;  %v2316_v7 = vpop.f32.mrf.mxu0  ;;  %v5442_v34 = vor.u32 %v7516_v22, %v5441_v21  ;;  %v5805_v22 = vld [vmem:[#allocation2 + $0x630] sm:$0xf] }
  0xc4   :  { %2605 = vmatpush.bf16.msrb.mxu1 %v5634_v44  ;;  %2586 = vmatmul.bf16.vlgmr.msrb.gmra.mxu2 %v8251_v4  ;;  %v7526_v44 = vld [vmem:[#allocation2 + $0x3c4] sm:$0xf]  ;;  %v5718_v61 = vor.u32 %v7582_v49, %v5715_v50  ;;  %v2353_v16 = vpop.f32.mrf.mxu3  ;;  %v2329_v29 = vpop.f32.mrf.mxu1  ;;  %v5357_v7 = vld [vmem:[#allocation2 + $0x2b0] sm:$0xf] }
  0xc5   :  { %2630 = vmatpush.bf16.msra.mxu2 %v6110_v41  ;;  %v7645_v41 = vld [vmem:[#allocation2 + $0x77c] sm:$0xf]  ;;  %v5494_v57 = vor.u32 %v7526_v44, %v5491_v46  ;;  %v5637_v44 = vld [vmem:[#allocation2 + $0x4e0] sm:$0xf]  ;;  %v7446_v49 = vld [vmem:[#allocation2 + $0x140] sm:$0xf0] }
  0xc6   :  { %2618 = vmatpush.bf16.msrb.mxu3 %v5858_v48  ;;  %2599 = vmatmul.bf16.vlgmr.msra.gmra.mxu0 %v8260_v18  ;;  %v6222_v48 = vor.u32 %v7708_v36, %v6219_v38  ;;  %v6135_v36 = vld [vmem:[#allocation2 + $0x8e4] sm:$0xf0]  ;;  %v5889_v38 = vld [vmem:[#allocation2 + $0x6d8] sm:$0xf]  ;;  %v7565_v46 = vld [vmem:[#allocation2 + $0x4f8] sm:$0xf0] }
  0xc7   :  { %2643 = vmatpush.bf16.msrb.mxu0 %v6334_v52  ;;  %v5970_v52 = vor.u32 %v7645_v41, %v5967_v42  ;;  %v5413_v41 = vld [vmem:[#allocation2 + $0x320] sm:$0xf]  ;;  %v7509_v42 = vld [vmem:[#allocation2 + $0x338] sm:$0xf0]  ;;  %v5638_v55 = vor.u32 %v7565_v46, %v5637_v44 }
  0xc8   :  { %2606 = vmatpush.bf16.msrb.mxu1 %v5606_v59  ;;  %v5939_v59 = vld [vmem:[#allocation2 + $0x75c] sm:$0xf0]  ;;  %v7481_v44 = vld [vmem:[#allocation2 + $0x258] sm:$0xf0] }
  0xc9   :  { %2631 = vmatpush.bf16.msra.mxu2 %v6082_v56  ;;  %v2328_v56 = vadd.f32 %v2327_v51, %v2315_v39  ;;  %v5414_v51 = vor.u32 %v7509_v42, %v5413_v41  ;;  %v7600_v42 = vld [vmem:[#allocation2 + $0x610] sm:$0xf0] }
  0xca   :  { %2619 = vmatpush.bf16.msrb.mxu3 %v5830_v62  ;;  %v5463_v62 = vld [vmem:[#allocation2 + $0x3a4] sm:$0xf0] }
  0xcb   :  { %2644 = vmatpush.bf16.msrb.mxu0 %v6306_v1  ;;  %v2341_v1 = vadd.f32 %v2340_v47, %v2328_v56  ;;  %v5466_v13 = vor.u32 %v7519_v60, %v5463_v62  ;;  %v7621_v56 = vld [vmem:[#allocation2 + $0x6b8] sm:$0xf0]  ;;  %v7558_v62 = vld [vmem:[#allocation2 + $0x4c0] sm:$0xf0] }
  0xcc   :  { %2607 = vmatpush.bf16.msrb.mxu1 %v5578_v8  ;;  %v5942_v8 = vor.u32 %v7638_v58, %v5939_v59  ;;  %v2355_v54 = vpop.f32.mrf.mxu3  ;;  %v7502_v58 = vld [vmem:[#allocation2 + $0x300] sm:$0xf0] }
  0xcd   :  { %2632 = vmatpush.bf16.msra.mxu2 %v6054_v5  ;;  %v7743_v5 = vld [vmem:[#allocation2 + $0xa8c] sm:$0xf]  ;;  %v8306_v23 = vadd.f32 %v2353_v16, %v2341_v1 }
  0xce   :  { %2620 = vmatpush.bf16.msrb.mxu3 %v5802_v12  ;;  %v6163_v12 = vld [vmem:[#allocation2 + $0x91c] sm:$0xf0] }
  0xcf   :  { %2645 = vmatpush.bf16.msrb.mxu0 %v6278_v15  ;;  %v5911_v15 = vld [vmem:[#allocation2 + $0x724] sm:$0xf0]  ;;  %v6166_v26 = vor.u32 %v7694_v10, %v6163_v12  ;;  %v5581_v10 = vld [vmem:[#allocation2 + $0x470] sm:$0xf]  ;;  %v7551_v12 = vld [vmem:[#allocation2 + $0x488] sm:$0xf0] }
  0xd0   :  { %2608 = vmatpush.bf16.msrb.mxu1 %v5550_v24  ;;  %v2342_v24 = vpop.f32.mrf.mxu2 }
  0xd1   :  { %2633 = vmatpush.bf16.msra.mxu2 %v6026_v20  ;;  %v6362_v20 = vor.u32 %v7743_v5, %v6359_v6  ;;  %v7614_v6 = vld [vmem:[#allocation2 + $0x680] sm:$0xf0]  ;;  %v5582_v24 = vor.u32 %v7551_v12, %v5581_v10  ;;  %v7684_v10 = vld [vmem:[#allocation2 + $0x8b0] sm:$0xf0]  ;;  %v5721_v12 = vld [vmem:[#allocation2 + $0x588] sm:$0xf] }
  0xd2   :  { %2621 = vmatpush.bf16.msrb.mxu3 %v5774_v27  ;;  %v5665_v27 = vld [vmem:[#allocation2 + $0x518] sm:$0xf]  ;;  %v5834_v16 = vor.u32 %v7614_v6, %v5833_v3  ;;  %v7411_v6 = vld [vmem:[#allocation2 + $0x28] sm:$0xf0] }
  0xd3   :  { %2646 = vmatpush.bf16.msrb.mxu0 %v6250_v30  ;;  %v5914_v30 = vor.u32 %v7631_v14, %v5911_v15  ;;  %v5666_v39 = vor.u32 %v7572_v28, %v5665_v27  ;;  %v5105_v14 = vld [vmem:[#allocation2 + $0xb8] sm:$0xf]  ;;  %v7432_v15 = vld [vmem:[#allocation2 + $0xd0] sm:$0xf0] }
  0xd4   :  { %2609 = vmatpush.bf16.msrb.mxu1 %v5522_v40  ;;  %v7628_v40 = vld [vmem:[#allocation2 + $0x6f0] sm:$0xf0]  ;;  %v5106_v29 = vor.u32 %v7432_v15, %v5105_v14  ;;  %v5245_v15 = vld [vmem:[#allocation2 + $0x1d0] sm:$0xf] }
  0xd5   :  { %2634 = vmatpush.bf16.msra.mxu2 %v5998_v35  ;;  %v7687_v35 = vld [vmem:[#allocation2 + $0x8cc] sm:$0xf]  ;;  %v5890_v50 = vor.u32 %v7628_v40, %v5889_v38  ;;  %v7488_v27 = vld [vmem:[#allocation2 + $0x290] sm:$0xf0]  ;;  %v524_v40 = vperm.slane %v8303_v11, 1 }
  0xd6   :  { %2622 = vmatpush.bf16.msrb.mxu3 %v5746_v43  ;;  %v5190_v43 = vor.u32 %v7453_v32, %v5189_v31  ;;  %v6138_v47 = vor.u32 %v7687_v35, %v6135_v36  ;;  %v5553_v31 = vld [vmem:[#allocation2 + $0x438] sm:$0xf]  ;;  %v7544_v32 = vld [vmem:[#allocation2 + $0x450] sm:$0xf0]  ;;  %v7425_v35 = vld [vmem:[#allocation2 + $0x98] sm:$0xf0] }
  0xd7   :  { %2647 = vmatpush.bf16.msrb.mxu0 %v6222_v48  ;;  %v5161_v48 = vld [vmem:[#allocation2 + $0x128] sm:$0xf]  ;;  %v5554_v41 = vor.u32 %v7544_v32, %v5553_v31  ;;  %v6085_v31 = vld [vmem:[#allocation2 + $0x860] sm:$0xf]  ;;  %v7677_v32 = vld [vmem:[#allocation2 + $0x878] sm:$0xf0] }
  0xd8   :  { %2610 = vmatpush.bf16.msrb.mxu1 %v5494_v57  ;;  %v5385_v57 = vld [vmem:[#allocation2 + $0x2e8] sm:$0xf]  ;;  %v2392_v59 = vpop.f32.mrf.mxu2  ;;  %v5162_v60 = vor.u32 %v7446_v49, %v5161_v48  ;;  %v7537_v48 = vld [vmem:[#allocation2 + $0x418] sm:$0xf0] }
  0xd9   :  { %2635 = vmatpush.bf16.msra.mxu2 %v5970_v52  ;;  %v5861_v52 = vld [vmem:[#allocation2 + $0x6a0] sm:$0xf]  ;;  %v5049_v49 = vld [vmem:[#allocation2 + $0x48] sm:$0xf] }
  0xda   :  { %2623 = vmatpush.bf16.msrb.mxu3 %v5718_v61  ;;  %v5609_v61 = vld [vmem:[#allocation2 + $0x4a8] sm:$0xf]  ;;  %v5862_v1 = vor.u32 %v7621_v56, %v5861_v52  ;;  %v5749_v56 = vld [vmem:[#allocation2 + $0x5c0] sm:$0xf] }
  0xdb   :  { %2648 = vmatpush.bf16.msrb.mxu0 %v6194_v2  ;;  %v5386_v2 = vor.u32 %v7502_v58, %v5385_v57  ;;  %v5610_v5 = vor.u32 %v7558_v62, %v5609_v61  ;;  %v5273_v61 = vld [vmem:[#allocation2 + $0x208] sm:$0xf]  ;;  %v7474_v62 = vld [vmem:[#allocation2 + $0x220] sm:$0xf0] }
  0xdc   :  { %2611 = vmatpush.bf16.msrb.mxu1 %v5466_v13  ;;  %v2366_v13 = vpop.f32.mrf.mxu0  ;;  %v2379_v21 = vpop.f32.mrf.mxu1 }
  0xdd   :  { %2636 = vmatpush.bf16.msra.mxu2 %v5942_v8  ;;  %v7495_v8 = vld [vmem:[#allocation2 + $0x2c8] sm:$0xf0] }
  0xde   :  { %2624 = vmatpush.bf16.msrb.mxu3 %v5690_v17  ;;  %v2367_v17 = vadd.f32 %v2366_v13, %v8306_v23  ;;  %v7586_v13 = vld [vmem:[#allocation2 + $0x5a0] sm:$0xf0] }
  0xdf   :  { %2649 = vmatpush.bf16.msrb.mxu0 %v6166_v26  ;;  %2612 = vmatmul.bf16.vlgmr.msrb.gmra.mxu1 %v8245_v53  ;;  %v5329_v26 = vld [vmem:[#allocation2 + $0x278] sm:$0xf] }
  0xe0   :  { %2663 = vmatpush.bf16.msra.mxu1 %v6362_v20  ;;  %v5358_v20 = vor.u32 %v7495_v8, %v5357_v7  ;;  %v2394_v28 = vpop.f32.mrf.mxu2  ;;  %v5330_v38 = vor.u32 %v7488_v27, %v5329_v26  ;;  %v6113_v7 = vld [vmem:[#allocation2 + $0x898] sm:$0xf]  ;;  %v6365_v26 = vld [vmem:[#allocation2 + $0xa90] sm:$0xf]  ;;  %v7747_v27 = vld [vmem:[#allocation2 + $0xaa8] sm:$0xf0] }
  0xe1   :  { %2637 = vmatpush.bf16.msra.mxu2 %v5914_v30  ;;  %2625 = vmatmul.bf16.vlgmr.msrb.gmra.mxu3 %v8262_v19  ;;  %v2380_v30 = vadd.f32 %v2379_v21, %v2367_v17  ;;  %v5469_v17 = vld [vmem:[#allocation2 + $0x390] sm:$0xf]  ;;  %v7523_v21 = vld [vmem:[#allocation2 + $0x3a8] sm:$0xf0] }
  0xe2   :  { %2669 = vmatpush.bf16.msra.mxu3 %v5218_v25  ;;  %v7607_v25 = vld [vmem:[#allocation2 + $0x648] sm:$0xf0] }
  0xe3   :  { %2650 = vmatpush.bf16.msrb.mxu0 %v6138_v47  ;;  %v5806_v36 = vor.u32 %v7607_v25, %v5805_v22  ;;  %v8313_v23 = vadd.f32 %v2392_v59, %v2380_v30  ;;  %v5525_v47 = vld [vmem:[#allocation2 + $0x400] sm:$0xf]  ;;  %v6337_v22 = vld [vmem:[#allocation2 + $0xa58] sm:$0xf]  ;;  %v6114_v25 = vor.u32 %v7684_v10, %v6113_v7  ;;  %v5163_v7 = vld [vmem:[#allocation2 + $0x144] sm:$0xf0] }
  0xe4   :  { %2682 = vmatpush.bf16.msrb.mxu1 %v5442_v34  ;;  %2638 = vmatmul.bf16.vlgmr.msra.gmra.mxu2 %v8279_v33  ;;  %v5077_v34 = vld [vmem:[#allocation2 + $0x80] sm:$0xf]  ;;  %v2405_v52 = vpop.f32.mrf.mxu3  ;;  %v2381_v58 = vpop.f32.mrf.mxu1  ;;  %v5526_v59 = vor.u32 %v7537_v48, %v5525_v47  ;;  %v7733_v48 = vld [vmem:[#allocation2 + $0xa38] sm:$0xf0] }
  0xe5   :  { %2695 = vmatpush.bf16.msrb.mxu2 %v5666_v39  ;;  %v5777_v39 = vld [vmem:[#allocation2 + $0x5f8] sm:$0xf]  ;;  %v5078_v46 = vor.u32 %v7425_v35, %v5077_v34  ;;  %v2406_v57 = vadd.f32 %v2405_v52, %v524_v40  ;;  %v5470_v34 = vor.u32 %v7523_v21, %v5469_v17  ;;  %v6309_v47 = vld [vmem:[#allocation2 + $0xa20] sm:$0xf]  ;;  %v7506_v58 = vld [vmem:[#allocation2 + $0x324] sm:$0xf] }
  0xe6   :  { %2670 = vmatpush.bf16.msra.mxu3 %v5190_v43  ;;  %2651 = vmatmul.bf16.vlgmr.msrb.gmra.mxu0 %v8281_v37  ;;  %v5301_v43 = vld [vmem:[#allocation2 + $0x240] sm:$0xf]  ;;  %v5778_v54 = vor.u32 %v7600_v42, %v5777_v39  ;;  %v7457_v39 = vld [vmem:[#allocation2 + $0x19c] sm:$0xf]  ;;  %v5219_v42 = vld [vmem:[#allocation2 + $0x1b4] sm:$0xf0] }
  0xe7   :  { %2708 = vmatpush.bf16.msra.mxu0 %v5890_v50  ;;  %v7418_v50 = vld [vmem:[#allocation2 + $0x60] sm:$0xf0]  ;;  %v5222_v52 = vor.u32 %v7457_v39, %v5219_v42  ;;  %v7436_v21 = vld [vmem:[#allocation2 + $0xf4] sm:$0xf]  ;;  %v5331_v42 = vld [vmem:[#allocation2 + $0x294] sm:$0xf0] }
  0xe8   :  { %2683 = vmatpush.bf16.msrb.mxu1 %v5414_v51  ;;  %v2368_v51 = vpop.f32.mrf.mxu0  ;;  %v2418_v63 = vpop.f32.mrf.mxu2  ;;  %v5050_v0 = vor.u32 %v7418_v50, %v5049_v49  ;;  %v6057_v50 = vld [vmem:[#allocation2 + $0x828] sm:$0xf] }
  0xe9   :  { %2696 = vmatpush.bf16.msrb.mxu2 %v5638_v55  ;;  %v5302_v55 = vor.u32 %v7481_v44, %v5301_v43  ;;  %v8318_v3 = vadd.f32 %v2418_v63, %v2406_v57  ;;  %v7513_v43 = vld [vmem:[#allocation2 + $0x35c] sm:$0xf]  ;;  %v5443_v44 = vld [vmem:[#allocation2 + $0x374] sm:$0xf0]  ;;  %v7670_v51 = vld [vmem:[#allocation2 + $0x840] sm:$0xf0] }
  0xea   :  { %2671 = vmatpush.bf16.msra.mxu3 %v5162_v60  ;;  %v7593_v60 = vld [vmem:[#allocation2 + $0x5d8] sm:$0xf0]  ;;  %v5191_v57 = vld [vmem:[#allocation2 + $0x17c] sm:$0xf0]  ;;  %v6029_v63 = vld [vmem:[#allocation2 + $0x7f0] sm:$0xf] }
  0xeb   :  { %2709 = vmatpush.bf16.msra.mxu0 %v5862_v1  ;;  %v5497_v1 = vld [vmem:[#allocation2 + $0x3c8] sm:$0xf]  ;;  %v5750_v8 = vor.u32 %v7593_v60, %v5749_v56  ;;  %v6310_v56 = vor.u32 %v7733_v48, %v6309_v47  ;;  %v6058_v60 = vor.u32 %v7670_v51, %v6057_v50  ;;  %v7642_v48 = vld [vmem:[#allocation2 + $0x760] sm:$0xf0] }
  0xec   :  { %2684 = vmatpush.bf16.msrb.mxu1 %v5386_v2  ;;  %v7530_v2 = vld [vmem:[#allocation2 + $0x3e0] sm:$0xf0]  ;;  %v2407_v28 = vpop.f32.mrf.mxu3  ;;  %v5945_v47 = vld [vmem:[#allocation2 + $0x748] sm:$0xf] }
  0xed   :  { %2697 = vmatpush.bf16.msrb.mxu2 %v5610_v5  ;;  %v5021_v5 = vld [vmem:[#allocation2 + $0x10] sm:$0xf]  ;;  %v5498_v14 = vor.u32 %v7530_v2, %v5497_v1 }
  0xee   :  { %2672 = vmatpush.bf16.msra.mxu3 %v5134_v9  ;;  %v5274_v9 = vor.u32 %v7474_v62, %v5273_v61  ;;  %v6281_v61 = vld [vmem:[#allocation2 + $0x9e8] sm:$0xf]  ;;  %v7726_v62 = vld [vmem:[#allocation2 + $0xa00] sm:$0xf0] }
  0xef   :  { %2710 = vmatpush.bf16.msra.mxu0 %v5834_v16  ;;  %6378 = vmatmul.msk.bf16.vlgmr.msra.gmra.mxu1 %vm2301_vm0, %v8269_v45  ;;  %v7467_v16 = vld [vmem:[#allocation2 + $0x1e8] sm:$0xf0] }
  0xf0   :  { %2685 = vmatpush.bf16.msrb.mxu1 %v5358_v20  ;;  %v5022_v20 = vor.u32 %v7411_v6, %v5021_v5  ;;  %v5246_v30 = vor.u32 %v7467_v16, %v5245_v15  ;;  %v2420_v40 = vpop.f32.mrf.mxu2  ;;  %v7443_v5 = vld [vmem:[#allocation2 + $0x12c] sm:$0xf]  ;;  %v6282_v6 = vor.u32 %v7726_v62, %v6281_v61  ;;  %v7656_v15 = vld [vmem:[#allocation2 + $0x7d0] sm:$0xf0]  ;;  %v5946_v61 = vor.u32 %v7642_v48, %v5945_v47  ;;  %v6169_v62 = vld [vmem:[#allocation2 + $0x908] sm:$0xf] }
  0xf1   :  { %2698 = vmatpush.bf16.msrb.mxu2 %v5582_v24  ;;  %v7740_v24 = vld [vmem:[#allocation2 + $0xa70] sm:$0xf0]  ;;  %v5166_v17 = vor.u32 %v7443_v5, %v5163_v7  ;;  %v5107_v40 = vld [vmem:[#allocation2 + $0xd4] sm:$0xf0]  ;;  %v7569_v7 = vld [vmem:[#allocation2 + $0x51c] sm:$0xf] }
  0xf2   :  { %2673 = vmatpush.bf16.msra.mxu3 %v5106_v29  ;;  %v5722_v29 = vor.u32 %v7586_v13, %v5721_v12  ;;  %v6338_v35 = vor.u32 %v7740_v24, %v6337_v22  ;;  %v6253_v12 = vld [vmem:[#allocation2 + $0x9b0] sm:$0xf]  ;;  %v7719_v13 = vld [vmem:[#allocation2 + $0x9c8] sm:$0xf0]  ;;  %v5863_v47 = vld [vmem:[#allocation2 + $0x6bc] sm:$0xf0] }
  0xf3   :  { %2711 = vmatpush.bf16.msra.mxu0 %v5806_v36  ;;  %v5693_v36 = vld [vmem:[#allocation2 + $0x550] sm:$0xf]  ;;  %v6254_v24 = vor.u32 %v7719_v13, %v6253_v12  ;;  %v5051_v13 = vld [vmem:[#allocation2 + $0x64] sm:$0xf0] }
  0xf4   :  { %2686 = vmatpush.bf16.msrb.mxu1 %v5330_v38  ;;  %v7579_v38 = vld [vmem:[#allocation2 + $0x568] sm:$0xf0] }
  0xf5   :  { %2699 = vmatpush.bf16.msrb.mxu2 %v5554_v41  ;;  %v6366_v41 = vor.u32 %v7747_v27, %v6365_v26  ;;  %v5694_v49 = vor.u32 %v7579_v38, %v5693_v36  ;;  %v7492_v26 = vld [vmem:[#allocation2 + $0x2b4] sm:$0xf]  ;;  %v5359_v27 = vld [vmem:[#allocation2 + $0x2cc] sm:$0xf0]  ;;  %v7429_v38 = vld [vmem:[#allocation2 + $0xbc] sm:$0xf] }
  0xf6   :  { %2674 = vmatpush.bf16.msra.mxu3 %v5078_v46  ;;  %v6086_v46 = vor.u32 %v7677_v32, %v6085_v31  ;;  %v5973_v31 = vld [vmem:[#allocation2 + $0x780] sm:$0xf]  ;;  %v7649_v32 = vld [vmem:[#allocation2 + $0x798] sm:$0xf0]  ;;  %v5110_v50 = vor.u32 %v7429_v38, %v5107_v40  ;;  %v5247_v38 = vld [vmem:[#allocation2 + $0x1ec] sm:$0xf0] }
  0xf7   :  { %2712 = vmatpush.bf16.msra.mxu0 %v5778_v54  ;;  %v5446_v54 = vor.u32 %v7513_v43, %v5443_v44  ;;  %v5974_v43 = vor.u32 %v7649_v32, %v5973_v31  ;;  %v6197_v44 = vld [vmem:[#allocation2 + $0x940] sm:$0xf]  ;;  %v5023_v31 = vld [vmem:[#allocation2 + $0x2c] sm:$0xf0] }
  0xf8   :  { %2687 = vmatpush.bf16.msrb.mxu1 %v5302_v55  ;;  %v7450_v55 = vld [vmem:[#allocation2 + $0x164] sm:$0xf] }
  0xf9   :  { %2700 = vmatpush.bf16.msrb.mxu2 %v5526_v59  ;;  %v5415_v59 = vld [vmem:[#allocation2 + $0x33c] sm:$0xf0]  ;;  %v5194_v1 = vor.u32 %v7450_v55, %v5191_v57 }
  0xfa   :  { %2675 = vmatpush.bf16.msra.mxu3 %v5050_v0  ;;  %v7663_v0 = vld [vmem:[#allocation2 + $0x808] sm:$0xf0]  ;;  %v5418_v2 = vor.u32 %v7506_v58, %v5415_v59  ;;  %v5079_v58 = vld [vmem:[#allocation2 + $0x9c] sm:$0xf0]  ;;  %v7478_v59 = vld [vmem:[#allocation2 + $0x244] sm:$0xf] }
  0xfb   :  { %2713 = vmatpush.bf16.msra.mxu0 %v5750_v8  ;;  %v7499_v8 = vld [vmem:[#allocation2 + $0x2ec] sm:$0xf]  ;;  %v6030_v10 = vor.u32 %v7663_v0, %v6029_v63  ;;  %v2431_v16 = vpop.f32.mrf.mxu0  ;;  %v7698_v63 = vld [vmem:[#allocation2 + $0x920] sm:$0xf0] }
  0xfc   :  { %2688 = vmatpush.bf16.msrb.mxu1 %v5274_v9  ;;  %v5387_v9 = vld [vmem:[#allocation2 + $0x304] sm:$0xf0]  ;;  %v2432_v22 = vadd.f32 %v2431_v16, %v8318_v3  ;;  %v2444_v36 = vpop.f32.mrf.mxu1  ;;  %v6170_v12 = vor.u32 %v7698_v63, %v6169_v62  ;;  %v7548_v63 = vld [vmem:[#allocation2 + $0x474] sm:$0xf] }
  0xfd   :  { %2701 = vmatpush.bf16.msrb.mxu2 %v5498_v14  ;;  %v6001_v14 = vld [vmem:[#allocation2 + $0x7b8] sm:$0xf]  ;;  %v5835_v62 = vld [vmem:[#allocation2 + $0x684] sm:$0xf0] }
  0xfe   :  { %2676 = vmatpush.bf16.msra.mxu3 %v5022_v20  ;;  %v5390_v20 = vor.u32 %v7499_v8, %v5387_v9  ;;  %v6002_v28 = vor.u32 %v7656_v15, %v6001_v14  ;;  %v2445_v3 = vadd.f32 %v2444_v36, %v2432_v22  ;;  %v5667_v8 = vld [vmem:[#allocation2 + $0x534] sm:$0xf0]  ;;  %v7415_v9 = vld [vmem:[#allocation2 + $0x4c] sm:$0xf]  ;;  %v5275_v15 = vld [vmem:[#allocation2 + $0x224] sm:$0xf0] }
  0xff   :  { %2714 = vmatpush.bf16.msra.mxu0 %v5722_v29  ;;  %v6225_v29 = vld [vmem:[#allocation2 + $0x978] sm:$0xf]  ;;  %v7471_v14 = vld [vmem:[#allocation2 + $0x20c] sm:$0xf]  ;;  %v7625_v22 = vld [vmem:[#allocation2 + $0x6dc] sm:$0xf] }
 0x100   :  { %2689 = vmatpush.bf16.msrb.mxu1 %v5246_v30  ;;  %v7712_v30 = vld [vmem:[#allocation2 + $0x990] sm:$0xf0] }
 0x101   :  { %2702 = vmatpush.bf16.msrb.mxu2 %v5470_v34  ;;  %2677 = vmatmul.bf16.vlgmr.msra.gmra.mxu3 %v8251_v4  ;;  %v6226_v39 = vor.u32 %v7712_v30, %v6225_v29  ;;  %v5639_v29 = vld [vmem:[#allocation2 + $0x4fc] sm:$0xf0]  ;;  %v7408_v30 = vld [vmem:[#allocation2 + $0x14] sm:$0xf] }
 0x102   :  { %2721 = vmatpush.bf16.msrb.mxu3 %v6114_v25  ;;  %v5135_v25 = vld [vmem:[#allocation2 + $0x10c] sm:$0xf0]  ;;  %v7464_v36 = vld [vmem:[#allocation2 + $0x1d4] sm:$0xf]  ;;  %v5026_v48 = vor.u32 %v7408_v30, %v5023_v31  ;;  %v5779_v30 = vld [vmem:[#allocation2 + $0x614] sm:$0xf0] }
 0x103   :  { %2690 = vmatmul.bf16.vlgmr.msrb.gmra.mxu1 %v8260_v18  ;;  %2715 = vmatpush.bf16.msra.mxu0 %v5694_v49  ;;  %v5138_v34 = vor.u32 %v7436_v21, %v5135_v25  ;;  %v2433_v49 = vpop.f32.mrf.mxu0  ;;  %v5670_v21 = vor.u32 %v7569_v7, %v5667_v8  ;;  %v7562_v25 = vld [vmem:[#allocation2 + $0x4e4] sm:$0xf]  ;;  %v6059_v8 = vld [vmem:[#allocation2 + $0x844] sm:$0xf0] }
 0x104   :  { %2734 = vmatpush.bf16.msra.mxu1 %v6338_v35  ;;  %2703 = vmatmul.bf16.vlgmr.msrb.gmra.mxu2 %v8245_v53  ;;  %v5362_v35 = vor.u32 %v7492_v26, %v5359_v27  ;;  %v5054_v27 = vor.u32 %v7415_v9, %v5051_v13  ;;  %v5250_v49 = vor.u32 %v7464_v36, %v5247_v38  ;;  %v7723_v9 = vld [vmem:[#allocation2 + $0x9ec] sm:$0xf]  ;;  %v7604_v13 = vld [vmem:[#allocation2 + $0x634] sm:$0xf]  ;;  %v7534_v31 = vld [vmem:[#allocation2 + $0x404] sm:$0xf] }
 0x105   :  { %2754 = vmatpush.bf16.msra.mxu2 %v6366_v41  ;;  %v7485_v41 = vld [vmem:[#allocation2 + $0x27c] sm:$0xf] }
 0x106   :  { %2722 = vmatpush.bf16.msrb.mxu3 %v6086_v46  ;;  %2716 = vmatmul.bf16.vlgmr.msra.gmra.mxu0 %v8262_v19  ;;  %v7705_v46 = vld [vmem:[#allocation2 + $0x958] sm:$0xf0]  ;;  %v5334_v51 = vor.u32 %v7485_v41, %v5331_v42  ;;  %v6115_v41 = vld [vmem:[#allocation2 + $0x8b4] sm:$0xf0] }
 0x107   :  { %2760 = vmatpush.bf16.msrb.mxu0 %v5222_v52  ;;  %v2457_v52 = vpop.f32.mrf.mxu3  ;;  %v2470_v57 = vpop.f32.mrf.mxu2  ;;  %v7737_v42 = vld [vmem:[#allocation2 + $0xa5c] sm:$0xf] }
 0x108   :  { %2735 = vmatpush.bf16.msra.mxu1 %v6310_v56  ;;  %v2458_v55 = vadd.f32 %v2457_v52, %v2445_v3  ;;  %v6198_v56 = vor.u32 %v7705_v46, %v6197_v44  ;;  %v5642_v44 = vor.u32 %v7562_v25, %v5639_v29  ;;  %v7618_v46 = vld [vmem:[#allocation2 + $0x6a4] sm:$0xf]  ;;  %v7716_v25 = vld [vmem:[#allocation2 + $0x9b4] sm:$0xf]  ;;  %v7597_v29 = vld [vmem:[#allocation2 + $0x5fc] sm:$0xf] }
 0x109   :  { %2773 = vmatpush.bf16.msrb.mxu2 %v5446_v54  ;;  %v7422_v54 = vld [vmem:[#allocation2 + $0x84] sm:$0xf] }
 0x10a   :  { %2723 = vmatpush.bf16.msrb.mxu3 %v6058_v60  ;;  %v5303_v60 = vld [vmem:[#allocation2 + $0x25c] sm:$0xf0]  ;;  %v2471_v0 = vadd.f32 %v2470_v57, %v2458_v55  ;;  %v5082_v5 = vor.u32 %v7422_v54, %v5079_v58  ;;  %v7674_v55 = vld [vmem:[#allocation2 + $0x864] sm:$0xf] }
 0x10b   :  { %2761 = vmatpush.bf16.msrb.mxu0 %v5194_v1  ;;  %v5917_v1 = vld [vmem:[#allocation2 + $0x710] sm:$0xf]  ;;  %v2483_v26 = vpop.f32.mrf.mxu0  ;;  %v6087_v57 = vld [vmem:[#allocation2 + $0x87c] sm:$0xf0]  ;;  %v7730_v58 = vld [vmem:[#allocation2 + $0xa24] sm:$0xf] }
 0x10c   :  { %2736 = vmatpush.bf16.msra.mxu1 %v6282_v6  ;;  %v5306_v6 = vor.u32 %v7478_v59, %v5303_v60  ;;  %v6311_v59 = vld [vmem:[#allocation2 + $0xa3c] sm:$0xf0] }
 0x10d   :  { %2774 = vmatpush.bf16.msrb.mxu2 %v5418_v2  ;;  %v7635_v2 = vld [vmem:[#allocation2 + $0x728] sm:$0xf0] }
 0x10e   :  { %2724 = vmatpush.bf16.msrb.mxu3 %v6030_v10  ;;  %v2446_v10 = vpop.f32.mrf.mxu1  ;;  %v5918_v16 = vor.u32 %v7635_v2, %v5917_v1  ;;  %v6090_v2 = vor.u32 %v7674_v55, %v6087_v57  ;;  %v7702_v57 = vld [vmem:[#allocation2 + $0x944] sm:$0xf] }
 0x10f   :  { %2762 = vmatpush.bf16.msrb.mxu0 %v5166_v17  ;;  %v6141_v17 = vld [vmem:[#allocation2 + $0x8d0] sm:$0xf]  ;;  %v2459_v32 = vpop.f32.mrf.mxu3  ;;  %v2472_v3 = vpop.f32.mrf.mxu2  ;;  %v6283_v10 = vld [vmem:[#allocation2 + $0xa04] sm:$0xf0] }
 0x110   :  { %2737 = vmatpush.bf16.msra.mxu1 %v6254_v24  ;;  %v5891_v24 = vld [vmem:[#allocation2 + $0x6f4] sm:$0xf0]  ;;  %v5527_v32 = vld [vmem:[#allocation2 + $0x41c] sm:$0xf0] }
 0x111   :  { %2775 = vmatpush.bf16.msrb.mxu2 %v5390_v20  ;;  %v7691_v20 = vld [vmem:[#allocation2 + $0x8e8] sm:$0xf0]  ;;  %v5894_v40 = vor.u32 %v7625_v22, %v5891_v24  ;;  %v6031_v22 = vld [vmem:[#allocation2 + $0x80c] sm:$0xf0] }
 0x112   :  { %2725 = vmatpush.bf16.msrb.mxu3 %v6002_v28  ;;  %v5278_v28 = vor.u32 %v7471_v14, %v5275_v15  ;;  %v5807_v14 = vld [vmem:[#allocation2 + $0x64c] sm:$0xf0]  ;;  %v7541_v15 = vld [vmem:[#allocation2 + $0x43c] sm:$0xf] }
 0x113   :  { %2763 = vmatpush.bf16.msrb.mxu0 %v5138_v34  ;;  %v8327_v34 = vadd.f32 %v2483_v26, %v2471_v0  ;;  %v5583_v0 = vld [vmem:[#allocation2 + $0x48c] sm:$0xf0]  ;;  %v2485_v1 = vpop.f32.mrf.mxu0  ;;  %v5810_v24 = vor.u32 %v7604_v13, %v5807_v14  ;;  %v5947_v14 = vld [vmem:[#allocation2 + $0x764] sm:$0xf0] }
 0x114   :  { %2738 = vmatpush.bf16.msra.mxu1 %v6226_v39  ;;  %6379 = vmatmul.msk.bf16.vlgmr.msra.gmra.mxu2 %vm2301_vm0, %v8269_v45  ;;  %v7681_v39 = vld [vmem:[#allocation2 + $0x89c] sm:$0xf]  ;;  %v6255_v26 = vld [vmem:[#allocation2 + $0x9cc] sm:$0xf0] }
 0x115   :  { %2776 = vmatpush.bf16.msrb.mxu2 %v5362_v35  ;;  %v6142_v35 = vor.u32 %v7691_v20, %v6141_v17  ;;  %v6118_v52 = vor.u32 %v7681_v39, %v6115_v41  ;;  %v6286_v20 = vor.u32 %v7723_v9, %v6283_v10  ;;  %v6258_v38 = vor.u32 %v7716_v25, %v6255_v26  ;;  %v7653_v39 = vld [vmem:[#allocation2 + $0x7bc] sm:$0xf]  ;;  %v6003_v41 = vld [vmem:[#allocation2 + $0x7d4] sm:$0xf0]  ;;  %v6367_v9 = vld [vmem:[#allocation2 + $0xaac] sm:$0xf0] }
 0x116   :  { %2726 = vmatpush.bf16.msrb.mxu3 %v5974_v43  ;;  %v6339_v43 = vld [vmem:[#allocation2 + $0xa74] sm:$0xf0]  ;;  %v7461_v26 = vld [vmem:[#allocation2 + $0x1b8] sm:$0xf0] }
 0x117   :  { %2764 = vmatpush.bf16.msrb.mxu0 %v5110_v50  ;;  %v7555_v50 = vld [vmem:[#allocation2 + $0x4ac] sm:$0xf]  ;;  %v6342_v54 = vor.u32 %v7737_v42, %v6339_v43  ;;  %v7709_v42 = vld [vmem:[#allocation2 + $0x97c] sm:$0xf]  ;;  %v6227_v43 = vld [vmem:[#allocation2 + $0x994] sm:$0xf0] }
 0x118   :  { %2739 = vmatpush.bf16.msra.mxu1 %v6198_v56  ;;  %v5866_v56 = vor.u32 %v7618_v46, %v5863_v47  ;;  %v7590_v46 = vld [vmem:[#allocation2 + $0x5c4] sm:$0xf]  ;;  %v5751_v47 = vld [vmem:[#allocation2 + $0x5dc] sm:$0xf0] }
 0x119   :  { %2777 = vmatpush.bf16.msrb.mxu2 %v5334_v51  ;;  %v5611_v51 = vld [vmem:[#allocation2 + $0x4c4] sm:$0xf0]  ;;  %v5754_v55 = vor.u32 %v7590_v46, %v5751_v47  ;;  %v7454_v46 = vld [vmem:[#allocation2 + $0x180] sm:$0xf0] }
 0x11a   :  { %2727 = vmatpush.bf16.msrb.mxu3 %v5946_v61  ;;  %v5614_v60 = vor.u32 %v7555_v50, %v5611_v51  ;;  %v7611_v61 = vld [vmem:[#allocation2 + $0x66c] sm:$0xf]  ;;  %v6006_v50 = vor.u32 %v7653_v39, %v6003_v41  ;;  %v6230_v51 = vor.u32 %v7709_v42, %v6227_v43  ;;  %v6143_v39 = vld [vmem:[#allocation2 + $0x8ec] sm:$0xf0]  ;;  %v5897_v43 = vld [vmem:[#allocation2 + $0x6e0] sm:$0xf] }
 0x11b   :  { %2765 = vmatpush.bf16.msrb.mxu0 %v5082_v5  ;;  %v6314_v5 = vor.u32 %v7730_v58, %v6311_v59  ;;  %v5838_v7 = vor.u32 %v7611_v61, %v5835_v62  ;;  %v6199_v58 = vld [vmem:[#allocation2 + $0x95c] sm:$0xf0]  ;;  %v7583_v61 = vld [vmem:[#allocation2 + $0x58c] sm:$0xf]  ;;  %v5723_v62 = vld [vmem:[#allocation2 + $0x5a4] sm:$0xf0] }
 0x11c   :  { %2740 = vmatpush.bf16.msra.mxu1 %v6170_v12  ;;  %v5586_v12 = vor.u32 %v7548_v63, %v5583_v0  ;;  %v2496_v3 = vpop.f32.mrf.mxu1  ;;  %v7520_v63 = vld [vmem:[#allocation2 + $0x394] sm:$0xf]  ;;  %v5471_v0 = vld [vmem:[#allocation2 + $0x3ac] sm:$0xf0]  ;;  %v5726_v13 = vor.u32 %v7583_v61, %v5723_v62  ;;  %v5421_v47 = vld [vmem:[#allocation2 + $0x328] sm:$0xf] }
 0x11d   :  { %2778 = vmatpush.bf16.msrb.mxu2 %v5306_v6  ;;  %v7667_v6 = vld [vmem:[#allocation2 + $0x82c] sm:$0xf]  ;;  %v7622_v61 = vld [vmem:[#allocation2 + $0x6c0] sm:$0xf0]  ;;  %v5169_v62 = vld [vmem:[#allocation2 + $0x130] sm:$0xf] }
 0x11e   :  { %2728 = vmatpush.bf16.msrb.mxu3 %v5918_v16  ;;  %v5555_v16 = vld [vmem:[#allocation2 + $0x454] sm:$0xf0]  ;;  %v6062_v17 = vor.u32 %v7667_v6, %v6059_v8  ;;  %v6202_v6 = vor.u32 %v7702_v57, %v6199_v58  ;;  %v7744_v8 = vld [vmem:[#allocation2 + $0xa94] sm:$0xf]  ;;  %v7566_v57 = vld [vmem:[#allocation2 + $0x500] sm:$0xf0] }
 0x11f   :  { %2766 = vmatpush.bf16.msrb.mxu0 %v5054_v27  ;;  %v525_v27 = vperm.slane %v8303_v11, 2  ;;  %v5530_v11 = vor.u32 %v7534_v31, %v5527_v32  ;;  %v6370_v25 = vor.u32 %v7744_v8, %v6367_v9  ;;  %v7632_v31 = vld [vmem:[#allocation2 + $0x714] sm:$0xf]  ;;  %v5919_v32 = vld [vmem:[#allocation2 + $0x72c] sm:$0xf0] }
 0x120   :  { %2741 = vmatpush.bf16.msra.mxu1 %v6142_v35  ;;  %v2522_v35 = vpop.f32.mrf.mxu0 }
 0x121   :  { %2779 = vmatpush.bf16.msrb.mxu2 %v5278_v28  ;;  %2729 = vmatmul.bf16.vlgmr.msrb.gmra.mxu3 %v8279_v33  ;;  %v5558_v28 = vor.u32 %v7541_v15, %v5555_v16  ;;  %v7695_v15 = vld [vmem:[#allocation2 + $0x90c] sm:$0xf]  ;;  %v6171_v16 = vld [vmem:[#allocation2 + $0x924] sm:$0xf0] }
 0x122   :  { %2786 = vmatpush.bf16.msra.mxu3 %v5670_v21  ;;  %v7660_v21 = vld [vmem:[#allocation2 + $0x7f4] sm:$0xf] }
 0x123   :  { %2767 = vmatpush.bf16.msrb.mxu0 %v5026_v48  ;;  %2742 = vmatmul.bf16.vlgmr.msra.gmra.mxu1 %v8281_v37  ;;  %v6034_v36 = vor.u32 %v7660_v21, %v6031_v22  ;;  %v7527_v48 = vld [vmem:[#allocation2 + $0x3cc] sm:$0xf]  ;;  %v7576_v21 = vld [vmem:[#allocation2 + $0x554] sm:$0xf]  ;;  %v5695_v22 = vld [vmem:[#allocation2 + $0x56c] sm:$0xf0] }
 0x124   :  { %2799 = vmatpush.bf16.msrb.mxu1 %v5894_v40  ;;  %v5782_v40 = vor.u32 %v7597_v29, %v5779_v30  ;;  %v2498_v10 = vpop.f32.mrf.mxu1  ;;  %v6174_v30 = vor.u32 %v7695_v15, %v6171_v16  ;;  %v5365_v15 = vld [vmem:[#allocation2 + $0x2b8] sm:$0xf]  ;;  %v7496_v16 = vld [vmem:[#allocation2 + $0x2d0] sm:$0xf0] }
 0x125   :  { %2780 = vmatpush.bf16.msrb.mxu2 %v5250_v49  ;;  %v5499_v49 = vld [vmem:[#allocation2 + $0x3e4] sm:$0xf0]  ;;  %v5841_v10 = vld [vmem:[#allocation2 + $0x670] sm:$0xf] }
 0x126   :  { %2787 = vmatpush.bf16.msra.mxu3 %v5642_v44  ;;  %2768 = vmatmul.bf16.vlgmr.msrb.gmra.mxu0 %v8251_v4  ;;  %v2497_v44 = vadd.f32 %v2496_v3, %v525_v27  ;;  %v5449_v27 = vld [vmem:[#allocation2 + $0x360] sm:$0xf] }
 0x127   :  { %2812 = vmatpush.bf16.msra.mxu0 %v6118_v52  ;;  %v7646_v52 = vld [vmem:[#allocation2 + $0x784] sm:$0xf]  ;;  %v5673_v3 = vld [vmem:[#allocation2 + $0x520] sm:$0xf] }
 0x128   :  { %2800 = vmatpush.bf16.msrb.mxu1 %v5866_v56  ;;  %2781 = vmatmul.bf16.vlgmr.msrb.gmra.mxu2 %v8260_v18  ;;  %v5975_v56 = vld [vmem:[#allocation2 + $0x79c] sm:$0xf0]  ;;  %v2524_v1 = vpop.f32.mrf.mxu0 }
 0x129   :  { %2825 = vmatpush.bf16.msra.mxu2 %v6342_v54  ;;  %v2509_v54 = vpop.f32.mrf.mxu3  ;;  %v7503_v1 = vld [vmem:[#allocation2 + $0x308] sm:$0xf0] }
 0x12a   :  { %2788 = vmatpush.bf16.msra.mxu3 %v5614_v60  ;;  %v2510_v59 = vadd.f32 %v2509_v54, %v2497_v44  ;;  %v5502_v60 = vor.u32 %v7527_v48, %v5499_v49  ;;  %v7629_v44 = vld [vmem:[#allocation2 + $0x6f8] sm:$0xf0]  ;;  %v7510_v48 = vld [vmem:[#allocation2 + $0x340] sm:$0xf0] }
 0x12b   :  { %2813 = vmatpush.bf16.msra.mxu0 %v6090_v2 }
 0x12c   :  { %2801 = vmatpush.bf16.msrb.mxu1 %v5838_v7  ;;  %v2523_v2 = vadd.f32 %v2522_v35, %v2510_v59  ;;  %v7639_v7 = vld [vmem:[#allocation2 + $0x74c] sm:$0xf]  ;;  %v7688_v35 = vld [vmem:[#allocation2 + $0x8d4] sm:$0xf]  ;;  %v5422_v59 = vor.u32 %v7510_v48, %v5421_v47 }
 0x12d   :  { %2826 = vmatpush.bf16.msra.mxu2 %v6314_v5  ;;  %v5978_v5 = vor.u32 %v7646_v52, %v5975_v56  ;;  %v5950_v29 = vor.u32 %v7639_v7, %v5947_v14  ;;  %v5645_v56 = vld [vmem:[#allocation2 + $0x4e8] sm:$0xf]  ;;  %v7559_v7 = vld [vmem:[#allocation2 + $0x4c8] sm:$0xf0]  ;;  %v7440_v14 = vld [vmem:[#allocation2 + $0x110] sm:$0xf0] }
 0x12e   :  { %2789 = vmatpush.bf16.msra.mxu3 %v5586_v12  ;;  %v2535_v12 = vpop.f32.mrf.mxu2 }
 0x12f   :  { %2814 = vmatpush.bf16.msra.mxu0 %v6062_v17  ;;  %v8334_v17 = vadd.f32 %v2535_v12, %v2523_v2  ;;  %v5646_v2 = vor.u32 %v7566_v57, %v5645_v56  ;;  %v7615_v12 = vld [vmem:[#allocation2 + $0x688] sm:$0xf0] }
 0x130   :  { %2802 = vmatpush.bf16.msrb.mxu1 %v5810_v24  ;;  %v5225_v24 = vld [vmem:[#allocation2 + $0x1a0] sm:$0xf]  ;;  %v8336_v49 = vpop.f32.mrf.mxu0 }
 0x131   :  { %2827 = vmatpush.bf16.msra.mxu2 %v6286_v20  ;;  %v5474_v20 = vor.u32 %v7520_v63, %v5471_v0  ;;  %v5226_v41 = vor.u32 %v7461_v26, %v5225_v24  ;;  %v7447_v63 = vld [vmem:[#allocation2 + $0x148] sm:$0xf0]  ;;  %v5393_v0 = vld [vmem:[#allocation2 + $0x2f0] sm:$0xf]  ;;  %v5842_v24 = vor.u32 %v7615_v12, %v5841_v10 }
 0x132   :  { %2790 = vmatpush.bf16.msra.mxu3 %v5558_v28  ;;  %v7517_v28 = vld [vmem:[#allocation2 + $0x378] sm:$0xf0]  ;;  %v5170_v8 = vor.u32 %v7447_v63, %v5169_v62  ;;  %v5394_v9 = vor.u32 %v7503_v1, %v5393_v0  ;;  %v7594_v63 = vld [vmem:[#allocation2 + $0x5e0] sm:$0xf0]  ;;  %v5057_v0 = vld [vmem:[#allocation2 + $0x50] sm:$0xf] }
 0x133   :  { %2815 = vmatpush.bf16.msra.mxu0 %v6034_v36  ;;  %v2511_v36 = vpop.f32.mrf.mxu3  ;;  %v5450_v42 = vor.u32 %v7517_v28, %v5449_v27  ;;  %v5366_v27 = vor.u32 %v7496_v16, %v5365_v15  ;;  %v5589_v28 = vld [vmem:[#allocation2 + $0x478] sm:$0xf]  ;;  %v7419_v1 = vld [vmem:[#allocation2 + $0x68] sm:$0xf0]  ;;  %v7412_v16 = vld [vmem:[#allocation2 + $0x30] sm:$0xf0] }
 0x134   :  { %2803 = vmatpush.bf16.msrb.mxu1 %v5782_v40  ;;  %v7573_v40 = vld [vmem:[#allocation2 + $0x538] sm:$0xf0]  ;;  %v5337_v36 = vld [vmem:[#allocation2 + $0x280] sm:$0xf]  ;;  %v5058_v10 = vor.u32 %v7419_v1, %v5057_v0  ;;  %v7531_v12 = vld [vmem:[#allocation2 + $0x3e8] sm:$0xf0] }
 0x135   :  { %2828 = vmatpush.bf16.msra.mxu2 %v6258_v38  ;;  %v5698_v38 = vor.u32 %v7576_v21, %v5695_v22  ;;  %v5674_v54 = vor.u32 %v7573_v40, %v5673_v3  ;;  %v5029_v15 = vld [vmem:[#allocation2 + $0x18] sm:$0xf]  ;;  %v7671_v0 = vld [vmem:[#allocation2 + $0x848] sm:$0xf0] }
 0x136   :  { %2791 = vmatpush.bf16.msra.mxu3 %v5530_v11  ;;  %v5197_v11 = vld [vmem:[#allocation2 + $0x168] sm:$0xf]  ;;  %v2537_v52 = vpop.f32.mrf.mxu2 }
 0x137   :  { %2816 = vmatpush.bf16.msra.mxu0 %v6006_v50  ;;  %v5922_v50 = vor.u32 %v7632_v31, %v5919_v32  ;;  %v5198_v58 = vor.u32 %v7454_v46, %v5197_v11  ;;  %v7608_v31 = vld [vmem:[#allocation2 + $0x650] sm:$0xf0]  ;;  %v5113_v32 = vld [vmem:[#allocation2 + $0xc0] sm:$0xf]  ;;  %v5085_v11 = vld [vmem:[#allocation2 + $0x88] sm:$0xf] }
 0x138   :  { %2804 = vmatpush.bf16.msrb.mxu1 %v5754_v55  ;;  %v5898_v55 = vor.u32 %v7629_v44, %v5897_v43  ;;  %v7601_v44 = vld [vmem:[#allocation2 + $0x618] sm:$0xf0]  ;;  %v7426_v46 = vld [vmem:[#allocation2 + $0xa0] sm:$0xf0] }
 0x139   :  { %2829 = vmatpush.bf16.msra.mxu2 %v6230_v51  ;;  %v6146_v51 = vor.u32 %v7688_v35, %v6143_v39  ;;  %v7433_v35 = vld [vmem:[#allocation2 + $0xd8] sm:$0xf0]  ;;  %v5086_v57 = vor.u32 %v7426_v46, %v5085_v11  ;;  %v6093_v11 = vld [vmem:[#allocation2 + $0x868] sm:$0xf]  ;;  %v7678_v46 = vld [vmem:[#allocation2 + $0x880] sm:$0xf0] }
 0x13a   :  { %2792 = vmatpush.bf16.msra.mxu3 %v5502_v60  ;;  %v5869_v60 = vld [vmem:[#allocation2 + $0x6a8] sm:$0xf]  ;;  %v5114_v40 = vor.u32 %v7433_v35, %v5113_v32  ;;  %v5030_v32 = vor.u32 %v7412_v16, %v5029_v15  ;;  %v7524_v35 = vld [vmem:[#allocation2 + $0x3b0] sm:$0xf0]  ;;  %v6261_v16 = vld [vmem:[#allocation2 + $0x9b8] sm:$0xf] }
 0x13b   :  { %2817 = vmatpush.bf16.msra.mxu0 %v5978_v5  ;;  %v5870_v5 = vor.u32 %v7622_v61, %v5869_v60  ;;  %v5757_v60 = vld [vmem:[#allocation2 + $0x5c8] sm:$0xf]  ;;  %v7664_v15 = vld [vmem:[#allocation2 + $0x810] sm:$0xf0] }
 0x13c   :  { %2805 = vmatpush.bf16.msrb.mxu1 %v5726_v13  ;;  %v5141_v13 = vld [vmem:[#allocation2 + $0xf8] sm:$0xf]  ;;  %v2548_v21 = vpop.f32.mrf.mxu1 }
 0x13d   :  { %2830 = vmatpush.bf16.msra.mxu2 %v6202_v6  ;;  %v5617_v6 = vld [vmem:[#allocation2 + $0x4b0] sm:$0xf]  ;;  %v5142_v26 = vor.u32 %v7440_v14, %v5141_v13 }
 0x13e   :  { %2793 = vmatpush.bf16.msra.mxu3 %v5474_v20  ;;  %v2576_v20 = vpop.f32.mrf.mxu0  ;;  %v5618_v22 = vor.u32 %v7559_v7, %v5617_v6  ;;  %v7475_v6 = vld [vmem:[#allocation2 + $0x228] sm:$0xf0]  ;;  %v5729_v13 = vld [vmem:[#allocation2 + $0x590] sm:$0xf] }
 0x13f   :  { %2818 = vmatpush.bf16.msra.mxu0 %v5950_v29  ;;  %v7552_v29 = vld [vmem:[#allocation2 + $0x490] sm:$0xf0]  ;;  %v5253_v20 = vld [vmem:[#allocation2 + $0x1d8] sm:$0xf] }
 0x140   :  { %2806 = vmatpush.bf16.msrb.mxu1 %v5698_v38  ;;  %v7489_v38 = vld [vmem:[#allocation2 + $0x298] sm:$0xf0]  ;;  %v5590_v39 = vor.u32 %v7552_v29, %v5589_v28  ;;  %v6345_v28 = vld [vmem:[#allocation2 + $0xa60] sm:$0xf] }
 0x141   :  { %2831 = vmatpush.bf16.msra.mxu2 %v6174_v30  ;;  %2794 = vmatmul.bf16.vlgmr.msra.gmra.mxu3 %v8245_v53  ;;  %v5813_v30 = vld [vmem:[#allocation2 + $0x638] sm:$0xf]  ;;  %v5338_v43 = vor.u32 %v7489_v38, %v5337_v36  ;;  %v7741_v29 = vld [vmem:[#allocation2 + $0xa78] sm:$0xf0]  ;;  %v7580_v38 = vld [vmem:[#allocation2 + $0x570] sm:$0xf0] }
 0x142   :  { %2845 = vmatpush.bf16.msrb.mxu3 %v6370_v25  ;;  %v2549_v25 = vadd.f32 %v2548_v21, %v8334_v17  ;;  %v5814_v3 = vor.u32 %v7608_v31, %v5813_v30  ;;  %v5561_v17 = vld [vmem:[#allocation2 + $0x440] sm:$0xf]  ;;  %v5477_v30 = vld [vmem:[#allocation2 + $0x398] sm:$0xf] }
 0x143   :  { %2819 = vmatpush.bf16.msra.mxu0 %v5922_v50  ;;  %2807 = vmatmul.bf16.vlgmr.msrb.gmra.mxu1 %v8262_v19  ;;  %v5309_v50 = vld [vmem:[#allocation2 + $0x248] sm:$0xf]  ;;  %v5701_v36 = vld [vmem:[#allocation2 + $0x558] sm:$0xf] }
 0x144   :  { %2851 = vmatpush.bf16.msra.mxu1 %v5226_v41  ;;  %v7545_v41 = vld [vmem:[#allocation2 + $0x458] sm:$0xf0]  ;;  %v2561_v48 = vpop.f32.mrf.mxu3 }
 0x145   :  { %2832 = vmatpush.bf16.msra.mxu2 %v6146_v51  ;;  %v7482_v51 = vld [vmem:[#allocation2 + $0x260] sm:$0xf0]  ;;  %v2562_v52 = vadd.f32 %v2561_v48, %v2549_v25  ;;  %v7685_v25 = vld [vmem:[#allocation2 + $0x8b8] sm:$0xf0]  ;;  %v5478_v48 = vor.u32 %v7524_v35, %v5477_v30  ;;  %v6576_v35 = vld [vmem:[#allocation6 + $0x180] sm:$0xf] }
 0x146   :  { %2864 = vmatpush.bf16.msra.mxu3 %v5450_v42  ;;  %2820 = vmatmul.bf16.vlgmr.msra.gmra.mxu0 %v8279_v33  ;;  %v5785_v42 = vld [vmem:[#allocation2 + $0x600] sm:$0xf]  ;;  %v8343_v47 = vpop.f32.mrf.mxu0  ;;  %v5310_v62 = vor.u32 %v7482_v51, %v5309_v50  ;;  %v6317_v50 = vld [vmem:[#allocation2 + $0xa28] sm:$0xf]  ;;  %v7734_v51 = vld [vmem:[#allocation2 + $0xa40] sm:$0xf0] }
 0x147   :  { %2877 = vmatpush.bf16.msrb.mxu0 %v5674_v54  ;;  %v5562_v54 = vor.u32 %v7545_v41, %v5561_v17  ;;  %v5786_v56 = vor.u32 %v7601_v44, %v5785_v42  ;;  %v8348_v61 = vadd.f32 %v8336_v49, %v2562_v52  ;;  %v7587_v49 = vld [vmem:[#allocation2 + $0x5a8] sm:$0xf0]  ;;  %v6373_v17 = vld [vmem:[#allocation2 + $0xa98] sm:$0xf]  ;;  %v7748_v41 = vld [vmem:[#allocation2 + $0xab0] sm:$0xf0]  ;;  %v5702_v52 = vor.u32 %v7580_v38, %v5701_v36 }
 0x148   :  { %2852 = vmatpush.bf16.msra.mxu1 %v5198_v58  ;;  %2833 = vmatmul.bf16.vlgmr.msra.gmra.mxu2 %v8281_v37  ;;  %v5533_v58 = vld [vmem:[#allocation2 + $0x408] sm:$0xf]  ;;  %v5730_v31 = vor.u32 %v7587_v49, %v5729_v13  ;;  %v7779_v44 = vld [vmem:[#allocation6 + $0xec] sm:$0xf0]  ;;  %v7657_v30 = vld [vmem:[#allocation2 + $0x7d8] sm:$0xf0] }
 0x149   :  { %2890 = vmatpush.bf16.msrb.mxu2 %v5898_v55  ;;  %v2550_v55 = vpop.f32.mrf.mxu1  ;;  %v7771_v49 = vld [vmem:[#allocation6 + $0xac] sm:$0xf0] }
 0x14a   :  { %2865 = vmatpush.bf16.msra.mxu3 %v5422_v59  ;;  %v7538_v59 = vld [vmem:[#allocation2 + $0x420] sm:$0xf0]  ;;  %v6624_v55 = vld [vmem:[#allocation6 + $0x1e0] sm:$0xf]  ;;  %v7799_v36 = vld [vmem:[#allocation6 + $0x18c] sm:$0xf0] }
 0x14b   :  { %2878 = vmatpush.bf16.msrb.mxu0 %v5646_v2  ;;  %v8350_v2 = vpop.f32.mrf.mxu2  ;;  %v5534_v7 = vor.u32 %v7538_v59, %v5533_v58  ;;  %v6094_v58 = vor.u32 %v7678_v46, %v6093_v11  ;;  %v6480_v59 = vld [vmem:[#allocation6 + $0xc0] sm:$0xf]  ;;  %v6205_v11 = vld [vmem:[#allocation2 + $0x948] sm:$0xf]  ;;  %v7706_v46 = vld [vmem:[#allocation2 + $0x960] sm:$0xf0] }
 0x14c   :  { %2853 = vmatpush.bf16.msra.mxu1 %v5170_v8  ;;  %v5505_v8 = vld [vmem:[#allocation2 + $0x3d0] sm:$0xf] }
 0x14d   :  { %2891 = vmatpush.bf16.msrb.mxu2 %v5870_v5  ;;  %v5281_v5 = vld [vmem:[#allocation2 + $0x210] sm:$0xf] }
 0x14e   :  { %2866 = vmatpush.bf16.msra.mxu3 %v5394_v9  ;;  %v5758_v9 = vor.u32 %v7594_v63, %v5757_v60  ;;  %v5282_v14 = vor.u32 %v7475_v6, %v5281_v5  ;;  %v2602_v21 = vpop.f32.mrf.mxu0  ;;  %v6318_v60 = vor.u32 %v7734_v51, %v6317_v50  ;;  %v6065_v63 = vld [vmem:[#allocation2 + $0x830] sm:$0xf]  ;;  %v7727_v6 = vld [vmem:[#allocation2 + $0xa08] sm:$0xf0]  ;;  %v6560_v50 = vld [vmem:[#allocation6 + $0x160] sm:$0xf] }
 0x14f   :  { %2879 = vmatpush.bf16.msrb.mxu0 %v5618_v22  ;;  %v7468_v22 = vld [vmem:[#allocation2 + $0x1f0] sm:$0xf0]  ;;  %v6289_v5 = vld [vmem:[#allocation2 + $0x9f0] sm:$0xf] }
 0x150   :  { %2854 = vmatpush.bf16.msra.mxu1 %v5142_v26  ;;  %v2563_v26 = vpop.f32.mrf.mxu3  ;;  %v6290_v13 = vor.u32 %v7727_v6, %v6289_v5  ;;  %v7795_v51 = vld [vmem:[#allocation6 + $0x16c] sm:$0xf0] }
 0x151   :  { %2892 = vmatpush.bf16.msrb.mxu2 %v5842_v24  ;;  %6380 = vmatmul.msk.bf16.vlgmr.msrb.gmra.mxu3 %vm2301_vm0, %v8269_v45  ;;  %v6121_v24 = vld [vmem:[#allocation2 + $0x8a0] sm:$0xf]  ;;  %v7791_v5 = vld [vmem:[#allocation6 + $0x14c] sm:$0xf0] }
 0x152   :  { %2867 = vmatpush.bf16.msra.mxu3 %v5366_v27  ;;  %v5506_v27 = vor.u32 %v7531_v12, %v5505_v8  ;;  %v7807_v8 = vld [vmem:[#allocation6 + $0x1cc] sm:$0xf0]  ;;  %v6464_v12 = vld [vmem:[#allocation6 + $0xa0] sm:$0xf] }
 0x153   :  { %2880 = vmatpush.bf16.msrb.mxu0 %v5590_v39  ;;  %v5254_v39 = vor.u32 %v7468_v22, %v5253_v20  ;;  %v2589_v42 = vpop.f32.mrf.mxu2  ;;  %v7720_v20 = vld [vmem:[#allocation2 + $0x9d0] sm:$0xf0]  ;;  %v6592_v22 = vld [vmem:[#allocation6 + $0x1a0] sm:$0xf] }
 0x154   :  { %2855 = vmatpush.bf16.msra.mxu1 %v5114_v40  ;;  %v6496_v40 = vld [vmem:[#allocation6 + $0xe0] sm:$0xf] }
 0x155   :  { %2893 = vmatpush.bf16.msrb.mxu2 %v5814_v3  ;;  %v6122_v3 = vor.u32 %v7685_v25, %v6121_v24  ;;  %v7803_v24 = vld [vmem:[#allocation6 + $0x1ac] sm:$0xf0]  ;;  %v6465_v25 = vor.u32 %v7771_v49, %v6464_v12  ;;  %v6448_v26 = vld [vmem:[#allocation6 + $0x80] sm:$0xf]  ;;  %v6149_v49 = vld [vmem:[#allocation2 + $0x8d8] sm:$0xf] }
 0x156   :  { %2868 = vmatpush.bf16.msra.mxu3 %v5338_v43  ;;  %v6346_v43 = vor.u32 %v7741_v29, %v6345_v28  ;;  %v7767_v28 = vld [vmem:[#allocation6 + $0x8c] sm:$0xf0]  ;;  %v6009_v29 = vld [vmem:[#allocation2 + $0x7c0] sm:$0xf] }
 0x157   :  { %2881 = vmatpush.bf16.msrb.mxu0 %v5562_v54  ;;  %v6374_v54 = vor.u32 %v7748_v41, %v6373_v17  ;;  %v6449_v38 = vor.u32 %v7767_v28, %v6448_v26  ;;  %v5981_v17 = vld [vmem:[#allocation2 + $0x788] sm:$0xf]  ;;  %v7650_v41 = vld [vmem:[#allocation2 + $0x7a0] sm:$0xf0]  ;;  %v6528_v26 = vld [vmem:[#allocation6 + $0x120] sm:$0xf] }
 0x158   :  { %2856 = vmatpush.bf16.msra.mxu1 %v5086_v57  ;;  %v6497_v57 = vor.u32 %v7779_v44, %v6496_v40  ;;  %v7763_v40 = vld [vmem:[#allocation6 + $0x6c] sm:$0xf0]  ;;  %v8368_v28 = vld [vmem:[#allocation4] sm:$0xff] }
 0x159   :  { %2894 = vmatpush.bf16.msrb.mxu2 %v5786_v56  ;;  %v7811_v56 = vld [vmem:[#allocation6 + $0x1ec] sm:$0xf0] }
 0x15a   :  { %2869 = vmatpush.bf16.msra.mxu3 %v5310_v62  ;;  %v7775_v62 = vld [vmem:[#allocation6 + $0xcc] sm:$0xf0]  ;;  %v6625_v1 = vor.u32 %v7811_v56, %v6624_v55  ;;  %v5982_v55 = vor.u32 %v7650_v41, %v5981_v17  ;;  %v6416_v56 = vld [vmem:[#allocation6 + $0x40] sm:$0xf] }
 0x15b   :  { %2882 = vmatpush.bf16.msrb.mxu0 %v5534_v7  ;;  %v6608_v7 = vld [vmem:[#allocation6 + $0x1c0] sm:$0xf]  ;;  %v7839_v17 = vld [vmem:[#allocation6 + $0x2cc] sm:$0xf0] }
 0x15c   :  { %2857 = vmatpush.bf16.msra.mxu1 %v5058_v10  ;;  %v6066_v10 = vor.u32 %v7671_v0, %v6065_v63  ;;  %v8355_v21 = vpop.f32.mrf.mxu1  ;;  %v6177_v63 = vld [vmem:[#allocation2 + $0x910] sm:$0xf]  ;;  %v7699_v0 = vld [vmem:[#allocation2 + $0x928] sm:$0xf0]  ;;  %v6864_v41 = vld [vmem:[#allocation6 + $0x3c0] sm:$0xf] }
 0x15d   :  { %2895 = vmatpush.bf16.msrb.mxu2 %v5758_v9  ;;  %v6481_v9 = vor.u32 %v7775_v62, %v6480_v59  ;;  %v5953_v59 = vld [vmem:[#allocation2 + $0x750] sm:$0xf]  ;;  %v6561_v62 = vor.u32 %v7795_v51, %v6560_v50  ;;  %v6178_v12 = vor.u32 %v7699_v0, %v6177_v63  ;;  %v2942_v51 = vmax.f32 %v8313_v23, 0.0  ;;  %v6848_v63 = vld [vmem:[#allocation6 + $0x3a0] sm:$0xf] }
 0x15e   :  { %2870 = vmatpush.bf16.msra.mxu3 %v5282_v14  ;;  %v6037_v14 = vld [vmem:[#allocation2 + $0x7f8] sm:$0xf]  ;;  %v7867_v0 = vld [vmem:[#allocation6 + $0x3ac] sm:$0xf0] }
 0x15f   :  { %2883 = vmatpush.bf16.msrb.mxu0 %v5506_v27  ;;  %v6262_v27 = vor.u32 %v7720_v20, %v6261_v16  ;;  %v7843_v16 = vld [vmem:[#allocation6 + $0x2ec] sm:$0xf0]  ;;  %v6880_v20 = vld [vmem:[#allocation6 + $0x3e0] sm:$0xf] }
 0x160   :  { %2858 = vmatpush.bf16.msra.mxu1 %v5030_v32  ;;  %v7713_v32 = vld [vmem:[#allocation2 + $0x998] sm:$0xf0] }
 0x161   :  { %2896 = vmatpush.bf16.msrb.mxu2 %v5730_v31  ;;  %v6233_v31 = vld [vmem:[#allocation2 + $0x980] sm:$0xf] }
 0x162   :  { %2871 = vmatpush.bf16.msra.mxu3 %v5254_v39  ;;  %v6432_v39 = vld [vmem:[#allocation6 + $0x60] sm:$0xf] }
 0x163   :  { %2884 = vmatpush.bf16.msrb.mxu0 %v5478_v48  ;;  %2859 = vmatmul.bf16.vlgmr.msra.gmra.mxu1 %v8251_v4  ;;  %v6609_v4 = vor.u32 %v7807_v8, %v6608_v7  ;;  %v8360_v44 = vpop.f32.mrf.mxu0  ;;  %v6400_v8 = vld [vmem:[#allocation6 + $0x20] sm:$0xf] }
 0x164   :  { %2903 = vmatpush.bf16.msrb.mxu1 %v6122_v3  ;;  %v6234_v3 = vor.u32 %v7713_v32, %v6233_v31  ;;  %v8358_v42 = vpop.f32.mrf.mxu3  ;;  %v2615_v48 = vpop.f32.mrf.mxu1 }
 0x165   :  { %2897 = vmatpush.bf16.msrb.mxu2 %v5702_v52  ;;  %2872 = vmatmul.bf16.vlgmr.msra.gmra.mxu3 %v8260_v18  ;;  %v6593_v18 = vor.u32 %v7803_v24, %v6592_v22 }
 0x166   :  { %2916 = vmatpush.bf16.msrb.mxu3 %v6346_v43  ;;  %2885 = vmatmul.bf16.vlgmr.msrb.gmra.mxu0 %v8245_v53  ;;  %v6038_v53 = vor.u32 %v7664_v15, %v6037_v14  ;;  %v6577_v43 = vor.u32 %v7799_v36, %v6576_v35  ;;  %v7692_v14 = vld [vmem:[#allocation2 + $0x8f0] sm:$0xf0]  ;;  %v7751_v36 = vld [vmem:[#allocation6 + $0xc] sm:$0xf0] }
 0x167   :  { %2936 = vmatpush.bf16.msra.mxu0 %v6374_v54  ;;  %v8362_v52 = vpop.f32.mrf.mxu2  ;;  %v6433_v54 = vor.u32 %v7763_v40, %v6432_v39  ;;  %v6150_v32 = vor.u32 %v7692_v14, %v6149_v49  ;;  %v6736_v40 = vld [vmem:[#allocation6 + $0x2c0] sm:$0xf]  ;;  %v7863_v14 = vld [vmem:[#allocation6 + $0x38c] sm:$0xf0] }
 0x168   :  { %2904 = vmatpush.bf16.msrb.mxu1 %v6094_v58  ;;  %2898 = vmatmul.bf16.vlgmr.msrb.gmra.mxu2 %v8262_v19  ;;  %v6010_v19 = vor.u32 %v7657_v30, %v6009_v29  ;;  %v7759_v58 = vld [vmem:[#allocation6 + $0x4c] sm:$0xf0] }
 0x169   :  { %4310 = vmatpush.bf16.msra.mxu2 %v6497_v57  ;;  %v6206_v57 = vor.u32 %v7706_v46, %v6205_v11  ;;  %v6417_v6 = vor.u32 %v7759_v58, %v6416_v56  ;;  %v6512_v11 = vld [vmem:[#allocation6 + $0x100] sm:$0xf]  ;;  %v7783_v46 = vld [vmem:[#allocation6 + $0x10c] sm:$0xf0]  ;;  %v6737_v56 = vor.u32 %v7839_v17, %v6736_v40 }
 0x16a   :  { %2917 = vmatpush.bf16.msrb.mxu3 %v6318_v60  ;;  %v7643_v60 = vld [vmem:[#allocation2 + $0x768] sm:$0xf0]  ;;  %v6513_v58 = vor.u32 %v7783_v46, %v6512_v11  ;;  %v6672_v40 = vld [vmem:[#allocation6 + $0x240] sm:$0xf]  ;;  %v7855_v11 = vld [vmem:[#allocation6 + $0x34c] sm:$0xf0] }
 0x16b   :  { %4323 = vmatpush.bf16.msrb.mxu0 %v6625_v1  ;;  %v6544_v1 = vld [vmem:[#allocation6 + $0x140] sm:$0xf]  ;;  %v5954_v7 = vor.u32 %v7643_v60, %v5953_v59  ;;  %v2654_v24 = vpop.f32.mrf.mxu0  ;;  %v7903_v60 = vld [vmem:[#allocation6 + $0x4cc] sm:$0xf0] }
 0x16c   :  { %2905 = vmatpush.bf16.msrb.mxu1 %v6066_v10  ;;  %v5925_v10 = vld [vmem:[#allocation2 + $0x718] sm:$0xf]  ;;  %v6545_v15 = vor.u32 %v7791_v5, %v6544_v1  ;;  %v2628_v22 = vpop.f32.mrf.mxu3  ;;  %v6992_v59 = vld [vmem:[#allocation6 + $0x4c0] sm:$0xf] }
 0x16d   :  { %4311 = vmatpush.bf16.msra.mxu2 %v6481_v9  ;;  %v7755_v9 = vld [vmem:[#allocation6 + $0x2c] sm:$0xf0]  ;;  %v6993_v5 = vor.u32 %v7903_v60, %v6992_v59  ;;  %v6656_v59 = vld [vmem:[#allocation6 + $0x220] sm:$0xf] }
 0x16e   :  { %2918 = vmatpush.bf16.msrb.mxu3 %v6290_v13  ;;  %v7636_v13 = vld [vmem:[#allocation2 + $0x730] sm:$0xf0]  ;;  %v6401_v29 = vor.u32 %v7755_v9, %v6400_v8  ;;  %v6976_v9 = vld [vmem:[#allocation6 + $0x4a0] sm:$0xf]  ;;  %v7819_v60 = vld [vmem:[#allocation6 + $0x22c] sm:$0xf0] }
 0x16f   :  { %4324 = vmatpush.bf16.msrb.mxu0 %v6609_v4  ;;  %v6752_v4 = vld [vmem:[#allocation6 + $0x2e0] sm:$0xf]  ;;  %v5926_v30 = vor.u32 %v7636_v13, %v5925_v10  ;;  %v2641_v31 = vpop.f32.mrf.mxu2  ;;  %v7899_v10 = vld [vmem:[#allocation6 + $0x4ac] sm:$0xf0] }
 0x170   :  { %2906 = vmatpush.bf16.msrb.mxu1 %v6038_v53  ;;  %v7875_v53 = vld [vmem:[#allocation6 + $0x3ec] sm:$0xf0]  ;;  %v6753_v35 = vor.u32 %v7843_v16, %v6752_v4  ;;  %v6977_v4 = vor.u32 %v7899_v10, %v6976_v9  ;;  %v7120_v16 = vld [vmem:[#allocation6 + $0x5c0] sm:$0xf] }
 0x171   :  { %4312 = vmatpush.bf16.msra.mxu2 %v6465_v25  ;;  %v8366_v25 = vpop.f32.mrf.mxu1  ;;  %v6881_v39 = vor.u32 %v7875_v53, %v6880_v20  ;;  %v7935_v20 = vld [vmem:[#allocation6 + $0x5cc] sm:$0xf0]  ;;  %v6960_v53 = vld [vmem:[#allocation6 + $0x480] sm:$0xf] }
 0x172   :  { %2919 = vmatpush.bf16.msrb.mxu3 %v6262_v27  ;;  %v7787_v27 = vld [vmem:[#allocation6 + $0x12c] sm:$0xf0]  ;;  %v6912_v9 = vld [vmem:[#allocation6 + $0x420] sm:$0xf] }
 0x173   :  { %4325 = vmatpush.bf16.msrb.mxu0 %v6593_v18  ;;  %v6384_v18 = vld [vmem:[#allocation6] sm:$0xf]  ;;  %v7883_v10 = vld [vmem:[#allocation6 + $0x42c] sm:$0xf0] }
 0x174   :  { %2907 = vmatpush.bf16.msrb.mxu1 %v6010_v19  ;;  %v7907_v19 = vld [vmem:[#allocation6 + $0x4ec] sm:$0xf0]  ;;  %v6385_v50 = vor.u32 %v7751_v36, %v6384_v18 }
 0x175   :  { %4313 = vmatpush.bf16.msra.mxu2 %v6449_v38  ;;  %v7008_v38 = vld [vmem:[#allocation6 + $0x4e0] sm:$0xf]  ;;  %v7859_v18 = vld [vmem:[#allocation6 + $0x36c] sm:$0xf0] }
 0x176   :  { %2920 = vmatpush.bf16.msrb.mxu3 %v6234_v3  ;;  %6381 = vmatmul.msk.bf16.vlgmr.msra.gmra.mxu0 %vm2301_vm0, %v8269_v45  ;;  %v526_v45 = vperm.slane %v8368_v28, 3  ;;  %v6529_v3 = vor.u32 %v7787_v27, %v6528_v26  ;;  %v7895_v26 = vld [vmem:[#allocation6 + $0x48c] sm:$0xf0]  ;;  %v6688_v27 = vld [vmem:[#allocation6 + $0x260] sm:$0xf] }
 0x177   :  { %4326 = vmatpush.bf16.msrb.mxu0 %v6577_v43  ;;  %v7871_v43 = vld [vmem:[#allocation6 + $0x3cc] sm:$0xf0] }
 0x178   :  { %2908 = vmatpush.bf16.msrb.mxu1 %v5982_v55  ;;  %v2588_v48 = vadd.f32 %v8350_v2, %v526_v45  ;;  %v7009_v55 = vor.u32 %v7907_v19, %v7008_v38  ;;  %v7835_v2 = vld [vmem:[#allocation6 + $0x2ac] sm:$0xf0]  ;;  %v7121_v45 = vor.u32 %v7935_v20, %v7120_v16  ;;  %v2944_v20 = vmax.f32 %v8348_v61, 0.0  ;;  %v6482_v61 = vld [vmem:[#allocation6 + $0xd0] sm:$0xf0] }
 0x179   :  { %4314 = vmatpush.bf16.msra.mxu2 %v6433_v54  ;;  %v2943_v54 = vmax.f32 %v8327_v34, 0.0  ;;  %v2667_v1 = vpop.f32.mrf.mxu1  ;;  %v8377_v34 = vpack.c.bf16 %v2942_v51, %v2942_v51  ;;  %v7931_v36 = vld [vmem:[#allocation6 + $0x5ac] sm:$0xf0]  ;;  %v6928_v51 = vld [vmem:[#allocation6 + $0x440] sm:$0xf] }
 0x17a   :  { %2921 = vmatpush.bf16.msrb.mxu3 %v6206_v57  ;;  %v6865_v57 = vor.u32 %v7871_v43, %v6864_v41  ;;  %v2601_v23 = vadd.f32 %v8343_v47, %v2588_v48  ;;  %v6832_v47 = vld [vmem:[#allocation6 + $0x380] sm:$0xf]  ;;  %v7823_v41 = vld [vmem:[#allocation6 + $0x24c] sm:$0xf0] }
 0x17b   :  { %4327 = vmatpush.bf16.msrb.mxu0 %v6561_v62  ;;  %v6720_v62 = vld [vmem:[#allocation6 + $0x2a0] sm:$0xf]  ;;  %v8379_v49 = vpack.c.bf16 %v2943_v54, %v2943_v54  ;;  %v6833_v24 = vor.u32 %v7863_v14, %v6832_v47  ;;  %v7847_v14 = vld [vmem:[#allocation6 + $0x30c] sm:$0xf0] }
 0x17c   :  { %2909 = vmatpush.bf16.msrb.mxu1 %v5954_v7  ;;  %v7939_v7 = vld [vmem:[#allocation6 + $0x5ec] sm:$0xf0]  ;;  %v6721_v8 = vor.u32 %v7835_v2, %v6720_v62  ;;  %v6800_v43 = vld [vmem:[#allocation6 + $0x340] sm:$0xf] }
 0x17d   :  { %4315 = vmatpush.bf16.msra.mxu2 %v6417_v6  ;;  %v7136_v6 = vld [vmem:[#allocation6 + $0x5e0] sm:$0xf] }
 0x17e   :  { %2922 = vmatpush.bf16.msrb.mxu3 %v6178_v12  ;;  %v6704_v12 = vld [vmem:[#allocation6 + $0x280] sm:$0xf]  ;;  %v7137_v13 = vor.u32 %v7939_v7, %v7136_v6  ;;  %v7923_v7 = vld [vmem:[#allocation6 + $0x56c] sm:$0xf0] }
 0x17f   :  { %4328 = vmatpush.bf16.msrb.mxu0 %v6545_v15  ;;  %v2614_v15 = vadd.f32 %v8355_v21, %v2601_v23  ;;  %v7088_v54 = vld [vmem:[#allocation6 + $0x580] sm:$0xf] }
 0x180   :  { %2910 = vmatpush.bf16.msrb.mxu1 %v5926_v30  ;;  %v6816_v30 = vld [vmem:[#allocation6 + $0x360] sm:$0xf] }
 0x181   :  { %4316 = vmatpush.bf16.msra.mxu2 %v6401_v29  ;;  %v7827_v29 = vld [vmem:[#allocation6 + $0x26c] sm:$0xf0]  ;;  %v8384_v31 = vpop.f32.mrf.mxu1  ;;  %v2627_v21 = vadd.f32 %v8358_v42, %v2614_v15  ;;  %v6817_v19 = vor.u32 %v7859_v18, %v6816_v30  ;;  %v7072_v6 = vld [vmem:[#allocation6 + $0x560] sm:$0xf] }
 0x182   :  { %2923 = vmatpush.bf16.msrb.mxu3 %v6150_v32  ;;  %v6961_v32 = vor.u32 %v7895_v26, %v6960_v53  ;;  %v6689_v38 = vor.u32 %v7827_v29, %v6688_v27  ;;  %v6768_v47 = vld [vmem:[#allocation6 + $0x300] sm:$0xf]  ;;  %v7919_v53 = vld [vmem:[#allocation6 + $0x54c] sm:$0xf0] }
 0x183   :  { %4329 = vmatpush.bf16.msrb.mxu0 %v6529_v3  ;;  %2911 = vmatmul.bf16.vlgmr.msrb.gmra.mxu1 %v8279_v33  ;;  %v6849_v33 = vor.u32 %v7867_v0, %v6848_v63  ;;  %v7891_v3 = vld [vmem:[#allocation6 + $0x46c] sm:$0xf0]  ;;  %v8387_v46 = vpop.f32.mrf.mxu0  ;;  %v2640_v42 = vadd.f32 %v8362_v52, %v2627_v21  ;;  %v6784_v63 = vld [vmem:[#allocation6 + $0x320] sm:$0xf] }
 0x184   :  { %4336 = vmatpush.bf16.msra.mxu1 %v6753_v35  ;;  %v7104_v35 = vld [vmem:[#allocation6 + $0x5a0] sm:$0xf]  ;;  %v8390_v48 = vpop.f32.mrf.mxu3  ;;  %v7851_v52 = vld [vmem:[#allocation6 + $0x32c] sm:$0xf0] }
 0x185   :  { %2924 = vmatmul.bf16.vlgmr.msrb.gmra.mxu3 %v8281_v37  ;;  %4317 = vmatpush.bf16.msra.mxu2 %v6385_v50  ;;  %v7831_v37 = vld [vmem:[#allocation6 + $0x28c] sm:$0xf0]  ;;  %v7105_v17 = vor.u32 %v7931_v36, %v7104_v35  ;;  %v2653_v1 = vadd.f32 %v8360_v44, %v2640_v42  ;;  %v7777_v44 = vld [vmem:[#allocation6 + $0xe4] sm:$0xf]  ;;  %v6896_v21 = vld [vmem:[#allocation6 + $0x400] sm:$0xf] }
 0x186   :  { %4349 = vmatpush.bf16.msra.mxu3 %v6881_v39  ;;  %v6705_v22 = vor.u32 %v7831_v37, %v6704_v12  ;;  %v6944_v39 = vld [vmem:[#allocation6 + $0x460] sm:$0xf]  ;;  %v7815_v37 = vld [vmem:[#allocation6 + $0x20c] sm:$0xf0]  ;;  %v7809_v35 = vld [vmem:[#allocation6 + $0x1e4] sm:$0xf] }
 0x187   :  { %4330 = vmatpush.bf16.msrb.mxu0 %v6513_v58  ;;  %v6945_v50 = vor.u32 %v7891_v3, %v6944_v39  ;;  %v7887_v58 = vld [vmem:[#allocation6 + $0x44c] sm:$0xf0]  ;;  %v8392_v62 = vpop.f32.mrf.mxu2  ;;  %v6640_v12 = vld [vmem:[#allocation6 + $0x200] sm:$0xf]  ;;  %v6626_v36 = vld [vmem:[#allocation6 + $0x1f0] sm:$0xf0] }
 0x188   :  { %4337 = vmatpush.bf16.msra.mxu1 %v6737_v56  ;;  %4318 = vmatmul.bf16.vlgmr.msra.gmra.mxu2 %v8377_v34  ;;  %v6673_v56 = vor.u32 %v7823_v41, %v6672_v40  ;;  %v6929_v23 = vor.u32 %v7887_v58, %v6928_v51  ;;  %v6641_v27 = vor.u32 %v7815_v37, %v6640_v12  ;;  %v7040_v39 = vld [vmem:[#allocation6 + $0x520] sm:$0xf]  ;;  %v7915_v3 = vld [vmem:[#allocation6 + $0x52c] sm:$0xf0]  ;;  %v6610_v51 = vld [vmem:[#allocation6 + $0x1d0] sm:$0xf0] }
 0x189   :  { %4362 = vmatpush.bf16.msrb.mxu2 %v7009_v55  ;;  %v7927_v55 = vld [vmem:[#allocation6 + $0x58c] sm:$0xf0]  ;;  %v2693_v0 = vpop.f32.mrf.mxu1  ;;  %v8399_v41 = vpack.c.bf16 %v2944_v20, %v2944_v20  ;;  %v7761_v37 = vld [vmem:[#allocation6 + $0x64] sm:$0xf] }
 0x18a   :  { %4350 = vmatpush.bf16.msra.mxu3 %v6865_v57  ;;  %4331 = vmatmul.bf16.vlgmr.msrb.gmra.mxu0 %v8379_v49  ;;  %v6801_v57 = vor.u32 %v7855_v11, %v6800_v43  ;;  %v7089_v2 = vor.u32 %v7927_v55, %v7088_v54  ;;  %v6629_v11 = vor.u32 %v7809_v35, %v6626_v36  ;;  %v7769_v54 = vld [vmem:[#allocation6 + $0xa4] sm:$0xf]  ;;  %v6466_v55 = vld [vmem:[#allocation6 + $0xb0] sm:$0xf0] }
 0x18b   :  { %4375 = vmatpush.bf16.msra.mxu0 %v7137_v13  ;;  %v7073_v13 = vor.u32 %v7923_v7, %v7072_v6  ;;  %v2719_v15 = vpop.f32.mrf.mxu0  ;;  %v7801_v0 = vld [vmem:[#allocation6 + $0x1a4] sm:$0xf]  ;;  %v6450_v6 = vld [vmem:[#allocation6 + $0x90] sm:$0xf0] }
 0x18c   :  { %4338 = vmatpush.bf16.msra.mxu1 %v6721_v8  ;;  %v2666_v8 = vadd.f32 %v8366_v25, %v2653_v1  ;;  %v2680_v16 = vpop.f32.mrf.mxu3  ;;  %v527_v25 = vperm.slane %v8368_v28, 4  ;;  %v7837_v7 = vld [vmem:[#allocation6 + $0x2c4] sm:$0xf] }
 0x18d   :  { %4363 = vmatpush.bf16.msrb.mxu2 %v6993_v5  ;;  %v6657_v5 = vor.u32 %v7819_v60, %v6656_v59  ;;  %v7841_v60 = vld [vmem:[#allocation6 + $0x2e4] sm:$0xf] }
 0x18e   :  { %4351 = vmatpush.bf16.msra.mxu3 %v6849_v33  ;;  %v6785_v33 = vor.u32 %v7851_v52, %v6784_v63  ;;  %v2945_v26 = vmax.f32 %v2666_v8, 0.0  ;;  %v6469_v52 = vor.u32 %v7769_v54, %v6466_v55  ;;  %v6738_v8 = vld [vmem:[#allocation6 + $0x2d0] sm:$0xf0]  ;;  %v7793_v20 = vld [vmem:[#allocation6 + $0x164] sm:$0xf] }
 0x18f   :  { %4376 = vmatpush.bf16.msra.mxu0 %v7121_v45  ;;  %v6769_v45 = vor.u32 %v7847_v14, %v6768_v47  ;;  %v2706_v29 = vpop.f32.mrf.mxu2  ;;  %v6741_v12 = vor.u32 %v7837_v7, %v6738_v8  ;;  %v6434_v47 = vld [vmem:[#allocation6 + $0x70] sm:$0xf0]  ;;  %v7789_v35 = vld [vmem:[#allocation6 + $0x144] sm:$0xf] }
 0x190   :  { %4339 = vmatpush.bf16.msra.mxu1 %v6705_v22  ;;  %v6913_v22 = vor.u32 %v7883_v10, %v6912_v9  ;;  %v8401_v43 = vpack.c.bf16 %v2945_v26, %v2945_v26  ;;  %v7797_v10 = vld [vmem:[#allocation6 + $0x184] sm:$0xf]  ;;  %v6437_v16 = vor.u32 %v7761_v37, %v6434_v47  ;;  %v6514_v8 = vld [vmem:[#allocation6 + $0x110] sm:$0xf0] }
 0x191   :  { %4364 = vmatpush.bf16.msrb.mxu2 %v6977_v4  ;;  %v6498_v4 = vld [vmem:[#allocation6 + $0xf0] sm:$0xf0]  ;;  %v7757_v26 = vld [vmem:[#allocation6 + $0x44] sm:$0xf] }
 0x192   :  { %4352 = vmatpush.bf16.msra.mxu3 %v6833_v24  ;;  %v7056_v24 = vld [vmem:[#allocation6 + $0x540] sm:$0xf]  ;;  %v6501_v18 = vor.u32 %v7777_v44, %v6498_v4  ;;  %v7833_v44 = vld [vmem:[#allocation6 + $0x2a4] sm:$0xf]  ;;  %v6722_v4 = vld [vmem:[#allocation6 + $0x2b0] sm:$0xf0] }
 0x193   :  { %4377 = vmatpush.bf16.msra.mxu0 %v7105_v17  ;;  %v7057_v30 = vor.u32 %v7919_v53, %v7056_v24  ;;  %v7041_v17 = vor.u32 %v7915_v3, %v7040_v39  ;;  %v7785_v3 = vld [vmem:[#allocation6 + $0x124] sm:$0xf]  ;;  %v7138_v37 = vld [vmem:[#allocation6 + $0x5f0] sm:$0xf0] }
 0x194   :  { %4340 = vmatpush.bf16.msra.mxu1 %v6689_v38  ;;  %v7773_v38 = vld [vmem:[#allocation6 + $0xc4] sm:$0xf] }
 0x195   :  { %4365 = vmatpush.bf16.msrb.mxu2 %v6961_v32  ;;  %v7879_v32 = vld [vmem:[#allocation6 + $0x40c] sm:$0xf0]  ;;  %v6485_v42 = vor.u32 %v7773_v38, %v6482_v61  ;;  %v6546_v38 = vld [vmem:[#allocation6 + $0x150] sm:$0xf0]  ;;  %v7753_v61 = vld [vmem:[#allocation6 + $0x24] sm:$0xf] }
 0x196   :  { %4353 = vmatpush.bf16.msra.mxu3 %v6817_v19  ;;  %v2679_v19 = vadd.f32 %v8390_v48, %v527_v25  ;;  %v6897_v40 = vor.u32 %v7879_v32, %v6896_v21  ;;  %v7024_v48 = vld [vmem:[#allocation6 + $0x500] sm:$0xf]  ;;  %v6562_v25 = vld [vmem:[#allocation6 + $0x170] sm:$0xf0]  ;;  %v7749_v54 = vld [vmem:[#allocation6 + $0x4] sm:$0xf] }
 0x197   :  { %4378 = vmatpush.bf16.msra.mxu0 %v7089_v2  ;;  %v2756_v59 = vpop.f32.mrf.mxu2  ;;  %v6754_v2 = vld [vmem:[#allocation6 + $0x2f0] sm:$0xf0]  ;;  %v7781_v7 = vld [vmem:[#allocation6 + $0x104] sm:$0xf] }
 0x198   :  { %4341 = vmatpush.bf16.msra.mxu1 %v6673_v56  ;;  %v7911_v56 = vld [vmem:[#allocation6 + $0x50c] sm:$0xf0]  ;;  %v6757_v1 = vor.u32 %v7841_v60, %v6754_v2  ;;  %v7264_v60 = vld [vmem:[#allocation6 + $0x6e0] sm:$0xf]  ;;  %v7901_v47 = vld [vmem:[#allocation6 + $0x4c4] sm:$0xf] }
 0x199   :  { %4366 = vmatpush.bf16.msrb.mxu2 %v6945_v50  ;;  %v7805_v50 = vld [vmem:[#allocation6 + $0x1c4] sm:$0xf]  ;;  %v7025_v58 = vor.u32 %v7911_v56, %v7024_v48  ;;  %v7971_v2 = vld [vmem:[#allocation6 + $0x6ec] sm:$0xf0] }
 0x19a   :  { %4354 = vmatpush.bf16.msra.mxu3 %v6801_v57  ;;  %v2692_v57 = vadd.f32 %v8384_v31, %v2679_v19  ;;  %v6613_v63 = vor.u32 %v7805_v50, %v6610_v51  ;;  %v6402_v19 = vld [vmem:[#allocation6 + $0x30] sm:$0xf0] }
 0x19b   :  { %4379 = vmatpush.bf16.msra.mxu0 %v7073_v13  ;;  %v6578_v13 = vld [vmem:[#allocation6 + $0x190] sm:$0xf0]  ;;  %v6405_v50 = vor.u32 %v7753_v61, %v6402_v19  ;;  %v7929_v61 = vld [vmem:[#allocation6 + $0x5a4] sm:$0xf] }
 0x19c   :  { %4342 = vmatpush.bf16.msra.mxu1 %v6657_v5  ;;  %v7765_v5 = vld [vmem:[#allocation6 + $0x84] sm:$0xf]  ;;  %v2705_v31 = vadd.f32 %v8392_v62, %v2692_v57  ;;  %v6581_v62 = vor.u32 %v7797_v10, %v6578_v13  ;;  %v6530_v51 = vld [vmem:[#allocation6 + $0x130] sm:$0xf0]  ;;  %v7967_v13 = vld [vmem:[#allocation6 + $0x6cc] sm:$0xf0] }
 0x19d   :  { %4367 = vmatpush.bf16.msrb.mxu2 %v6929_v23  ;;  %v6594_v23 = vld [vmem:[#allocation6 + $0x1b0] sm:$0xf0]  ;;  %v6453_v9 = vor.u32 %v7765_v5, %v6450_v6  ;;  %v6533_v6 = vor.u32 %v7785_v3, %v6530_v51  ;;  %v7937_v10 = vld [vmem:[#allocation6 + $0x5e4] sm:$0xf] }
 0x19e   :  { %4355 = vmatpush.bf16.msra.mxu3 %v6785_v33  ;;  %v6597_v33 = vor.u32 %v7801_v0, %v6594_v23  ;;  %v2718_v14 = vadd.f32 %v8387_v46, %v2705_v31  ;;  %v6565_v46 = vor.u32 %v7793_v20, %v6562_v25  ;;  %v6386_v57 = vld [vmem:[#allocation6 + $0x10] sm:$0xf0]  ;;  %v7821_v23 = vld [vmem:[#allocation6 + $0x244] sm:$0xf]  ;;  %v7141_v25 = vor.u32 %v7937_v10, %v7138_v37  ;;  %v7947_v37 = vld [vmem:[#allocation6 + $0x62c] sm:$0xf0] }
 0x19f   :  { %4380 = vmatpush.bf16.msra.mxu0 %v7057_v30  ;;  %v2758_v15 = vpop.f32.mrf.mxu2  ;;  %v7829_v30 = vld [vmem:[#allocation6 + $0x284] sm:$0xf]  ;;  %v6674_v5 = vld [vmem:[#allocation6 + $0x250] sm:$0xf0]  ;;  %v6389_v31 = vor.u32 %v7749_v54, %v6386_v57  ;;  %v7200_v54 = vld [vmem:[#allocation6 + $0x660] sm:$0xf] }
 0x1a0   :  { %4343 = vmatpush.bf16.msra.mxu1 %v6641_v27  ;;  %v2743_v53 = vpop.f32.mrf.mxu1  ;;  %v6418_v27 = vld [vmem:[#allocation6 + $0x50] sm:$0xf0]  ;;  %v7893_v3 = vld [vmem:[#allocation6 + $0x484] sm:$0xf] }
 0x1a1   :  { %4368 = vmatpush.bf16.msrb.mxu2 %v6913_v22  ;;  %v6725_v22 = vor.u32 %v7833_v44, %v6722_v4  ;;  %v6421_v32 = vor.u32 %v7757_v26, %v6418_v27  ;;  %v7817_v44 = vld [vmem:[#allocation6 + $0x224] sm:$0xf]  ;;  %v6658_v4 = vld [vmem:[#allocation6 + $0x230] sm:$0xf0]  ;;  %v7963_v26 = vld [vmem:[#allocation6 + $0x6ac] sm:$0xf0] }
 0x1a2   :  { %4356 = vmatpush.bf16.msra.mxu3 %v6769_v45  ;;  %v6661_v20 = vor.u32 %v7817_v44, %v6658_v4  ;;  %v7122_v27 = vld [vmem:[#allocation6 + $0x5d0] sm:$0xf0]  ;;  %v7925_v51 = vld [vmem:[#allocation6 + $0x584] sm:$0xf] }
 0x1a3   :  { %4381 = vmatpush.bf16.msra.mxu0 %v7041_v17  ;;  %4344 = vmatmul.bf16.vlgmr.msra.gmra.mxu1 %v8399_v41  ;;  %v8408_v29 = vpop.f32.mrf.mxu0  ;;  %v6690_v17 = vld [vmem:[#allocation6 + $0x270] sm:$0xf0]  ;;  %v7889_v57 = vld [vmem:[#allocation6 + $0x464] sm:$0xf] }
 0x1a4   :  { %v2730_v24 = vpop.f32.mrf.mxu3  ;;  %v7106_v19 = vld [vmem:[#allocation6 + $0x5b0] sm:$0xf0] }
 0x1a5   :  { %4357 = vmatmul.bf16.vlgmr.msra.gmra.mxu3 %v8401_v43  ;;  %4369 = vmatpush.bf16.msrb.mxu2 %v6897_v40  ;;  %v2731_v45 = vadd.f32 %v2730_v24, %v2718_v14  ;;  %v7825_v40 = vld [vmem:[#allocation6 + $0x264] sm:$0xf]  ;;  %v6994_v14 = vld [vmem:[#allocation6 + $0x4d0] sm:$0xf0] }
 0x1a6   :  { %4401 = vmatpush.bf16.msrb.mxu3 %v6501_v18  ;;  %v6706_v18 = vld [vmem:[#allocation6 + $0x290] sm:$0xf0]  ;;  %v6693_v48 = vor.u32 %v7825_v40, %v6690_v17  ;;  %v7933_v24 = vld [vmem:[#allocation6 + $0x5c4] sm:$0xf]  ;;  %v7959_v17 = vld [vmem:[#allocation6 + $0x68c] sm:$0xf0] }
 0x1a7   :  { %4382 = vmatpush.bf16.msra.mxu0 %v7025_v58  ;;  %v2744_v21 = vadd.f32 %v2743_v53, %v2731_v45  ;;  %v6709_v36 = vor.u32 %v7829_v30, %v6706_v18  ;;  %v7232_v53 = vld [vmem:[#allocation6 + $0x6a0] sm:$0xf]  ;;  %v7897_v45 = vld [vmem:[#allocation6 + $0x4a4] sm:$0xf]  ;;  %v6962_v40 = vld [vmem:[#allocation6 + $0x490] sm:$0xf0] }
 0x1a8   :  { %v2745_v58 = vpop.f32.mrf.mxu1  ;;  %v7233_v30 = vor.u32 %v7963_v26, %v7232_v53  ;;  %v7813_v18 = vld [vmem:[#allocation6 + $0x204] sm:$0xf]  ;;  %v7152_v53 = vld [vmem:[#allocation6 + $0x600] sm:$0xf]  ;;  %v7943_v26 = vld [vmem:[#allocation6 + $0x60c] sm:$0xf0] }
 0x1a9   :  { %4414 = vmatpush.bf16.msra.mxu2 %v6629_v11  ;;  %v2757_v39 = vadd.f32 %v2756_v59, %v2744_v21  ;;  %v6642_v21 = vld [vmem:[#allocation6 + $0x210] sm:$0xf0] }
 0x1aa   :  { %4402 = vmatpush.bf16.msrb.mxu3 %v6485_v42  ;;  %v6549_v42 = vor.u32 %v7789_v35, %v6546_v38  ;;  %v6645_v35 = vor.u32 %v7813_v18, %v6642_v21  ;;  %v6946_v58 = vld [vmem:[#allocation6 + $0x470] sm:$0xf0]  ;;  %v7873_v18 = vld [vmem:[#allocation6 + $0x3e4] sm:$0xf] }
 0x1ab   :  { %4427 = vmatpush.bf16.msrb.mxu0 %v6757_v1  ;;  %v2946_v11 = vmax.f32 %v2757_v39, 0.0  ;;  %v8410_v55 = vpop.f32.mrf.mxu2  ;;  %v2771_v0 = vpop.f32.mrf.mxu0  ;;  %v7265_v1 = vor.u32 %v7971_v2, %v7264_v60  ;;  %v7216_v39 = vld [vmem:[#allocation6 + $0x680] sm:$0xf]  ;;  %v6882_v21 = vld [vmem:[#allocation6 + $0x3f0] sm:$0xf0] }
 0x1ac   :  { %v2732_v56 = vpop.f32.mrf.mxu3  ;;  %v7921_v0 = vld [vmem:[#allocation6 + $0x564] sm:$0xf] }
 0x1ad   :  { %4415 = vmatpush.bf16.msra.mxu2 %v6613_v63  ;;  %v8412_v59 = vpack.c.bf16 %v2946_v11, %v2946_v11  ;;  %v7905_v63 = vld [vmem:[#allocation6 + $0x4e4] sm:$0xf]  ;;  %4388 = vmatpush.bf16.msrb.mxu1 %v7265_v1  ;;  %v7217_v11 = vor.u32 %v7959_v17, %v7216_v39  ;;  %v7090_v56 = vld [vmem:[#allocation6 + $0x590] sm:$0xf0]  ;;  %v7951_v1 = vld [vmem:[#allocation6 + $0x64c] sm:$0xf0] }
 0x1ae   :  { %4403 = vmatpush.bf16.msrb.mxu3 %v6469_v52  ;;  %v7010_v52 = vld [vmem:[#allocation6 + $0x4f0] sm:$0xf0] }
 0x1af   :  { %4428 = vmatpush.bf16.msrb.mxu0 %v6741_v12  ;;  %4370 = vmatmul.bf16.vlgmr.msrb.gmra.mxu2 %v8412_v59  ;;  %v7248_v12 = vld [vmem:[#allocation6 + $0x6c0] sm:$0xf] }
 0x1b0   :  { %v7249_v15 = vor.u32 %v7967_v13, %v7248_v12  ;;  %v7917_v12 = vld [vmem:[#allocation6 + $0x544] sm:$0xf]  ;;  %v7168_v13 = vld [vmem:[#allocation6 + $0x620] sm:$0xf] }
 0x1b1   :  { %4416 = vmatpush.bf16.msra.mxu2 %v6597_v33  ;;  %v6677_v33 = vor.u32 %v7821_v23, %v6674_v5  ;;  %v7169_v44 = vor.u32 %v7947_v37, %v7168_v13  ;;  %v7965_v13 = vld [vmem:[#allocation6 + $0x6c4] sm:$0xf] }
 0x1b2   :  { %4404 = vmatpush.bf16.msrb.mxu3 %v6453_v9  ;;  %v7013_v9 = vor.u32 %v7905_v63, %v7010_v52  ;;  %4389 = vmatpush.bf16.msrb.mxu1 %v7249_v15  ;;  %v7093_v63 = vor.u32 %v7925_v51, %v7090_v56  ;;  %v6949_v52 = vor.u32 %v7889_v57, %v6946_v58  ;;  %v6914_v15 = vld [vmem:[#allocation6 + $0x430] sm:$0xf0]  ;;  %v6616_v51 = vld [vmem:[#allocation6 + $0x1c8] sm:$0xf] }
 0x1b3   :  { %4429 = vmatpush.bf16.msrb.mxu0 %v6725_v22  ;;  %v6997_v22 = vor.u32 %v7901_v47, %v6994_v14  ;;  %v7058_v47 = vld [vmem:[#allocation6 + $0x550] sm:$0xf0]  ;;  %v7881_v14 = vld [vmem:[#allocation6 + $0x424] sm:$0xf] }
 0x1b5   :  { %4417 = vmatpush.bf16.msra.mxu2 %v6581_v62  ;;  %v6517_v62 = vor.u32 %v7781_v7, %v6514_v8  ;;  %v6930_v7 = vld [vmem:[#allocation6 + $0x450] sm:$0xf0] }
 0x1b6   :  { %4405 = vmatpush.bf16.msrb.mxu3 %v6437_v16  ;;  %v2784_v16 = vpop.f32.mrf.mxu2  ;;  %4390 = vmatpush.bf16.msrb.mxu1 %v7233_v30  ;;  %v7153_v30 = vor.u32 %v7943_v26, %v7152_v53  ;;  %v7857_v53 = vld [vmem:[#allocation6 + $0x364] sm:$0xf]  ;;  %v6818_v26 = vld [vmem:[#allocation6 + $0x370] sm:$0xf0] }
 0x1b7   :  { %4430 = vmatpush.bf16.msrb.mxu0 %v6709_v36  ;;  %v7125_v36 = vor.u32 %v7933_v24, %v7122_v27  ;;  %v7042_v16 = vld [vmem:[#allocation6 + $0x530] sm:$0xf0]  ;;  %v7877_v24 = vld [vmem:[#allocation6 + $0x404] sm:$0xf] }
 0x1b9   :  { %4418 = vmatpush.bf16.msra.mxu2 %v6565_v46  ;;  %v6978_v46 = vld [vmem:[#allocation6 + $0x4b0] sm:$0xf0] }
 0x1ba   :  { %4406 = vmatpush.bf16.msrb.mxu3 %v6421_v32  ;;  %v528_v32 = vperm.slane %v8368_v28, 5  ;;  %v6981_v38 = vor.u32 %v7897_v45, %v6978_v46  ;;  %v6965_v28 = vor.u32 %v7893_v3, %v6962_v40  ;;  %4391 = vmatpush.bf16.msrb.mxu1 %v7217_v11  ;;  %v6898_v45 = vld [vmem:[#allocation6 + $0x410] sm:$0xf0]  ;;  %v7909_v3 = vld [vmem:[#allocation6 + $0x504] sm:$0xf] }
 0x1bb   :  { %4431 = vmatpush.bf16.msrb.mxu0 %v6693_v48  ;;  %v7955_v48 = vld [vmem:[#allocation6 + $0x66c] sm:$0xf0]  ;;  %v6901_v39 = vor.u32 %v7877_v24, %v6898_v45  ;;  %v7026_v40 = vld [vmem:[#allocation6 + $0x510] sm:$0xf0]  ;;  %v6760_v11 = vld [vmem:[#allocation6 + $0x2e8] sm:$0xf] }
 0x1bc   :  { %v7201_v60 = vor.u32 %v7955_v48, %v7200_v54  ;;  %v7808_v54 = vld [vmem:[#allocation6 + $0x1d4] sm:$0xf0]  ;;  %v7029_v58 = vor.u32 %v7909_v3, %v7026_v40  ;;  %v6712_v24 = vld [vmem:[#allocation6 + $0x288] sm:$0xf] }
 0x1bd   :  { %4419 = vmatpush.bf16.msra.mxu2 %v6549_v42  ;;  %v2770_v42 = vadd.f32 %v8408_v29, %v528_v32  ;;  %v7184_v29 = vld [vmem:[#allocation6 + $0x640] sm:$0xf]  ;;  %v6632_v32 = vld [vmem:[#allocation6 + $0x1e8] sm:$0xf]  ;;  %v7832_v45 = vld [vmem:[#allocation6 + $0x294] sm:$0xf0] }
 0x1be   :  { %4407 = vmatpush.bf16.msrb.mxu3 %v6405_v50  ;;  %v7109_v50 = vor.u32 %v7929_v61, %v7106_v19  ;;  %4392 = vmatpush.bf16.msrb.mxu1 %v7201_v60  ;;  %v7185_v8 = vor.u32 %v7951_v1, %v7184_v29  ;;  %v6850_v29 = vld [vmem:[#allocation6 + $0x3b0] sm:$0xf0] }
 0x1bf   :  { %4432 = vmatpush.bf16.msrb.mxu0 %v6677_v33  ;;  %v2783_v2 = vadd.f32 %v8410_v55, %v2770_v42  ;;  %v7869_v42 = vld [vmem:[#allocation6 + $0x3c4] sm:$0xf] }
 0x1c0   :  { %v2808_v5 = vpop.f32.mrf.mxu1 }
 0x1c1   :  { %4420 = vmatpush.bf16.msra.mxu2 %v6533_v6  ;;  %v7074_v6 = vld [vmem:[#allocation6 + $0x570] sm:$0xf0] }
 0x1c2   :  { %4408 = vmatpush.bf16.msrb.mxu3 %v6389_v31  ;;  %v7885_v31 = vld [vmem:[#allocation6 + $0x444] sm:$0xf]  ;;  %v7077_v55 = vor.u32 %v7921_v0, %v7074_v6  ;;  %4393 = vmatpush.bf16.msrb.mxu1 %v7185_v8  ;;  %v7266_v6 = vld [vmem:[#allocation6 + $0x6f0] sm:$0xf0]  ;;  %v7804_v8 = vld [vmem:[#allocation6 + $0x1b4] sm:$0xf0] }
 0x1c3   :  { %4433 = vmatpush.bf16.msrb.mxu0 %v6661_v20  ;;  %v2821_v33 = vpop.f32.mrf.mxu0  ;;  %v6933_v10 = vor.u32 %v7885_v31, %v6930_v7  ;;  %v7865_v0 = vld [vmem:[#allocation6 + $0x3a4] sm:$0xf]  ;;  %v6600_v7 = vld [vmem:[#allocation6 + $0x1a8] sm:$0xf] }
 0x1c4   :  { %v2795_v23 = vpop.f32.mrf.mxu3  ;;  %v6853_v31 = vor.u32 %v7865_v0, %v6850_v29  ;;  %v6536_v0 = vld [vmem:[#allocation6 + $0x128] sm:$0xf]  ;;  %v7788_v29 = vld [vmem:[#allocation6 + $0x134] sm:$0xf0] }
 0x1c5   :  { %4409 = vmatmul.bf16.vlgmr.msrb.gmra.mxu3 %v8377_v34  ;;  %4421 = vmatpush.bf16.msra.mxu2 %v6517_v62  ;;  %v7913_v62 = vld [vmem:[#allocation6 + $0x524] sm:$0xf] }
 0x1c6   :  { %4453 = vmatpush.bf16.msra.mxu3 %v7013_v9  ;;  %v2796_v9 = vadd.f32 %v2795_v23, %v2783_v2  ;;  %4394 = vmatpush.bf16.msrb.mxu1 %v7169_v44  ;;  %v7045_v19 = vor.u32 %v7913_v62, %v7042_v16  ;;  %v7840_v23 = vld [vmem:[#allocation6 + $0x2d4] sm:$0xf0]  ;;  %v6834_v44 = vld [vmem:[#allocation6 + $0x390] sm:$0xf0] }
 0x1c7   :  { %4434 = vmatpush.bf16.msrb.mxu0 %v6645_v35  ;;  %v7812_v35 = vld [vmem:[#allocation6 + $0x1f4] sm:$0xf0] }
 0x1c8   :  { %4422 = vmatmul.bf16.vlgmr.msra.gmra.mxu2 %v8379_v49  ;;  %v2809_v20 = vadd.f32 %v2808_v5, %v2796_v9  ;;  %v2810_v46 = vpop.f32.mrf.mxu1  ;;  %v6633_v17 = vor.u32 %v7812_v35, %v6632_v32  ;;  %v7969_v5 = vld [vmem:[#allocation6 + $0x6e4] sm:$0xf]  ;;  %v7800_v62 = vld [vmem:[#allocation6 + $0x194] sm:$0xf0] }
 0x1c9   :  { %4466 = vmatpush.bf16.msrb.mxu2 %v7141_v25  ;;  %v7061_v25 = vor.u32 %v7917_v12, %v7058_v47  ;;  %v7836_v12 = vld [vmem:[#allocation6 + $0x2b4] sm:$0xf0]  ;;  %v6601_v47 = vor.u32 %v7804_v8, %v6600_v7  ;;  %v7961_v46 = vld [vmem:[#allocation6 + $0x6a4] sm:$0xf]  ;;  %v6664_v7 = vld [vmem:[#allocation6 + $0x228] sm:$0xf] }
 0x1ca   :  { %4454 = vmatpush.bf16.msra.mxu3 %v6997_v22  ;;  %v6917_v22 = vor.u32 %v7881_v14, %v6914_v15  ;;  %v2822_v61 = vadd.f32 %v2821_v33, %v2809_v20  ;;  %4395 = vmatpush.bf16.msrb.mxu1 %v7153_v30  ;;  %v7250_v14 = vld [vmem:[#allocation6 + $0x6d0] sm:$0xf0]  ;;  %v7861_v15 = vld [vmem:[#allocation6 + $0x384] sm:$0xf]  ;;  %v7796_v32 = vld [vmem:[#allocation6 + $0x174] sm:$0xf0] }
 0x1cb   :  { %v2834_v4 = vpop.f32.mrf.mxu2  ;;  %v6837_v16 = vor.u32 %v7861_v15, %v6834_v44  ;;  %v7234_v30 = vld [vmem:[#allocation6 + $0x6b0] sm:$0xf0]  ;;  %v7845_v8 = vld [vmem:[#allocation6 + $0x304] sm:$0xf]  ;;  %v6520_v15 = vld [vmem:[#allocation6 + $0x108] sm:$0xf] }
 0x1cc   :  { %v2797_v27 = vpop.f32.mrf.mxu3  ;;  %v2835_v57 = vadd.f32 %v2834_v4, %v2822_v61  ;;  %v6584_v4 = vld [vmem:[#allocation6 + $0x188] sm:$0xf]  ;;  %v7784_v44 = vld [vmem:[#allocation6 + $0x114] sm:$0xf0] }
 0x1cd   :  { %4467 = vmatpush.bf16.msrb.mxu2 %v7125_v36  ;;  %v2823_v36 = vpop.f32.mrf.mxu0  ;;  %v6585_v27 = vor.u32 %v7800_v62, %v6584_v4  ;;  %v6696_v61 = vld [vmem:[#allocation6 + $0x268] sm:$0xf]  ;;  %v7940_v62 = vld [vmem:[#allocation6 + $0x5f4] sm:$0xf0] }
 0x1ce   :  { %4455 = vmatpush.bf16.msra.mxu3 %v6981_v38  ;;  %v6885_v38 = vor.u32 %v7873_v18, %v6882_v21  ;;  %v6821_v18 = vor.u32 %v7857_v53, %v6818_v26  ;;  %v6568_v21 = vld [vmem:[#allocation6 + $0x168] sm:$0xf]  ;;  %v6713_v36 = vor.u32 %v7832_v45, %v6712_v24  ;;  %v7816_v24 = vld [vmem:[#allocation6 + $0x214] sm:$0xf0]  ;;  %v7945_v53 = vld [vmem:[#allocation6 + $0x624] sm:$0xf] }
 0x1cf   :  { %v6569_v40 = vor.u32 %v7796_v32, %v6568_v21  ;;  %v7144_v4 = vld [vmem:[#allocation6 + $0x5e8] sm:$0xf]  ;;  %v7936_v32 = vld [vmem:[#allocation6 + $0x5d4] sm:$0xf0] }
 0x1d0   :  { %4440 = vmatpush.bf16.msra.mxu1 %v6885_v38  ;;  %v7237_v38 = vor.u32 %v7961_v46, %v7234_v30  ;;  %v7145_v26 = vor.u32 %v7940_v62, %v7144_v4  ;;  %v7272_v45 = vld [vmem:[#allocation6 + $0x6e8] sm:$0xf]  ;;  %v7972_v46 = vld [vmem:[#allocation6 + $0x6f4] sm:$0xf0] }
 0x1d1   :  { %4468 = vmatpush.bf16.msrb.mxu2 %v7109_v50  ;;  %v6866_v50 = vld [vmem:[#allocation6 + $0x3d0] sm:$0xf0]  ;;  %v8019_v30 = vld [vmem:[#allocation4] sm:$0xff]  ;;  %v7128_v21 = vld [vmem:[#allocation6 + $0x5c8] sm:$0xf] }
 0x1d2   :  { %4456 = vmatpush.bf16.msra.mxu3 %v6965_v28  ;;  %v7844_v28 = vld [vmem:[#allocation6 + $0x2f4] sm:$0xf0]  ;;  %v6869_v48 = vor.u32 %v7869_v42, %v6866_v50  ;;  %v7218_v42 = vld [vmem:[#allocation6 + $0x690] sm:$0xf0]  ;;  %v7208_v4 = vld [vmem:[#allocation6 + $0x668] sm:$0xf] }
 0x1d3   :  { %v2836_v56 = vpop.f32.mrf.mxu2  ;;  %v6761_v2 = vor.u32 %v7844_v28, %v6760_v11  ;;  %v7957_v11 = vld [vmem:[#allocation6 + $0x684] sm:$0xf]  ;;  %v6552_v28 = vld [vmem:[#allocation6 + $0x148] sm:$0xf] }
 0x1d4   :  { %v2847_v60 = vpop.f32.mrf.mxu3  ;;  %4441 = vmatpush.bf16.msra.mxu1 %v6869_v48  ;;  %v7221_v48 = vor.u32 %v7957_v11, %v7218_v42  ;;  %v6680_v56 = vld [vmem:[#allocation6 + $0x248] sm:$0xf]  ;;  %v7129_v42 = vor.u32 %v7936_v32, %v7128_v21 }
 0x1d5   :  { %4469 = vmatpush.bf16.msrb.mxu2 %v7093_v63  ;;  %v6617_v63 = vor.u32 %v7808_v54, %v6616_v51  ;;  %v2848_v1 = vadd.f32 %v2847_v60, %v2835_v57  ;;  %v7792_v51 = vld [vmem:[#allocation6 + $0x154] sm:$0xf0] }
 0x1d6   :  { %4457 = vmatpush.bf16.msra.mxu3 %v6949_v52  ;;  %v6744_v52 = vld [vmem:[#allocation6 + $0x2c8] sm:$0xf]  ;;  %v7824_v57 = vld [vmem:[#allocation6 + $0x254] sm:$0xf0]  ;;  %v6553_v60 = vor.u32 %v7792_v51, %v6552_v28 }
 0x1d7   :  { %v2947_v33 = vmax.f32 %v2848_v1, 0.0  ;;  %v6745_v9 = vor.u32 %v7840_v23, %v6744_v52  ;;  %v6786_v52 = vld [vmem:[#allocation6 + $0x330] sm:$0xf0]  ;;  %v7968_v28 = vld [vmem:[#allocation6 + $0x6d4] sm:$0xf0] }
 0x1d8   :  { %4442 = vmatpush.bf16.msra.mxu1 %v6853_v31  ;;  %v6888_v51 = vld [vmem:[#allocation6 + $0x3e8] sm:$0xf] }
 0x1d9   :  { %4470 = vmatpush.bf16.msrb.mxu2 %v7077_v55  ;;  %v7269_v55 = vor.u32 %v7969_v5, %v7266_v6  ;;  %v8421_v37 = vpack.c.bf16 %v2947_v33, %v2947_v33  ;;  %v6681_v6 = vor.u32 %v7824_v57, %v6680_v56  ;;  %v6770_v33 = vld [vmem:[#allocation6 + $0x310] sm:$0xf0]  ;;  %v7112_v56 = vld [vmem:[#allocation6 + $0x5a8] sm:$0xf]  ;;  %v7932_v57 = vld [vmem:[#allocation6 + $0x5b4] sm:$0xf0] }
 0x1da   :  { %4458 = vmatpush.bf16.msra.mxu3 %v6933_v10  ;;  %v6728_v10 = vld [vmem:[#allocation6 + $0x2a8] sm:$0xf] }
 0x1db   :  { %4383 = vmatmul.bf16.vlgmr.msra.gmra.mxu0 %v8421_v37  ;;  %v6729_v20 = vor.u32 %v7836_v12, %v6728_v10  ;;  %v7820_v10 = vld [vmem:[#allocation6 + $0x234] sm:$0xf0]  ;;  %v7949_v12 = vld [vmem:[#allocation6 + $0x644] sm:$0xf] }
 0x1dc   :  { %4479 = vmatpush.bf16.msra.mxu0 %v7269_v55  ;;  %4443 = vmatpush.bf16.msra.mxu1 %v6837_v16  ;;  %v6537_v55 = vor.u32 %v7788_v29, %v6536_v0  ;;  %v6665_v16 = vor.u32 %v7820_v10, %v6664_v7  ;;  %v7964_v0 = vld [vmem:[#allocation6 + $0x6b4] sm:$0xf0]  ;;  %v6872_v29 = vld [vmem:[#allocation6 + $0x3c8] sm:$0xf] }
 0x1dd   :  { %4471 = vmatpush.bf16.msrb.mxu2 %v7061_v25  ;;  %v7253_v25 = vor.u32 %v7965_v13, %v7250_v14  ;;  %v7186_v13 = vld [vmem:[#allocation6 + $0x650] sm:$0xf0]  ;;  %v6773_v14 = vor.u32 %v7845_v8, %v6770_v33  ;;  %v6856_v10 = vld [vmem:[#allocation6 + $0x3a8] sm:$0xf] }
 0x1de   :  { %4459 = vmatpush.bf16.msra.mxu3 %v6917_v22  ;;  %v2849_v22 = vpop.f32.mrf.mxu3 }
 0x1df   :  { %v6648_v22 = vld [vmem:[#allocation6 + $0x208] sm:$0xf] }
 0x1e0   :  { %v8425_v35 = vpop.f32.mrf.mxu1  ;;  %4480 = vmatpush.bf16.msra.mxu0 %v7253_v25  ;;  %4444 = vmatpush.bf16.msra.mxu1 %v6821_v18  ;;  %v6521_v25 = vor.u32 %v7784_v44, %v6520_v15  ;;  %v529_v18 = vperm.slane %v8019_v30, 6  ;;  %v7924_v15 = vld [vmem:[#allocation6 + $0x574] sm:$0xf0] }
 0x1e1   :  { %4472 = vmatpush.bf16.msrb.mxu2 %v7045_v19  ;;  %v7853_v19 = vld [vmem:[#allocation6 + $0x344] sm:$0xf] }
 0x1e2   :  { %4460 = vmatpush.bf16.msra.mxu3 %v6901_v39  ;;  %v6802_v39 = vld [vmem:[#allocation6 + $0x350] sm:$0xf0] }
 0x1e3   :  { %v8427_v3 = vpop.f32.mrf.mxu0  ;;  %v6805_v50 = vor.u32 %v7853_v19, %v6802_v39  ;;  %v7273_v39 = vor.u32 %v7972_v46, %v7272_v45 }
 0x1e4   :  { %4481 = vmatpush.bf16.msra.mxu0 %v7237_v38  ;;  %v6649_v38 = vor.u32 %v7816_v24, %v6648_v22  ;;  %v6840_v22 = vld [vmem:[#allocation6 + $0x388] sm:$0xf] }
 0x1e5   :  { %4461 = vmatmul.bf16.vlgmr.msra.gmra.mxu3 %v8412_v59  ;;  %4473 = vmatpush.bf16.msrb.mxu2 %v7029_v58  ;;  %v7849_v58 = vld [vmem:[#allocation6 + $0x324] sm:$0xf] }
 0x1e6   :  { %4505 = vmatpush.bf16.msrb.mxu3 %v6633_v17  ;;  %v7828_v17 = vld [vmem:[#allocation6 + $0x274] sm:$0xf0]  ;;  %4445 = vmatpush.bf16.msra.mxu1 %v6805_v50  ;;  %v6789_v23 = vor.u32 %v7849_v58, %v6786_v52  ;;  %v7256_v50 = vld [vmem:[#allocation6 + $0x6c8] sm:$0xf] }
 0x1e7   :  { %v6697_v54 = vor.u32 %v7828_v17, %v6696_v61  ;;  %v7154_v17 = vld [vmem:[#allocation6 + $0x610] sm:$0xf0]  ;;  %v7240_v52 = vld [vmem:[#allocation6 + $0x6a8] sm:$0xf] }
 0x1e8   :  { %4474 = vmatmul.bf16.vlgmr.msrb.gmra.mxu2 %v8421_v37  ;;  %v2862_v1 = vpop.f32.mrf.mxu1  ;;  %4482 = vmatpush.bf16.msra.mxu0 %v7221_v48  ;;  %v8429_v5 = vpop.f32.mrf.mxu3  ;;  %v7876_v48 = vld [vmem:[#allocation6 + $0x3f4] sm:$0xf0]  ;;  %v7241_v7 = vor.u32 %v7964_v0, %v7240_v52  ;;  %v7032_v0 = vld [vmem:[#allocation6 + $0x508] sm:$0xf] }
 0x1e9   :  { %4518 = vmatpush.bf16.msra.mxu2 %v6761_v2  ;;  %v7953_v2 = vld [vmem:[#allocation6 + $0x664] sm:$0xf] }
 0x1ea   :  { %4506 = vmatpush.bf16.msrb.mxu3 %v6617_v63  ;;  %v7202_v63 = vld [vmem:[#allocation6 + $0x670] sm:$0xf0]  ;;  %4446 = vmatpush.bf16.msra.mxu1 %v6789_v23  ;;  %v7096_v23 = vld [vmem:[#allocation6 + $0x588] sm:$0xf] }
 0x1eb   :  { %v7205_v31 = vor.u32 %v7953_v2, %v7202_v63  ;;  %4435 = vmatmul.bf16.vlgmr.msrb.gmra.mxu0 %v8399_v41  ;;  %v6889_v2 = vor.u32 %v7876_v48, %v6888_v51  ;;  %v7113_v63 = vor.u32 %v7932_v57, %v7112_v56  ;;  %v6504_v51 = vld [vmem:[#allocation6 + $0xe8] sm:$0xf] }
 0x1ec   :  { %v7176_v48 = vld [vmem:[#allocation6 + $0x628] sm:$0xf] }
 0x1ed   :  { %4519 = vmatpush.bf16.msra.mxu2 %v6745_v9  ;;  %v2888_v9 = vpop.f32.mrf.mxu0  ;;  %4483 = vmatpush.bf16.msra.mxu0 %v7205_v31 }
 0x1ee   :  { %4507 = vmatpush.bf16.msrb.mxu3 %v6601_v47  ;;  %v8431_v47 = vpop.f32.mrf.mxu2  ;;  %4447 = vmatpush.bf16.msra.mxu1 %v6773_v14  ;;  %v7224_v9 = vld [vmem:[#allocation6 + $0x688] sm:$0xf] }
 0x1ef   :  { %v7080_v14 = vld [vmem:[#allocation6 + $0x568] sm:$0xf] }
 0x1f1   :  { %4520 = vmatpush.bf16.msra.mxu2 %v6729_v20  ;;  %v7189_v20 = vor.u32 %v7949_v12, %v7186_v13 }
 0x1f2   :  { %4508 = vmatpush.bf16.msrb.mxu3 %v6585_v27  ;;  %v7170_v27 = vld [vmem:[#allocation6 + $0x630] sm:$0xf0] }
 0x1f3   :  { %4484 = vmatpush.bf16.msra.mxu0 %v7189_v20  ;;  %v7173_v19 = vor.u32 %v7945_v53, %v7170_v27  ;;  %v7956_v20 = vld [vmem:[#allocation6 + $0x674] sm:$0xf0] }
 0x1f4   :  { %v7864_v53 = vld [vmem:[#allocation6 + $0x394] sm:$0xf0]  ;;  %v7209_v46 = vor.u32 %v7956_v20, %v7208_v4  ;;  %v6890_v4 = vld [vmem:[#allocation6 + $0x3f8] sm:$0xf0] }
 0x1f5   :  { %4521 = vmatpush.bf16.msra.mxu2 %v6713_v36  ;;  %v2875_v36 = vpop.f32.mrf.mxu3  ;;  %v8434_v61 = vpop.f32.mrf.mxu0  ;;  %v6841_v21 = vor.u32 %v7864_v53, %v6840_v22  ;;  %v6746_v20 = vld [vmem:[#allocation6 + $0x2d8] sm:$0xf0]  ;;  %v6472_v53 = vld [vmem:[#allocation6 + $0xa8] sm:$0xf] }
 0x1f6   :  { %4509 = vmatpush.bf16.msrb.mxu3 %v6569_v40  ;;  %v7941_v40 = vld [vmem:[#allocation6 + $0x604] sm:$0xf]  ;;  %v2901_v11 = vpop.f32.mrf.mxu2  ;;  %v7192_v36 = vld [vmem:[#allocation6 + $0x648] sm:$0xf] }
 0x1f7   :  { %4485 = vmatpush.bf16.msra.mxu0 %v7173_v19  ;;  %v7157_v58 = vor.u32 %v7941_v40, %v7154_v17  ;;  %v6824_v19 = vld [vmem:[#allocation6 + $0x368] sm:$0xf]  ;;  %v7916_v11 = vld [vmem:[#allocation6 + $0x534] sm:$0xf0] }
 0x1f8   :  { %v7048_v17 = vld [vmem:[#allocation6 + $0x528] sm:$0xf] }
 0x1f9   :  { %4522 = vmatpush.bf16.msra.mxu2 %v6697_v54  ;;  %v2861_v54 = vadd.f32 %v8425_v35, %v529_v18  ;;  %v7872_v35 = vld [vmem:[#allocation6 + $0x3d4] sm:$0xf0] }
 0x1fa   :  { %4510 = vmatpush.bf16.msrb.mxu3 %v6553_v60  ;;  %v7257_v60 = vor.u32 %v7968_v28, %v7256_v50  ;;  %v6873_v8 = vor.u32 %v7872_v35, %v6872_v29  ;;  %v7912_v29 = vld [vmem:[#allocation6 + $0x514] sm:$0xf0]  ;;  %v7842_v35 = vld [vmem:[#allocation6 + $0x2ec] sm:$0xf] }
 0x1fb   :  { %v2874_v1 = vadd.f32 %v8429_v5, %v2861_v54  ;;  %4486 = vmatpush.bf16.msra.mxu0 %v7157_v58  ;;  %v7868_v5 = vld [vmem:[#allocation6 + $0x3b4] sm:$0xf0]  ;;  %v7049_v58 = vor.u32 %v7916_v11, %v7048_v17 }
 0x1fc   :  { %v6857_v62 = vor.u32 %v7868_v5, %v6856_v10  ;;  %v7780_v54 = vld [vmem:[#allocation6 + $0xf4] sm:$0xf0]  ;;  %v7033_v10 = vor.u32 %v7912_v29, %v7032_v0  ;;  %v6792_v5 = vld [vmem:[#allocation6 + $0x328] sm:$0xf]  ;;  %v7862_v29 = vld [vmem:[#allocation6 + $0x38c] sm:$0xf] }
 0x1fd   :  { %4523 = vmatpush.bf16.msra.mxu2 %v6681_v6  ;;  %v7928_v6 = vld [vmem:[#allocation6 + $0x594] sm:$0xf0]  ;;  %v2940_v31 = vpop.f32.mrf.mxu0  ;;  %v2887_v12 = vadd.f32 %v8427_v3, %v2874_v1  ;;  %v6505_v1 = vor.u32 %v7780_v54, %v6504_v51  ;;  %v6858_v51 = vld [vmem:[#allocation6 + $0x3b8] sm:$0xf0]  ;;  %v7774_v54 = vld [vmem:[#allocation6 + $0xcc] sm:$0xf] }
 0x1fe   :  { %4511 = vmatpush.bf16.msrb.mxu3 %v6537_v55  ;;  %v7097_v33 = vor.u32 %v7928_v6, %v7096_v23  ;;  %v7960_v55 = vld [vmem:[#allocation6 + $0x694] sm:$0xf0] }
 0x1ff   :  { %4531 = vmatpush.bf16.msrb.mxu0 %v6889_v2  ;;  %v7225_v44 = vor.u32 %v7960_v55, %v7224_v9  ;;  %v2900_v24 = vadd.f32 %v8431_v47, %v2887_v12  ;;  %v7920_v3 = vld [vmem:[#allocation6 + $0x554] sm:$0xf0]  ;;  %v6808_v2 = vld [vmem:[#allocation6 + $0x348] sm:$0xf] }
 0x200   :  { %v2912_v13 = vpop.f32.mrf.mxu1  ;;  %v7860_v47 = vld [vmem:[#allocation6 + $0x374] sm:$0xf0]  ;;  %v7160_v12 = vld [vmem:[#allocation6 + $0x608] sm:$0xf] }
 0x201   :  { %4524 = vmatpush.bf16.msra.mxu2 %v6665_v16  ;;  %v7081_v16 = vor.u32 %v7924_v15, %v7080_v14  ;;  %v2913_v27 = vadd.f32 %v2912_v13, %v2900_v24  ;;  %v6825_v57 = vor.u32 %v7860_v47, %v6824_v19  ;;  %v7944_v13 = vld [vmem:[#allocation6 + $0x614] sm:$0xf0]  ;;  %v7834_v19 = vld [vmem:[#allocation6 + $0x2ac] sm:$0xf] }
 0x202   :  { %4512 = vmatpush.bf16.msrb.mxu3 %v6521_v25  ;;  %v8441_v25 = vld [vmem:[#allocation7] sm:$0xf]  ;;  %v7852_v15 = vld [vmem:[#allocation6 + $0x334] sm:$0xf0]  ;;  %v7161_v24 = vor.u32 %v7944_v13, %v7160_v12 }
 0x203   :  { %4532 = vmatpush.bf16.msrb.mxu0 %v6873_v8  ;;  %v3182_v30 = vperm.slane %v8441_v25, 0  ;;  %v6488_v8 = vld [vmem:[#allocation6 + $0xc8] sm:$0xf]  ;;  %v7768_v47 = vld [vmem:[#allocation6 + $0x94] sm:$0xf0] }
 0x204   :  { %v7760_v12 = vld [vmem:[#allocation6 + $0x54] sm:$0xf0] }
 0x205   :  { %4513 = vmatmul.bf16.vlgmr.msrb.gmra.mxu3 %v8379_v49  ;;  %4525 = vmatpush.bf16.msra.mxu2 %v6649_v38  ;;  %v7952_v38 = vld [vmem:[#allocation6 + $0x654] sm:$0xf0] }
 0x206   :  { %4557 = vmatpush.bf16.msra.mxu3 %v7145_v26  ;;  %v7064_v26 = vld [vmem:[#allocation6 + $0x548] sm:$0xf]  ;;  %v7193_v28 = vor.u32 %v7952_v38, %v7192_v36  ;;  %v6506_v38 = vld [vmem:[#allocation6 + $0xf8] sm:$0xf0] }
 0x207   :  { %v4332_v45 = vpop.f32.mrf.mxu0  ;;  %4533 = vmatpush.bf16.msrb.mxu0 %v6857_v62  ;;  %v7065_v32 = vor.u32 %v7920_v3, %v7064_v26  ;;  %v7772_v26 = vld [vmem:[#allocation6 + $0xb4] sm:$0xf0]  ;;  %v6793_v3 = vor.u32 %v7852_v15, %v6792_v5  ;;  %v6826_v15 = vld [vmem:[#allocation6 + $0x378] sm:$0xf0] }
 0x208   :  { %4526 = vmatmul.bf16.vlgmr.msra.gmra.mxu2 %v8399_v41  ;;  %v2925_v18 = vpop.f32.mrf.mxu3  ;;  %v2914_v40 = vpop.f32.mrf.mxu1  ;;  %v6473_v36 = vor.u32 %v7772_v26, %v6472_v53 }
 0x209   :  { %4570 = vmatpush.bf16.msrb.mxu2 %v7273_v39  ;;  %v2926_v39 = vadd.f32 %v2925_v18, %v2913_v27  ;;  %v7870_v18 = vld [vmem:[#allocation6 + $0x3cc] sm:$0xf]  ;;  %v6456_v40 = vld [vmem:[#allocation6 + $0x88] sm:$0xf] }
 0x20a   :  { %4558 = vmatpush.bf16.msra.mxu3 %v7129_v42 }
 0x20b   :  { %v2939_v42 = vadd.f32 %v8434_v61, %v2926_v39  ;;  %v4319_v50 = vpop.f32.mrf.mxu2  ;;  %4534 = vmatpush.bf16.msrb.mxu0 %v6841_v21  ;;  %v6762_v61 = vld [vmem:[#allocation6 + $0x2f8] sm:$0xf0] }
 0x20c   :  { %v4320_v56 = vadd.f32 %v4319_v50, %v3182_v30  ;;  %v6765_v14 = vor.u32 %v7842_v35, %v6762_v61  ;;  %v6874_v21 = vld [vmem:[#allocation6 + $0x3d8] sm:$0xf0]  ;;  %v7770_v35 = vld [vmem:[#allocation6 + $0xac] sm:$0xf] }
 0x20d   :  { %4571 = vmatpush.bf16.msrb.mxu2 %v7257_v60  ;;  %v7948_v60 = vld [vmem:[#allocation6 + $0x634] sm:$0xf0]  ;;  %v2948_v52 = vmax.f32 %v2939_v42, 0.0  ;;  %v6730_v39 = vld [vmem:[#allocation6 + $0x2b8] sm:$0xf0]  ;;  %v6877_v11 = vor.u32 %v7870_v18, %v6874_v21 }
 0x20e   :  { %4559 = vmatpush.bf16.msra.mxu3 %v7113_v63  ;;  %v7856_v63 = vld [vmem:[#allocation6 + $0x354] sm:$0xf0]  ;;  %v8446_v23 = vadd.f32 %v4332_v45, %v4320_v56  ;;  %v6776_v45 = vld [vmem:[#allocation6 + $0x308] sm:$0xf]  ;;  %v6733_v50 = vor.u32 %v7834_v19, %v6730_v39  ;;  %v6490_v56 = vld [vmem:[#allocation6 + $0xd8] sm:$0xf0] }
 0x20f   :  { %v8448_v6 = vpack.c.bf16 %v2948_v52, %v2948_v52  ;;  %v4334_v31 = vpop.f32.mrf.mxu0  ;;  %4535 = vmatpush.bf16.msrb.mxu0 %v6825_v57  ;;  %v6809_v55 = vor.u32 %v7856_v63, %v6808_v2  ;;  %v7830_v57 = vld [vmem:[#allocation6 + $0x28c] sm:$0xf]  ;;  %v6440_v2 = vld [vmem:[#allocation6 + $0x68] sm:$0xf]  ;;  %v7764_v63 = vld [vmem:[#allocation6 + $0x74] sm:$0xf0]  ;;  %v6493_v52 = vor.u32 %v7774_v54, %v6490_v56 }
 0x210   :  { %v2927_v9 = vpop.f32.mrf.mxu3  ;;  %v6474_v61 = vld [vmem:[#allocation6 + $0xb8] sm:$0xf0]  ;;  %v7826_v31 = vld [vmem:[#allocation6 + $0x26c] sm:$0xf]  ;;  %v6392_v19 = vld [vmem:[#allocation6 + $0x8] sm:$0xf] }
 0x211   :  { %4572 = vmatpush.bf16.msrb.mxu2 %v7241_v7  ;;  %v7177_v7 = vor.u32 %v7948_v60, %v7176_v48  ;;  %4396 = vmatmul.bf16.vlgmr.msrb.gmra.mxu1 %v8448_v6  ;;  %v6457_v48 = vor.u32 %v7768_v47, %v6456_v40  ;;  %v6477_v13 = vor.u32 %v7770_v35, %v6474_v61  ;;  %v6442_v18 = vld [vmem:[#allocation6 + $0x78] sm:$0xf0]  ;;  %v7818_v21 = vld [vmem:[#allocation6 + $0x22c] sm:$0xf]  ;;  %v7752_v40 = vld [vmem:[#allocation6 + $0x14] sm:$0xf0] }
 0x212   :  { %4560 = vmatpush.bf16.msra.mxu3 %v7097_v33  ;;  %v7776_v33 = vld [vmem:[#allocation6 + $0xd4] sm:$0xf0]  ;;  %4487 = vmatmul.bf16.vlgmr.msra.gmra.mxu0 %v8448_v6  ;;  %v7016_v47 = vld [vmem:[#allocation6 + $0x4e8] sm:$0xf]  ;;  %v6426_v54 = vld [vmem:[#allocation6 + $0x58] sm:$0xf0] }
 0x213   :  { %4492 = vmatpush.bf16.msrb.mxu1 %v6505_v1  ;;  %v6489_v62 = vor.u32 %v7776_v33, %v6488_v8  ;;  %v4321_v22 = vpop.f32.mrf.mxu2  ;;  %4536 = vmatpush.bf16.msrb.mxu0 %v6809_v55  ;;  %v6842_v1 = vld [vmem:[#allocation6 + $0x398] sm:$0xf0]  ;;  %v6441_v33 = vor.u32 %v7764_v63, %v6440_v2  ;;  %v7904_v35 = vld [vmem:[#allocation6 + $0x4d4] sm:$0xf0]  ;;  %v7846_v61 = vld [vmem:[#allocation6 + $0x30c] sm:$0xf] }
 0x214   :  { %v6845_v55 = vor.u32 %v7862_v29, %v6842_v1  ;;  %v6408_v22 = vld [vmem:[#allocation6 + $0x28] sm:$0xf]  ;;  %v6650_v56 = vld [vmem:[#allocation6 + $0x218] sm:$0xf0] }
 0x215   :  { %4573 = vmatpush.bf16.msrb.mxu2 %v7225_v44  ;;  %v7874_v44 = vld [vmem:[#allocation6 + $0x3ec] sm:$0xf]  ;;  %v7000_v1 = vld [vmem:[#allocation6 + $0x4c8] sm:$0xf] }
 0x216   :  { %4561 = vmatpush.bf16.msra.mxu3 %v7081_v16  ;;  %v7838_v16 = vld [vmem:[#allocation6 + $0x2cc] sm:$0xf]  ;;  %v6893_v27 = vor.u32 %v7874_v44, %v6890_v4  ;;  %v6458_v4 = vld [vmem:[#allocation6 + $0x98] sm:$0xf0] }
 0x217   :  { %v6749_v30 = vor.u32 %v7838_v16, %v6746_v20  ;;  %4493 = vmatpush.bf16.msrb.mxu1 %v6489_v62  ;;  %4537 = vmatpush.bf16.msrb.mxu0 %v6793_v3  ;;  %v7766_v44 = vld [vmem:[#allocation6 + $0x8c] sm:$0xf]  ;;  %v6682_v16 = vld [vmem:[#allocation6 + $0x258] sm:$0xf0] }
 0x218   :  { %v7822_v62 = vld [vmem:[#allocation6 + $0x24c] sm:$0xf]  ;;  %v6461_v26 = vor.u32 %v7766_v44, %v6458_v4  ;;  %v6394_v4 = vld [vmem:[#allocation6 + $0x18] sm:$0xf0] }
 0x219   :  { %4574 = vmatpush.bf16.msrb.mxu2 %v7209_v46  ;;  %v7848_v46 = vld [vmem:[#allocation6 + $0x314] sm:$0xf0]  ;;  %v6685_v3 = vor.u32 %v7822_v62, %v6682_v16  ;;  %v7750_v44 = vld [vmem:[#allocation6 + $0xc] sm:$0xf]  ;;  %v7018_v16 = vld [vmem:[#allocation6 + $0x4f8] sm:$0xf0] }
 0x21a   :  { %4562 = vmatpush.bf16.msra.mxu3 %v7065_v32  ;;  %v7778_v32 = vld [vmem:[#allocation6 + $0xec] sm:$0xf]  ;;  %v6777_v17 = vor.u32 %v7848_v46, %v6776_v45  ;;  %v6810_v45 = vld [vmem:[#allocation6 + $0x358] sm:$0xf0] }
 0x21b   :  { %v6509_v42 = vor.u32 %v7778_v32, %v6506_v38  ;;  %4494 = vmatpush.bf16.msrb.mxu1 %v6473_v36  ;;  %v7762_v46 = vld [vmem:[#allocation6 + $0x6c] sm:$0xf]  ;;  %v6666_v32 = vld [vmem:[#allocation6 + $0x238] sm:$0xf0] }
 0x21c   :  { %4538 = vmatpush.bf16.msrb.mxu0 %v6777_v17  ;;  %v7908_v17 = vld [vmem:[#allocation6 + $0x4f4] sm:$0xf0]  ;;  %v7906_v62 = vld [vmem:[#allocation6 + $0x4ec] sm:$0xf] }
 0x21d   :  { %4575 = vmatpush.bf16.msrb.mxu2 %v7193_v28  ;;  %v7866_v28 = vld [vmem:[#allocation6 + $0x3ac] sm:$0xf]  ;;  %v7017_v2 = vor.u32 %v7908_v17, %v7016_v47  ;;  %v7210_v17 = vld [vmem:[#allocation6 + $0x678] sm:$0xf0] }
 0x21e   :  { %4563 = vmatpush.bf16.msra.mxu3 %v7049_v58  ;;  %v6714_v58 = vld [vmem:[#allocation6 + $0x298] sm:$0xf0]  ;;  %v6861_v60 = vor.u32 %v7866_v28, %v6858_v51  ;;  %v7758_v51 = vld [vmem:[#allocation6 + $0x4c] sm:$0xf] }
 0x21f   :  { %v6717_v0 = vor.u32 %v7830_v57, %v6714_v58  ;;  %4495 = vmatpush.bf16.msrb.mxu1 %v6457_v48  ;;  %v6794_v28 = vld [vmem:[#allocation6 + $0x338] sm:$0xf0]  ;;  %v7814_v48 = vld [vmem:[#allocation6 + $0x20c] sm:$0xf]  ;;  %v6393_v57 = vor.u32 %v7752_v40, %v6392_v19 }
 0x220   :  { %4583 = vmatpush.bf16.msra.mxu0 %v6509_v42  ;;  %v4345_v8 = vpop.f32.mrf.mxu1  ;;  %v6669_v42 = vor.u32 %v7818_v21, %v6666_v32  ;;  %v7970_v58 = vld [vmem:[#allocation6 + $0x6ec] sm:$0xf]  ;;  %v6653_v29 = vor.u32 %v7814_v48, %v6650_v56  ;;  %v7226_v21 = vld [vmem:[#allocation6 + $0x698] sm:$0xf0] }
 0x221   :  { %4576 = vmatpush.bf16.msrb.mxu2 %v7177_v7  ;;  %v6698_v7 = vld [vmem:[#allocation6 + $0x278] sm:$0xf0]  ;;  %v4346_v9 = vadd.f32 %v4345_v8, %v8446_v23  ;;  %4448 = vmatmul.bf16.vlgmr.msra.gmra.mxu1 %v8401_v43  ;;  %v7754_v8 = vld [vmem:[#allocation6 + $0x2c] sm:$0xf] }
 0x222   :  { %4564 = vmatpush.bf16.msra.mxu3 %v7033_v10  ;;  %v6424_v10 = vld [vmem:[#allocation6 + $0x48] sm:$0xf]  ;;  %v6701_v5 = vor.u32 %v7826_v31, %v6698_v7  ;;  %4539 = vmatmul.bf16.vlgmr.msrb.gmra.mxu0 %v8401_v43  ;;  %v6778_v7 = vld [vmem:[#allocation6 + $0x318] sm:$0xf0]  ;;  %v7954_v47 = vld [vmem:[#allocation6 + $0x66c] sm:$0xf] }
 0x223   :  { %4496 = vmatpush.bf16.msrb.mxu1 %v6441_v33  ;;  %v6425_v23 = vor.u32 %v7760_v12, %v6424_v10  ;;  %v6410_v33 = vld [vmem:[#allocation6 + $0x38] sm:$0xf0]  ;;  %v7001_v10 = vor.u32 %v7904_v35, %v7000_v1  ;;  %v6781_v12 = vor.u32 %v7846_v61, %v6778_v7  ;;  %v7894_v48 = vld [vmem:[#allocation6 + $0x48c] sm:$0xf]  ;;  %v6904_v7 = vld [vmem:[#allocation6 + $0x408] sm:$0xf] }
 0x224   :  { %4584 = vmatpush.bf16.msra.mxu0 %v6493_v52  ;;  %v6986_v40 = vld [vmem:[#allocation6 + $0x4b8] sm:$0xf0]  ;;  %v7946_v1 = vld [vmem:[#allocation6 + $0x62c] sm:$0xf] }
 0x225   :  { %4565 = vmatmul.bf16.vlgmr.msra.gmra.mxu3 %v8421_v37  ;;  %4577 = vmatpush.bf16.msrb.mxu2 %v7161_v24  ;;  %v7756_v24 = vld [vmem:[#allocation6 + $0x34] sm:$0xf0]  ;;  %v6970_v56 = vld [vmem:[#allocation6 + $0x498] sm:$0xf0] }
 0x226   :  { %4609 = vmatpush.bf16.msrb.mxu3 %v6765_v14  ;;  %v7858_v14 = vld [vmem:[#allocation6 + $0x36c] sm:$0xf]  ;;  %v6409_v38 = vor.u32 %v7756_v24, %v6408_v22  ;;  %v6397_v24 = vor.u32 %v7750_v44, %v6394_v4  ;;  %v7178_v35 = vld [vmem:[#allocation6 + $0x638] sm:$0xf0] }
 0x227   :  { %v6829_v20 = vor.u32 %v7858_v14, %v6826_v15  ;;  %4497 = vmatpush.bf16.msrb.mxu1 %v6425_v23  ;;  %v7900_v14 = vld [vmem:[#allocation6 + $0x4b4] sm:$0xf0]  ;;  %v7962_v23 = vld [vmem:[#allocation6 + $0x6ac] sm:$0xf] }
 0x228   :  { %4578 = vmatmul.bf16.vlgmr.msrb.gmra.mxu2 %v8448_v6  ;;  %4585 = vmatpush.bf16.msra.mxu0 %v6477_v13  ;;  %v4358_v53 = vpop.f32.mrf.mxu3  ;;  %v4347_v36 = vpop.f32.mrf.mxu1  ;;  %v6413_v13 = vor.u32 %v7754_v8, %v6410_v33  ;;  %v7880_v8 = vld [vmem:[#allocation6 + $0x414] sm:$0xf0] }
 0x229   :  { %4622 = vmatpush.bf16.msra.mxu2 %v6893_v27  ;;  %v7854_v27 = vld [vmem:[#allocation6 + $0x34c] sm:$0xf]  ;;  %v6952_v36 = vld [vmem:[#allocation6 + $0x468] sm:$0xf]  ;;  %v6905_v44 = vor.u32 %v7880_v8, %v6904_v7  ;;  %v7130_v8 = vld [vmem:[#allocation6 + $0x5d8] sm:$0xf0] }
 0x22a   :  { %4610 = vmatpush.bf16.msrb.mxu3 %v6749_v30  ;;  %v8457_v30 = vadd.f32 %v4358_v53, %v4346_v9  ;;  %v6813_v39 = vor.u32 %v7854_v27, %v6810_v45  ;;  %v7966_v9 = vld [vmem:[#allocation6 + $0x6cc] sm:$0xf]  ;;  %v6968_v53 = vld [vmem:[#allocation6 + $0x488] sm:$0xf] }
 0x22b   :  { %4498 = vmatpush.bf16.msrb.mxu1 %v6409_v38  ;;  %v7902_v45 = vld [vmem:[#allocation6 + $0x4cc] sm:$0xf] }
 0x22c   :  { %4586 = vmatpush.bf16.msra.mxu0 %v6461_v26  ;;  %v7896_v26 = vld [vmem:[#allocation6 + $0x494] sm:$0xf0]  ;;  %v7934_v7 = vld [vmem:[#allocation6 + $0x5cc] sm:$0xf] }
 0x22d   :  { %4623 = vmatpush.bf16.msra.mxu2 %v6877_v11  ;;  %v6445_v11 = vor.u32 %v7762_v46, %v6442_v18  ;;  %v7002_v46 = vld [vmem:[#allocation6 + $0x4d8] sm:$0xf0]  ;;  %v7958_v18 = vld [vmem:[#allocation6 + $0x68c] sm:$0xf]  ;;  %v6969_v32 = vor.u32 %v7896_v26, %v6968_v53 }
 0x22e   :  { %4611 = vmatpush.bf16.msrb.mxu3 %v6733_v50  ;;  %v7850_v50 = vld [vmem:[#allocation6 + $0x32c] sm:$0xf]  ;;  %v7005_v38 = vor.u32 %v7902_v45, %v7002_v46  ;;  %v7229_v19 = vor.u32 %v7958_v18, %v7226_v21  ;;  %v6922_v53 = vld [vmem:[#allocation6 + $0x438] sm:$0xf0] }
 0x22f   :  { %v6797_v63 = vor.u32 %v7850_v50, %v6794_v28  ;;  %4499 = vmatpush.bf16.msrb.mxu1 %v6393_v57  ;;  %v7888_v28 = vld [vmem:[#allocation6 + $0x454] sm:$0xf0]  ;;  %v7950_v57 = vld [vmem:[#allocation6 + $0x64c] sm:$0xf]  ;;  %v6602_v21 = vld [vmem:[#allocation6 + $0x1b8] sm:$0xf0] }
 0x230   :  { %4587 = vmatpush.bf16.msra.mxu0 %v6445_v11  ;;  %v4360_v52 = vpop.f32.mrf.mxu3  ;;  %v7802_v18 = vld [vmem:[#allocation6 + $0x1ac] sm:$0xf] }
 0x231   :  { %4624 = vmatpush.bf16.msra.mxu2 %v6861_v60  ;;  %v7274_v60 = vld [vmem:[#allocation6 + $0x6f8] sm:$0xf0]  ;;  %v6973_v52 = vor.u32 %v7894_v48, %v6970_v56  ;;  %v7786_v56 = vld [vmem:[#allocation6 + $0x12c] sm:$0xf] }
 0x232   :  { %4612 = vmatpush.bf16.msrb.mxu3 %v6717_v0  ;;  %v6429_v0 = vor.u32 %v7758_v51, %v6426_v54  ;;  %v7277_v31 = vor.u32 %v7970_v58, %v7274_v60  ;;  %4500 = vmatmul.bf16.vlgmr.msrb.gmra.mxu1 %v8377_v34  ;;  %v4371_v11 = vpop.f32.mrf.mxu2  ;;  %v7213_v54 = vor.u32 %v7954_v47, %v7210_v17  ;;  %v7194_v58 = vld [vmem:[#allocation6 + $0x658] sm:$0xf0]  ;;  %v7794_v17 = vld [vmem:[#allocation6 + $0x16c] sm:$0xf] }
 0x233   :  { %4544 = vmatpush.bf16.msra.mxu1 %v7017_v2  ;;  %v8464_v50 = vadd.f32 %v4371_v11, %v8457_v30  ;;  %v6920_v2 = vld [vmem:[#allocation6 + $0x428] sm:$0xf]  ;;  %v7197_v30 = vor.u32 %v7950_v57, %v7194_v58  ;;  %v6570_v11 = vld [vmem:[#allocation6 + $0x178] sm:$0xf0]  ;;  %v7978_v58 = vld [vmem:[#allocation9 + $0x28] sm:$0xff] }
 0x234   :  { %4588 = vmatpush.bf16.msra.mxu0 %v6429_v0  ;;  %v7890_v0 = vld [vmem:[#allocation6 + $0x46c] sm:$0xf]  ;;  %v6538_v57 = vld [vmem:[#allocation6 + $0x138] sm:$0xf0] }
 0x235   :  { %4625 = vmatpush.bf16.msra.mxu2 %v6845_v55  ;;  %v7258_v55 = vld [vmem:[#allocation6 + $0x6d8] sm:$0xf0] }
 0x236   :  { %4613 = vmatpush.bf16.msrb.mxu3 %v6701_v5  ;;  %v6984_v5 = vld [vmem:[#allocation6 + $0x4a8] sm:$0xf]  ;;  %v7261_v15 = vor.u32 %v7966_v9, %v7258_v55  ;;  %v7181_v9 = vor.u32 %v7946_v1, %v7178_v35  ;;  %v7810_v55 = vld [vmem:[#allocation6 + $0x1ec] sm:$0xf] }
 0x237   :  { %4545 = vmatpush.bf16.msra.mxu1 %v7001_v10  ;;  %v6985_v22 = vor.u32 %v7900_v14, %v6984_v5  ;;  %v6634_v10 = vld [vmem:[#allocation6 + $0x1f8] sm:$0xf0]  ;;  %v7942_v5 = vld [vmem:[#allocation6 + $0x60c] sm:$0xf] }
 0x238   :  { %4589 = vmatpush.bf16.msra.mxu0 %v6413_v13  ;;  %v6938_v13 = vld [vmem:[#allocation6 + $0x458] sm:$0xf0]  ;;  %v6637_v4 = vor.u32 %v7810_v55, %v6634_v10  ;;  %v7133_v55 = vor.u32 %v7934_v7, %v7130_v8  ;;  %v7930_v10 = vld [vmem:[#allocation6 + $0x5ac] sm:$0xf] }
 0x239   :  { %4626 = vmatpush.bf16.msra.mxu2 %v6829_v20  ;;  %v7242_v20 = vld [vmem:[#allocation6 + $0x6b8] sm:$0xf0] }
 0x23a   :  { %4614 = vmatpush.bf16.msrb.mxu3 %v6685_v3  ;;  %v7021_v3 = vor.u32 %v7906_v62, %v7018_v16  ;;  %v7245_v27 = vor.u32 %v7962_v23, %v7242_v20  ;;  %v4373_v61 = vpop.f32.mrf.mxu2  ;;  %v7162_v14 = vld [vmem:[#allocation6 + $0x618] sm:$0xf0]  ;;  %v7806_v20 = vld [vmem:[#allocation6 + $0x1cc] sm:$0xf] }
 0x23b   :  { %4546 = vmatpush.bf16.msra.mxu1 %v6985_v22  ;;  %v7165_v23 = vor.u32 %v7942_v5, %v7162_v14  ;;  %v6618_v22 = vld [vmem:[#allocation6 + $0x1d8] sm:$0xf0] }
 0x23c   :  { %4590 = vmatpush.bf16.msra.mxu0 %v6397_v24  ;;  %v7882_v24 = vld [vmem:[#allocation6 + $0x42c] sm:$0xf]  ;;  %v7976_v61 = vld [vmem:[#allocation9 + $0x18] sm:$0xff] }
 0x23d   :  { %4627 = vmatpush.bf16.msra.mxu2 %v6813_v39  ;;  %v7898_v39 = vld [vmem:[#allocation6 + $0x4ac] sm:$0xf]  ;;  %v6925_v46 = vor.u32 %v7882_v24, %v6922_v53  ;;  %v7992_v7 = vld [vmem:[#allocation9 + $0x98] sm:$0xff] }
 0x23e   :  { %4615 = vmatpush.bf16.msrb.mxu3 %v6669_v42  ;;  %v6989_v51 = vor.u32 %v7898_v39, %v6986_v40  ;;  %v6586_v39 = vld [vmem:[#allocation6 + $0x198] sm:$0xf0]  ;;  %v7986_v24 = vld [vmem:[#allocation9 + $0x68] sm:$0xff] }
 0x23f   :  { %4547 = vmatpush.bf16.msra.mxu1 %v6969_v32  ;;  %4591 = vmatmul.bf16.vlgmr.msra.gmra.mxu0 %v8377_v34  ;;  %v7878_v32 = vld [vmem:[#allocation6 + $0x40c] sm:$0xf] }
 0x240   :  { %4635 = vmatpush.bf16.msrb.mxu0 %v7021_v3 }
 0x241   :  { %4628 = vmatpush.bf16.msra.mxu2 %v6797_v63  ;;  %v7884_v63 = vld [vmem:[#allocation6 + $0x434] sm:$0xf0] }
 0x242   :  { %4616 = vmatpush.bf16.msrb.mxu3 %v6653_v29  ;;  %v6954_v29 = vld [vmem:[#allocation6 + $0x478] sm:$0xf0] }
 0x243   :  { %v6957_v33 = vor.u32 %v7890_v0, %v6954_v29 }
 0x244   :  { %4636 = vmatpush.bf16.msrb.mxu0 %v7005_v38 }
 0x245   :  { %4617 = vmatmul.bf16.vlgmr.msrb.gmra.mxu3 %v8399_v41  ;;  %4629 = vmatpush.bf16.msra.mxu2 %v6781_v12  ;;  %v7892_v41 = vld [vmem:[#allocation6 + $0x474] sm:$0xf0]  ;;  %v7886_v12 = vld [vmem:[#allocation6 + $0x44c] sm:$0xf] }
 0x246   :  { %4661 = vmatpush.bf16.msra.mxu3 %v7277_v31  ;;  %v6953_v42 = vor.u32 %v7892_v41, %v6952_v36  ;;  %v6921_v31 = vor.u32 %v7884_v63, %v6920_v2  ;;  %v6941_v16 = vor.u32 %v7886_v12, %v6938_v13  ;;  %v6906_v36 = vld [vmem:[#allocation6 + $0x418] sm:$0xf0]  ;;  %v6605_v41 = vor.u32 %v7802_v18, %v6602_v21  ;;  %v7782_v63 = vld [vmem:[#allocation6 + $0x10c] sm:$0xf] }
 0x247   :  { %v6909_v38 = vor.u32 %v7878_v32, %v6906_v36  ;;  %v6541_v2 = vor.u32 %v7786_v56, %v6538_v57  ;;  %v7114_v12 = vld [vmem:[#allocation6 + $0x5b8] sm:$0xf0]  ;;  %v7914_v18 = vld [vmem:[#allocation6 + $0x52c] sm:$0xf] }
 0x248   :  { %4630 = vmatmul.bf16.vlgmr.msra.gmra.mxu2 %v8401_v43  ;;  %v6936_v43 = vld [vmem:[#allocation6 + $0x448] sm:$0xf]  ;;  %4548 = vmatpush.bf16.msra.mxu1 %v6953_v42  ;;  %v4410_v34 = vpop.f32.mrf.mxu3  ;;  %v7980_v42 = vld [vmem:[#allocation9 + $0x38] sm:$0xff]  ;;  %v7117_v14 = vor.u32 %v7930_v10, %v7114_v12  ;;  %v7991_v12 = vld [vmem:[#allocation9 + $0x90] sm:$0xff] }
 0x249   :  { %v6937_v60 = vor.u32 %v7888_v28, %v6936_v43  ;;  %4637 = vmatpush.bf16.msrb.mxu0 %v6989_v51  ;;  %4942 = vmatpush.bf16.msrb.mxu2 %v7980_v42  ;;  %v6573_v43 = vor.u32 %v7794_v17, %v6570_v11  ;;  %v7790_v28 = vld [vmem:[#allocation6 + $0x14c] sm:$0xf]  ;;  %v6554_v51 = vld [vmem:[#allocation6 + $0x158] sm:$0xf0] }
 0x24a   :  { %4662 = vmatpush.bf16.msra.mxu3 %v7261_v15  ;;  %v3183_v15 = vperm.slane %v8441_v25, 1  ;;  %v7050_v21 = vld [vmem:[#allocation6 + $0x538] sm:$0xf0]  ;;  %v7982_v17 = vld [vmem:[#allocation9 + $0x48] sm:$0xff] }
 0x24b   :  { %v4423_v3 = vpop.f32.mrf.mxu2  ;;  %v7984_v32 = vld [vmem:[#allocation9 + $0x58] sm:$0xff] }
 0x24c   :  { %4549 = vmatpush.bf16.msra.mxu1 %v6937_v60  ;;  %v4411_v26 = vadd.f32 %v4410_v34, %v3183_v15  ;;  %v6522_v34 = vld [vmem:[#allocation6 + $0x118] sm:$0xf0]  ;;  %v7974_v15 = vld [vmem:[#allocation9 + $0x8] sm:$0xff] }
 0x24d   :  { %4638 = vmatpush.bf16.msrb.mxu0 %v6973_v52  ;;  %v7938_v52 = vld [vmem:[#allocation6 + $0x5ec] sm:$0xf]  ;;  %v6525_v29 = vor.u32 %v7782_v63, %v6522_v34  ;;  %v7996_v63 = vld [vmem:[#allocation9 + $0xb8] sm:$0xff] }
 0x24e   :  { %4663 = vmatpush.bf16.msra.mxu3 %v7245_v27  ;;  %v6621_v27 = vor.u32 %v7806_v20, %v6618_v22  ;;  %v8467_v45 = vadd.f32 %v4423_v3, %v4411_v26  ;;  %v7922_v20 = vld [vmem:[#allocation6 + $0x56c] sm:$0xf]  ;;  %v7082_v22 = vld [vmem:[#allocation6 + $0x578] sm:$0xf0]  ;;  %v7985_v26 = vld [vmem:[#allocation9 + $0x60] sm:$0xff] }
 0x24f   :  { %v7085_v53 = vor.u32 %v7922_v20, %v7082_v22  ;;  %v7918_v3 = vld [vmem:[#allocation6 + $0x54c] sm:$0xf] }
 0x250   :  { %4550 = vmatpush.bf16.msra.mxu1 %v6921_v31  ;;  %v4412_v62 = vpop.f32.mrf.mxu3 }
 0x251   :  { %4639 = vmatpush.bf16.msrb.mxu0 %v6957_v33  ;;  %v7975_v33 = vld [vmem:[#allocation9 + $0x10] sm:$0xff] }
 0x252   :  { %4664 = vmatpush.bf16.msra.mxu3 %v7229_v19  ;;  %v7798_v19 = vld [vmem:[#allocation6 + $0x18c] sm:$0xf]  ;;  %v7987_v62 = vld [vmem:[#allocation9 + $0x70] sm:$0xff] }
 0x253   :  { %v4425_v40 = vpop.f32.mrf.mxu2  ;;  %v6589_v47 = vor.u32 %v7798_v19, %v6586_v39  ;;  %v7034_v19 = vld [vmem:[#allocation6 + $0x518] sm:$0xf0] }
 0x254   :  { %4551 = vmatpush.bf16.msra.mxu1 %v6905_v44  ;;  %v7926_v44 = vld [vmem:[#allocation6 + $0x58c] sm:$0xf]  ;;  %v7983_v40 = vld [vmem:[#allocation9 + $0x50] sm:$0xff] }
 0x255   :  { %4640 = vmatpush.bf16.msrb.mxu0 %v6941_v16 }
 0x256   :  { %4665 = vmatpush.bf16.msra.mxu3 %v7213_v54  ;;  %v6557_v54 = vor.u32 %v7790_v28, %v6554_v51 }
 0x257   :  { %4552 = vmatmul.bf16.vlgmr.msra.gmra.mxu1 %v8412_v59 }
 0x258   :  { %4596 = vmatpush.bf16.msrb.mxu1 %v6637_v4  ;;  %v8472_v48 = vpop.f32.mrf.mxu0  ;;  %v7098_v4 = vld [vmem:[#allocation6 + $0x598] sm:$0xf0] }
 0x259   :  { %4641 = vmatpush.bf16.msrb.mxu0 %v6925_v46  ;;  %v7101_v16 = vor.u32 %v7926_v44, %v7098_v4  ;;  %v4385_v28 = vadd.f32 %v8472_v48, %v8464_v50 }
 0x25a   :  { %4666 = vmatpush.bf16.msra.mxu3 %v7197_v30  ;;  %v7146_v30 = vld [vmem:[#allocation6 + $0x5f8] sm:$0xf0] }
 0x25b   :  { %v7149_v35 = vor.u32 %v7938_v52, %v7146_v30  ;;  %v7994_v30 = vld [vmem:[#allocation9 + $0xa8] sm:$0xff] }
 0x25c   :  { %4597 = vmatpush.bf16.msrb.mxu1 %v6621_v27  ;;  %v7066_v27 = vld [vmem:[#allocation6 + $0x558] sm:$0xf0] }
 0x25d   :  { %4642 = vmatpush.bf16.msrb.mxu0 %v6909_v38  ;;  %v7069_v46 = vor.u32 %v7918_v3, %v7066_v27  ;;  %v7910_v38 = vld [vmem:[#allocation6 + $0x50c] sm:$0xf] }
 0x25e   :  { %4667 = vmatpush.bf16.msra.mxu3 %v7181_v9  ;;  %v7988_v9 = vld [vmem:[#allocation9 + $0x78] sm:$0xff] }
 0x260   :  { %4598 = vmatpush.bf16.msrb.mxu1 %v6605_v41  ;;  %4643 = vmatmul.bf16.vlgmr.msrb.gmra.mxu0 %v8412_v59  ;;  %v7977_v59 = vld [vmem:[#allocation9 + $0x20] sm:$0xff]  ;;  %v4386_v1 = vpop.f32.mrf.mxu0  ;;  %v7053_v41 = vor.u32 %v7914_v18, %v7050_v21  ;;  %v8003_v18 = vld [vmem:[#allocation9 + $0xf0] sm:$0xff] }
 0x261   :  { %4955 = vmatpush.bf16.msra.mxu0 %v7988_v9 }
 0x262   :  { %4668 = vmatpush.bf16.msra.mxu3 %v7165_v23  ;;  %v7973_v23 = vld [vmem:[#allocation9] sm:$0xff] }
 0x264   :  { %4599 = vmatpush.bf16.msrb.mxu1 %v6589_v47  ;;  %v7037_v47 = vor.u32 %v7910_v38, %v7034_v19 }
 0x265   :  { %4669 = vmatmul.bf16.vlgmr.msra.gmra.mxu3 %v8448_v6  ;;  %v7979_v6 = vld [vmem:[#allocation9 + $0x30] sm:$0xff]  ;;  %4956 = vmatpush.bf16.msra.mxu0 %v7987_v62 }
 0x266   :  { %4943 = vmatpush.bf16.msrb.mxu2 %v7979_v6 }
 0x268   :  { %4600 = vmatpush.bf16.msrb.mxu1 %v6573_v43  ;;  %v8474_v60 = vpop.f32.mrf.mxu3  ;;  %v4436_v5 = vpop.f32.mrf.mxu0  ;;  %v7981_v43 = vld [vmem:[#allocation9 + $0x40] sm:$0xff] }
 0x269   :  { %4957 = vmatpush.bf16.msra.mxu0 %v7986_v24 }
 0x26a   :  { %4944 = vmatpush.bf16.msrb.mxu2 %v7978_v58 }
 0x26b   :  { %v8476_v0 = vpop.f32.mrf.mxu2 }
 0x26c   :  { %4601 = vmatpush.bf16.msrb.mxu1 %v6557_v54 }
 0x26d   :  { %4958 = vmatpush.bf16.msra.mxu0 %v7985_v26  ;;  %v8004_v26 = vld [vmem:[#allocation9 + $0xf8] sm:$0xff] }
 0x26e   :  { %4945 = vmatpush.bf16.msrb.mxu2 %v7977_v59  ;;  %v7995_v59 = vld [vmem:[#allocation9 + $0xb0] sm:$0xff]  ;;  %4981 = vmatpush.bf16.msrb.mxu3 %v8004_v26 }
 0x270   :  { %4602 = vmatpush.bf16.msrb.mxu1 %v6541_v2  ;;  %v4464_v31 = vpop.f32.mrf.mxu3 }
 0x271   :  { %4959 = vmatpush.bf16.msra.mxu0 %v7984_v32  ;;  %v8002_v32 = vld [vmem:[#allocation9 + $0xe8] sm:$0xff] }
 0x272   :  { %4946 = vmatpush.bf16.msrb.mxu2 %v7976_v61  ;;  %v7993_v61 = vld [vmem:[#allocation9 + $0xa0] sm:$0xff]  ;;  %4982 = vmatpush.bf16.msrb.mxu3 %v8003_v18 }
 0x273   :  { %v4477_v13 = vpop.f32.mrf.mxu2 }
 0x274   :  { %4603 = vmatpush.bf16.msrb.mxu1 %v6525_v29  ;;  %v3184_v13 = vperm.slane %v8441_v25, 2 }
 0x275   :  { %4960 = vmatpush.bf16.msra.mxu0 %v7983_v40  ;;  %v8000_v40 = vld [vmem:[#allocation9 + $0xd8] sm:$0xff] }
 0x276   :  { %4947 = vmatpush.bf16.msrb.mxu2 %v7975_v33  ;;  %4983 = vmatpush.bf16.msrb.mxu3 %v8002_v32 }
 0x277   :  { %4604 = vmatmul.bf16.vlgmr.msrb.gmra.mxu1 %v8379_v49  ;;  %v4438_v49 = vpop.f32.mrf.mxu0 }
 0x278   :  { %4648 = vmatpush.bf16.msra.mxu1 %v7149_v35 }
 0x279   :  { %4961 = vmatpush.bf16.msra.mxu0 %v7982_v17 }
 0x27a   :  { %4948 = vmatpush.bf16.msrb.mxu2 %v7974_v15 }
 0x27c   :  { %4649 = vmatpush.bf16.msra.mxu1 %v7133_v55 }
 0x27d   :  { %4962 = vmatpush.bf16.msra.mxu0 %v7981_v43  ;;  %v7998_v43 = vld [vmem:[#allocation9 + $0xc8] sm:$0xff] }
 0x27e   :  { %4949 = vmatpush.bf16.msrb.mxu2 %v7973_v23 }
 0x280   :  { %4650 = vmatpush.bf16.msra.mxu1 %v7117_v14 }
 0x284   :  { %4651 = vmatpush.bf16.msra.mxu1 %v7101_v16 }
 0x288   :  { %4652 = vmatpush.bf16.msra.mxu1 %v7085_v53  ;;  %v4514_v36 = vpop.f32.mrf.mxu3 }
 0x28b   :  { %v4527_v39 = vpop.f32.mrf.mxu2 }
 0x28c   :  { %4653 = vmatpush.bf16.msra.mxu1 %v7069_v46 }
 0x28e   :  { %v4397_v51 = vpop.f32.mrf.mxu1 }
 0x28f   :  { %v4488_v6 = vpop.f32.mrf.mxu0  ;;  %v4398_v54 = vadd.f32 %v4397_v51, %v4385_v28 }
 0x290   :  { %4654 = vmatpush.bf16.msra.mxu1 %v7053_v41  ;;  %v4516_v11 = vpop.f32.mrf.mxu3 }
 0x291   :  { %v4674_v56 = vmax.f32 %v4398_v54, 0.0  ;;  %v7999_v11 = vld [vmem:[#allocation9 + $0xd0] sm:$0xff]  ;;  %v7997_v54 = vld [vmem:[#allocation9 + $0xc0] sm:$0xff] }
 0x293   :  { %v4529_v42 = vpop.f32.mrf.mxu2  ;;  %v4678_v57 = vpack.c.bf16 %v4674_v56, %v4674_v56 }
 0x294   :  { %4655 = vmatpush.bf16.msra.mxu1 %v7037_v47  ;;  %v3185_v42 = vperm.slane %v8441_v25, 3 }
 0x295   :  { %4950 = vmatmul.bf16.vlgmr.msrb.gmra.mxu2 %v4678_v57 }
 0x296   :  { %v4399_v58 = vpop.f32.mrf.mxu1 }
 0x297   :  { %4656 = vmatmul.bf16.vlgmr.msra.gmra.mxu1 %v8421_v37  ;;  %v4490_v2 = vpop.f32.mrf.mxu0  ;;  %v4437_v37 = vadd.f32 %v4436_v5, %v8467_v45  ;;  %v7990_v5 = vld [vmem:[#allocation9 + $0x88] sm:$0xff] }
 0x298   :  { %4968 = vmatpush.bf16.msrb.mxu1 %v7996_v63 }
 0x29c   :  { %4969 = vmatpush.bf16.msrb.mxu1 %v7995_v59 }
 0x29e   :  { %v4449_v29 = vpop.f32.mrf.mxu1 }
 0x29f   :  { %v4540_v1 = vpop.f32.mrf.mxu0  ;;  %v4450_v50 = vadd.f32 %v4449_v29, %v4437_v37 }
 0x2a0   :  { %4970 = vmatpush.bf16.msrb.mxu1 %v7994_v30 }
 0x2a1   :  { %v4463_v48 = vadd.f32 %v8474_v60, %v4450_v50 }
 0x2a3   :  { %v4476_v31 = vadd.f32 %v8476_v0, %v4463_v48  ;;  %v7989_v0 = vld [vmem:[#allocation9 + $0x80] sm:$0xff] }
 0x2a4   :  { %4971 = vmatpush.bf16.msrb.mxu1 %v7993_v61 }
 0x2a5   :  { %v4489_v33 = vadd.f32 %v4488_v6, %v4476_v31 }
 0x2a6   :  { %v4451_v9 = vpop.f32.mrf.mxu1 }
 0x2a7   :  { %v4542_v55 = vpop.f32.mrf.mxu0  ;;  %v4675_v10 = vmax.f32 %v4489_v33, 0.0 }
 0x2a8   :  { %v4566_v34 = vpop.f32.mrf.mxu3  ;;  %4972 = vmatpush.bf16.msrb.mxu1 %v7992_v7 }
 0x2a9   :  { %v4679_v45 = vpack.c.bf16 %v4675_v10, %v4675_v10 }
 0x2ab   :  { %v4579_v52 = vpop.f32.mrf.mxu2  ;;  %4963 = vmatmul.bf16.vlgmr.msra.gmra.mxu0 %v4679_v45 }
 0x2ac   :  { %4973 = vmatpush.bf16.msrb.mxu1 %v7991_v12 }
 0x2af   :  { %v4501_v60 = vpop.f32.mrf.mxu1 }
 0x2b0   :  { %v4568_v35 = vpop.f32.mrf.mxu3  ;;  %v4502_v14 = vadd.f32 %v4501_v60, %v3184_v13  ;;  %4974 = vmatpush.bf16.msrb.mxu1 %v7990_v5 }
 0x2b2   :  { %v4515_v15 = vadd.f32 %v4514_v36, %v4502_v14 }
 0x2b3   :  { %v4581_v8 = vpop.f32.mrf.mxu2 }
 0x2b4   :  { %v4528_v44 = vadd.f32 %v4527_v39, %v4515_v15  ;;  %4975 = vmatpush.bf16.msrb.mxu1 %v7989_v0  ;;  %v8001_v39 = vld [vmem:[#allocation9 + $0xe0] sm:$0xff] }
 0x2b5   :  { %4984 = vmatpush.bf16.msrb.mxu3 %v8001_v39 }
 0x2b6   :  { %v4541_v49 = vadd.f32 %v4540_v1, %v4528_v44  ;;  %v8017_v1 = vld [vmem:[#allocation10] ss:$0 sm:$0xff] }
 0x2b7   :  { %v4503_v4 = vpop.f32.mrf.mxu1 }
 0x2b9   :  { %4985 = vmatpush.bf16.msrb.mxu3 %v8000_v40 }
 0x2bc   :  { %v4592_v16 = vpop.f32.mrf.mxu0 }
 0x2bd   :  { %4986 = vmatpush.bf16.msrb.mxu3 %v7999_v11  ;;  %v4593_v28 = vadd.f32 %v4592_v16, %v3185_v42 }
 0x2c1   :  { %4987 = vmatpush.bf16.msrb.mxu3 %v7998_v43 }
 0x2c4   :  { %v4594_v22 = vpop.f32.mrf.mxu0 }
 0x2c5   :  { %4988 = vmatpush.bf16.msrb.mxu3 %v7997_v54 }
 0x2c8   :  { %v4618_v62 = vpop.f32.mrf.mxu3 }
 0x2cb   :  { %v4631_v23 = vpop.f32.mrf.mxu2 }
 0x2d0   :  { %v4620_v20 = vpop.f32.mrf.mxu3 }
 0x2d3   :  { %v4633_v24 = vpop.f32.mrf.mxu2 }
 0x2d4   :  { %v4553_v53 = vpop.f32.mrf.mxu1 }
 0x2d5   :  { %v4554_v3 = vadd.f32 %v4553_v53, %v4541_v49 }
 0x2d7   :  { %v4567_v27 = vadd.f32 %v4566_v34, %v4554_v3 }
 0x2d9   :  { %v4580_v46 = vadd.f32 %v4579_v52, %v4567_v27 }
 0x2db   :  { %v4676_v21 = vmax.f32 %v4580_v46, 0.0 }
 0x2dc   :  { %v4555_v36 = vpop.f32.mrf.mxu1 }
 0x2dd   :  { %v4680_v38 = vpack.c.bf16 %v4676_v21, %v4676_v21  ;;  %v4644_v19 = vpop.f32.mrf.mxu0 }
 0x2df   :  { %4976 = vmatmul.bf16.vlgmr.msrb.gmra.mxu1 %v4680_v38 }
 0x2e5   :  { %v4646_v17 = vpop.f32.mrf.mxu0 }
 0x2e8   :  { %v4670_v41 = vpop.f32.mrf.mxu3 }
 0x2f0   :  { %v4672_v47 = vpop.f32.mrf.mxu3 }
 0x2f4   :  { %v4605_v51 = vpop.f32.mrf.mxu1 }
 0x2f5   :  { %v4606_v6 = vadd.f32 %v4605_v51, %v4593_v28 }
 0x2f7   :  { %v4619_v56 = vadd.f32 %v4618_v62, %v4606_v6 }
 0x2f9   :  { %v4632_v57 = vadd.f32 %v4631_v23, %v4619_v56 }
 0x2fb   :  { %v4645_v2 = vadd.f32 %v4644_v19, %v4632_v57 }
 0x2fc   :  { %v4607_v58 = vpop.f32.mrf.mxu1 }
 0x314   :  { %v4657_v63 = vpop.f32.mrf.mxu1 }
 0x315   :  { %v4658_v34 = vadd.f32 %v4657_v63, %v4645_v2 }
 0x317   :  { %v4671_v59 = vadd.f32 %v4670_v41, %v4658_v34 }
 0x318   :  { %v4951_v29 = vpop.f32.mrf.mxu2 }
 0x319   :  { %v4677_v52 = vmax.f32 %v4671_v59, 0.0  ;;  %v4952_v50 = vadd.f32 %v8017_v1, %v4951_v29 }
 0x31b   :  { %v4681_v37 = vpack.c.bf16 %v4677_v52, %v4677_v52 }
 0x31c   :  { %v4659_v30 = vpop.f32.mrf.mxu1 }
 0x31d   :  { %4989 = vmatmul.bf16.vlgmr.msrb.gmra.mxu3 %v4681_v37 }
 0x320   :  { %v4953_v25 = vpop.f32.mrf.mxu2 }
 0x328   :  { %v4964_v48 = vpop.f32.mrf.mxu0 }
 0x329   :  { %v4965_v35 = vadd.f32 %v4964_v48, %v4952_v50 }
 0x330   :  { %v4966_v61 = vpop.f32.mrf.mxu0 }
 0x35c   :  { %v4977_v31 = vpop.f32.mrf.mxu1 }
 0x35d   :  { %v4978_v8 = vadd.f32 %v4977_v31, %v4965_v35 }
 0x364   :  { %v4979_v7 = vpop.f32.mrf.mxu1 }
 0x3a0   :  { %v4990_v33 = vpop.f32.mrf.mxu3 }
 0x3a1   :  { %v4991_v9 = vadd.f32 %v4990_v33, %v4978_v8 }
 0x3a3   :  { %4994 = vst [vmem:[%s8497_s7] sm:$0xff] %v4991_v9 }
 0x3a8   :  { %v4992_v55 = vpop.f32.mrf.mxu3 }
 0x3a9   :  { %4999 = vsyncpa [#allocation3], 1 }
 0x3aa   :  { %5000 = vsyncpa [#allocation5], 1 }
 0x3ab   :  { %5001 = vsyncpa [#allocation8], 1 }
 0x3ac   :  { %5002 = vsyncpa [#allocation11], 1 }

</bundles_post_ra>
